<compile_context>
chip_gen: v7x
topology: tpu7x:2x2x1
jax: 0.10.0
libtpu: 0.0.40
codegen_flags: <defaults>
</compile_context>

<pallas_src>
import jax
import jax.numpy as jnp
from jax.experimental import pallas as pl
from jax.experimental.pallas import tpu as pltpu

EPS = 1e-5
LANE = 128
MAX_TILE_ROWS = 2048  # output pixels (TH*W) per grid step; keeps tiles far below VMEM


def _round_up(x, m):
    return (x + m - 1) // m * m


def _pick_th(H, W):
    """Largest divisor of H such that a tile has <= MAX_TILE_ROWS output pixels."""
    th = 1
    for cand in range(1, H + 1):
        if H % cand == 0 and cand * W <= MAX_TILE_ROWS:
            th = cand
    return th


# ----------------------------- Pallas kernels ------------------------------
def _conv_acc(top_ref, mid_ref, bot_ref, w_ref):
    """3x3 conv for one (TH, W) strip: 9 shifted bf16 matmuls, f32 accumulation."""
    TH, Wp2, Cin = top_ref.shape
    W = Wp2 - 2
    Cp = w_ref.shape[-1]
    acc = jnp.zeros((TH * W, Cp), jnp.float32)
    slabs = (top_ref[...], mid_ref[...], bot_ref[...])   # each (TH, W+2, Cin) bf16
    for dy in range(3):
        slab = slabs[dy]
        for dx in range(3):
            xs = slab[:, dx:dx + W, :].reshape(TH * W, Cin)
            acc = acc + jnp.dot(xs, w_ref[dy * 3 + dx],
                                preferred_element_type=jnp.float32)
    return acc, TH, W, Cp


def _conv_stats_kernel(top_ref, mid_ref, bot_ref, w_ref, y_ref, stats_ref):
    # Pass 1 (BN path): conv output tile + per-tile channel sum / sum-of-squares.
    # Conv bias is intentionally omitted: it cancels exactly in BatchNorm.
    acc, TH, W, Cp = _conv_acc(top_ref, mid_ref, bot_ref, w_ref)
    y_ref[...] = acc.reshape(TH, W, Cp)
    stats_ref[0:1, :] = jnp.sum(acc, axis=0, keepdims=True)
    stats_ref[1:2, :] = jnp.sum(acc * acc, axis=0, keepdims=True)


def _bn_relu_kernel(y_ref, scale_ref, shift_ref, o_ref):
    # Pass 2: y * scale + shift, ReLU. scale/shift are pre-folded (1, Cp) vectors.
    y = y_ref[...]
    o_ref[...] = jnp.maximum(y * scale_ref[...] + shift_ref[...], 0.0).astype(o_ref.dtype)


def _conv_bias_relu_kernel(top_ref, mid_ref, bot_ref, w_ref, b_ref, o_ref):
    # is_batchnorm=False path: conv + bias + ReLU fused in one pass.
    acc, TH, W, Cp = _conv_acc(top_ref, mid_ref, bot_ref, w_ref)
    y = acc + b_ref[...]
    o_ref[...] = jnp.maximum(y, 0.0).reshape(TH, W, Cp).astype(o_ref.dtype)


# ------------------------------- glue / wrapper -----------------------------
def conv_block(x_nhwc, w_oihw, b, gamma, beta, *, use_bn=True):
    """One Conv(3x3, s=1, p=1) [+ BN] + ReLU block. Returns NHWC bf16."""
    N, H, W, Cin = x_nhwc.shape
    Cout = w_oihw.shape[0]
    Cp = _round_up(Cout, LANE)            # lane-dense output channels
    TH = _pick_th(H, W)
    Ht = H // TH
    grid = (N, Ht)

    # Inputs in bf16; spatial padding once, three row-shifted views (dy = 0,1,2).
    xb = x_nhwc.astype(jnp.bfloat16)
    xp = jnp.pad(xb, ((0, 0), (1, 1), (1, 1), (0, 0)))          # (N, H+2, W+2, Cin)
    top = xp[:, 0:H, :, :]
    mid = xp[:, 1:H + 1, :, :]
    bot = xp[:, 2:H + 2, :, :]

    # Weight OIHW -> (9, Cin, Cp) bf16, Cout zero-padded to a multiple of 128.
    w_mat = jnp.transpose(w_oihw, (2, 3, 1, 0)).reshape(9, Cin, Cout)
    w_mat = jnp.pad(w_mat, ((0, 0), (0, 0), (0, Cp - Cout))).astype(jnp.bfloat16)

    slab_spec = pl.BlockSpec((None, TH, W + 2, Cin), lambda n, h: (n, h, 0, 0))
    w_spec = pl.BlockSpec((9, Cin, Cp), lambda n, h: (0, 0, 0))       # resident
    vec_spec = pl.BlockSpec((1, Cp), lambda n, h: (0, 0))             # resident
    tile_spec = pl.BlockSpec((None, TH, W, Cp), lambda n, h: (n, h, 0, 0))
    stats_spec = pl.BlockSpec((None, None, 2, Cp), lambda n, h: (n, h, 0, 0))

    flops = 2 * N * H * W * 9 * Cin * Cp
    bytes_in = 3 * N * H * (W + 2) * Cin * 2 + 9 * Cin * Cp * 2
    cparams = pltpu.CompilerParams(dimension_semantics=("parallel", "parallel"))

    if use_bn:
        # ---- pass 1: tiled conv + per-tile partial BN statistics ----
        y, stats = pl.pallas_call(
            _conv_stats_kernel,
            out_shape=(jax.ShapeDtypeStruct((N, H, W, Cp), jnp.float32),
                       jax.ShapeDtypeStruct((N, Ht, 2, Cp), jnp.float32)),
            grid=grid,
            in_specs=[slab_spec, slab_spec, slab_spec, w_spec],
            out_specs=[tile_spec, stats_spec],
            compiler_params=cparams,
            cost_estimate=pl.CostEstimate(
                flops=flops, transcendentals=0,
                bytes_accessed=bytes_in + N * H * W * Cp * 4 + N * Ht * 2 * Cp * 4),
        )(top, mid, bot, w_mat)

        # ---- global BN statistics + folded scale/shift (tiny host-side math) ----
        cnt = jnp.float32(N * H * W)
        ch_sum = jnp.sum(stats[:, :, 0, :], axis=(0, 1))
        ch_sq = jnp.sum(stats[:, :, 1, :], axis=(0, 1))
        mean = ch_sum / cnt
        var = jnp.maximum(ch_sq / cnt - mean * mean, 0.0)
        gamma_p = jnp.pad(gamma.astype(jnp.float32), (0, Cp - Cout))
        beta_p = jnp.pad(beta.astype(jnp.float32), (0, Cp - Cout))
        scale_v = gamma_p * jax.lax.rsqrt(var + EPS)
        shift_v = beta_p - mean * scale_v          # conv bias dropped: cancelled by BN
        scale = scale_v.reshape(1, Cp).astype(jnp.float32)
        shift = shift_v.reshape(1, Cp).astype(jnp.float32)

        # ---- pass 2: fused normalize + ReLU (elementwise, fully parallel) ----
        out = pl.pallas_call(
            _bn_relu_kernel,
            out_shape=jax.ShapeDtypeStruct((N, H, W, Cp), jnp.bfloat16),
            grid=grid,
            in_specs=[tile_spec, vec_spec, vec_spec],
            out_specs=tile_spec,
            compiler_params=cparams,
        )(y, scale, shift)
    else:
        b_p = jnp.pad(b.astype(jnp.float32), (0, Cp - Cout)).reshape(1, Cp)
        out = pl.pallas_call(
            _conv_bias_relu_kernel,
            out_shape=jax.ShapeDtypeStruct((N, H, W, Cp), jnp.bfloat16),
            grid=grid,
            in_specs=[slab_spec, slab_spec, slab_spec, w_spec, vec_spec],
            out_specs=tile_spec,
            compiler_params=cparams,
            cost_estimate=pl.CostEstimate(
                flops=flops, transcendentals=0,
                bytes_accessed=bytes_in + N * H * W * Cp * 2),
        )(top, mid, bot, w_mat, b_p)

    return out[..., :Cout]     # drop padded channels before the next block


def unet_conv2_forward(x_nchw, params, *, use_bn=True):
    # PyTorch is NCHW; kernel path uses NHWC / bf16 internally.
    x = jnp.transpose(x_nchw, (0, 2, 3, 1))          # NCHW -> NHWC
    for (w, b, g, beta) in params:
        x = conv_block(x, w, b, g, beta, use_bn=use_bn)
    return jnp.transpose(x, (0, 3, 1, 2)).astype(jnp.float32)   # NHWC -> NCHW


# --------------------------- deterministic params ---------------------------
def init_params(key, in_size, out_size, n=2, ks=3):
    # Conv: kaiming_normal_(a=0, mode='fan_in') -> std = sqrt(2 / fan_in)
    # Conv bias: PyTorch default uniform(-1/sqrt(fan_in), 1/sqrt(fan_in))
    # BatchNorm: weight ~ N(1, 0.02), bias = 0
    params = []
    c_in = in_size
    for _ in range(n):
        key, k1, k2, k3 = jax.random.split(key, 4)
        fan_in = c_in * ks * ks
        std = (2.0 / fan_in) ** 0.5
        w = std * jax.random.normal(k1, (out_size, c_in, ks, ks), jnp.float32)
        bound = 1.0 / (fan_in ** 0.5)
        b = jax.random.uniform(k2, (out_size,), jnp.float32, -bound, bound)
        gamma = 1.0 + 0.02 * jax.random.normal(k3, (out_size,), jnp.float32)
        beta = jnp.zeros((out_size,), jnp.float32)
        params.append((w, b, gamma, beta))
        c_in = out_size
    return params


# ------------------------------ pure-JAX reference ---------------------------
def _ref_forward(x_nchw, params, *, use_bn=True):
    # Mirrors the kernel's dtype policy (bf16 conv operands, f32 accumulation/BN)
    # so the comparison isolates kernel correctness rather than bf16 rounding.
    x = x_nchw
    for (w, b, g, beta) in params:
        y = jax.lax.conv_general_dilated(
            x.astype(jnp.bfloat16), w.astype(jnp.bfloat16), (1, 1), ((1, 1), (1, 1)),
            dimension_numbers=("NCHW", "OIHW", "NCHW"),
            preferred_element_type=jnp.float32)
        y = y + b[None, :, None, None]
        if use_bn:
            mean = jnp.mean(y, axis=(0, 2, 3), keepdims=True)
            var = jnp.mean((y - mean) ** 2, axis=(0, 2, 3), keepdims=True)
            y = (y - mean) * jax.lax.rsqrt(var + EPS)
            y = y * g[None, :, None, None] + beta[None, :, None, None]
        x = jnp.maximum(y, 0.0)
    return x


if __name__ == "__main__":
    key = jax.random.PRNGKey(0)
    kx, kp = jax.random.split(key)

    in_size, out_size = 4, 8
    x = jax.random.normal(kx, (2, in_size, 16, 16), jnp.float32)   # NCHW, like PyTorch
    params = init_params(kp, in_size, out_size, n=2, ks=3)

    # is_batchnorm=True path (module default in UNet usage)
    out_bn = jax.block_until_ready(unet_conv2_forward(x, params, use_bn=True))
    ref_bn = jax.block_until_ready(_ref_forward(x, params, use_bn=True))
    assert out_bn.shape == (2, out_size, 16, 16)
    # bf16 operands + bf16 inter-block activations -> compare at bf16-level tolerance.
    assert jnp.allclose(out_bn, ref_bn, atol=2e-2, rtol=2e-2)

    # is_batchnorm=False path
    out_nb = jax.block_until_ready(unet_conv2_forward(x, params, use_bn=False))
    ref_nb = jax.block_until_ready(_ref_forward(x, params, use_bn=False))
    assert out_nb.shape == (2, out_size, 16, 16)
    assert jnp.allclose(out_nb, ref_nb, atol=2e-2, rtol=2e-2)

    print("KERNEL_OK")
</pallas_src>

<mosaic_0001>
module attributes {stable_mosaic.version = 11 : i64} {
  func.func @_conv_stats_kernel(%arg0: i32, %arg1: i32, %arg2: memref<1x16x18x4xbf16, #tpu.memory_space<vmem>>, %arg3: memref<1x16x18x4xbf16, #tpu.memory_space<vmem>>, %arg4: memref<1x16x18x4xbf16, #tpu.memory_space<vmem>>, %arg5: memref<9x4x128xbf16, #tpu.memory_space<vmem>>, %arg6: memref<1x16x16x128xf32, #tpu.memory_space<vmem>>, %arg7: memref<1x1x2x128xf32, #tpu.memory_space<vmem>>) attributes {dimension_semantics = [#tpu.dimension_semantics<parallel>, #tpu.dimension_semantics<parallel>], iteration_bounds = array<i64: 2, 1>, scalar_prefetch = 0 : i64, scratch_operands = 0 : i64, tpu.core_type = #tpu.core_type<tc>, window_params = [{transform_indices = @transform_0, window_bounds = array<i64: 1, 16, 18, 4>}, {transform_indices = @transform_1, window_bounds = array<i64: 1, 16, 18, 4>}, {transform_indices = @transform_2, window_bounds = array<i64: 1, 16, 18, 4>}, {pipeline_mode = #tpu.pipeline_mode<synchronous>, transform_indices = @transform_3, window_bounds = array<i64: 9, 4, 128>}, {transform_indices = @transform_4, window_bounds = array<i64: 1, 16, 16, 128>}, {transform_indices = @transform_5, window_bounds = array<i64: 1, 1, 2, 128>}]} {
    %cst = arith.constant 0.000000e+00 : f32
    %0 = vector.broadcast %cst : f32 to vector<256x128xf32>
    %c0 = arith.constant 0 : index
    %c0_0 = arith.constant 0 : index
    %c0_1 = arith.constant 0 : index
    %c0_2 = arith.constant 0 : index
    %1 = vector.load %arg2[%c0, %c0_0, %c0_1, %c0_2] : memref<1x16x18x4xbf16, #tpu.memory_space<vmem>>, vector<1x16x18x4xbf16>
    %2 = vector.shape_cast %1 : vector<1x16x18x4xbf16> to vector<16x18x4xbf16>
    %c0_3 = arith.constant 0 : index
    %c0_4 = arith.constant 0 : index
    %c0_5 = arith.constant 0 : index
    %c0_6 = arith.constant 0 : index
    %3 = vector.load %arg3[%c0_3, %c0_4, %c0_5, %c0_6] : memref<1x16x18x4xbf16, #tpu.memory_space<vmem>>, vector<1x16x18x4xbf16>
    %4 = vector.shape_cast %3 : vector<1x16x18x4xbf16> to vector<16x18x4xbf16>
    %c0_7 = arith.constant 0 : index
    %c0_8 = arith.constant 0 : index
    %c0_9 = arith.constant 0 : index
    %c0_10 = arith.constant 0 : index
    %5 = vector.load %arg4[%c0_7, %c0_8, %c0_9, %c0_10] : memref<1x16x18x4xbf16, #tpu.memory_space<vmem>>, vector<1x16x18x4xbf16>
    %6 = vector.shape_cast %5 : vector<1x16x18x4xbf16> to vector<16x18x4xbf16>
    %7 = vector.extract_strided_slice %2 {offsets = [0, 0, 0], sizes = [16, 16, 4], strides = [1, 1, 1]} : vector<16x18x4xbf16> to vector<16x16x4xbf16>
    %8 = vector.shape_cast %7 : vector<16x16x4xbf16> to vector<256x4xbf16>
    %c0_11 = arith.constant 0 : index
    %c0_12 = arith.constant 0 : index
    %c0_13 = arith.constant 0 : index
    %9 = vector.load %arg5[%c0_11, %c0_12, %c0_13] : memref<9x4x128xbf16, #tpu.memory_space<vmem>>, vector<1x4x128xbf16>
    %10 = vector.shape_cast %9 : vector<1x4x128xbf16> to vector<4x128xbf16>
    %cst_14 = arith.constant dense<0.000000e+00> : vector<256x128xf32>
    %11 = tpu.matmul %8, %10, %cst_14 {dimension_numbers = #tpu.dot_dimension_numbers<[1], [0], [0], [1], [0, 0, 1, 1], [], []>} : vector<256x4xbf16>, vector<4x128xbf16>, vector<256x128xf32> -> vector<256x128xf32>
    %12 = arith.addf %0, %11 : vector<256x128xf32>
    %13 = vector.extract_strided_slice %2 {offsets = [0, 1, 0], sizes = [16, 16, 4], strides = [1, 1, 1]} : vector<16x18x4xbf16> to vector<16x16x4xbf16>
    %14 = vector.shape_cast %13 : vector<16x16x4xbf16> to vector<256x4xbf16>
    %c1 = arith.constant 1 : index
    %c0_15 = arith.constant 0 : index
    %c0_16 = arith.constant 0 : index
    %15 = vector.load %arg5[%c1, %c0_15, %c0_16] : memref<9x4x128xbf16, #tpu.memory_space<vmem>>, vector<1x4x128xbf16>
    %16 = vector.shape_cast %15 : vector<1x4x128xbf16> to vector<4x128xbf16>
    %cst_17 = arith.constant dense<0.000000e+00> : vector<256x128xf32>
    %17 = tpu.matmul %14, %16, %cst_17 {dimension_numbers = #tpu.dot_dimension_numbers<[1], [0], [0], [1], [0, 0, 1, 1], [], []>} : vector<256x4xbf16>, vector<4x128xbf16>, vector<256x128xf32> -> vector<256x128xf32>
    %18 = arith.addf %12, %17 : vector<256x128xf32>
    %19 = vector.extract_strided_slice %2 {offsets = [0, 2, 0], sizes = [16, 16, 4], strides = [1, 1, 1]} : vector<16x18x4xbf16> to vector<16x16x4xbf16>
    %20 = vector.shape_cast %19 : vector<16x16x4xbf16> to vector<256x4xbf16>
    %c2 = arith.constant 2 : index
    %c0_18 = arith.constant 0 : index
    %c0_19 = arith.constant 0 : index
    %21 = vector.load %arg5[%c2, %c0_18, %c0_19] : memref<9x4x128xbf16, #tpu.memory_space<vmem>>, vector<1x4x128xbf16>
    %22 = vector.shape_cast %21 : vector<1x4x128xbf16> to vector<4x128xbf16>
    %cst_20 = arith.constant dense<0.000000e+00> : vector<256x128xf32>
    %23 = tpu.matmul %20, %22, %cst_20 {dimension_numbers = #tpu.dot_dimension_numbers<[1], [0], [0], [1], [0, 0, 1, 1], [], []>} : vector<256x4xbf16>, vector<4x128xbf16>, vector<256x128xf32> -> vector<256x128xf32>
    %24 = arith.addf %18, %23 : vector<256x128xf32>
    %25 = vector.extract_strided_slice %4 {offsets = [0, 0, 0], sizes = [16, 16, 4], strides = [1, 1, 1]} : vector<16x18x4xbf16> to vector<16x16x4xbf16>
    %26 = vector.shape_cast %25 : vector<16x16x4xbf16> to vector<256x4xbf16>
    %c3 = arith.constant 3 : index
    %c0_21 = arith.constant 0 : index
    %c0_22 = arith.constant 0 : index
    %27 = vector.load %arg5[%c3, %c0_21, %c0_22] : memref<9x4x128xbf16, #tpu.memory_space<vmem>>, vector<1x4x128xbf16>
    %28 = vector.shape_cast %27 : vector<1x4x128xbf16> to vector<4x128xbf16>
    %cst_23 = arith.constant dense<0.000000e+00> : vector<256x128xf32>
    %29 = tpu.matmul %26, %28, %cst_23 {dimension_numbers = #tpu.dot_dimension_numbers<[1], [0], [0], [1], [0, 0, 1, 1], [], []>} : vector<256x4xbf16>, vector<4x128xbf16>, vector<256x128xf32> -> vector<256x128xf32>
    %30 = arith.addf %24, %29 : vector<256x128xf32>
    %31 = vector.extract_strided_slice %4 {offsets = [0, 1, 0], sizes = [16, 16, 4], strides = [1, 1, 1]} : vector<16x18x4xbf16> to vector<16x16x4xbf16>
    %32 = vector.shape_cast %31 : vector<16x16x4xbf16> to vector<256x4xbf16>
    %c4 = arith.constant 4 : index
    %c0_24 = arith.constant 0 : index
    %c0_25 = arith.constant 0 : index
    %33 = vector.load %arg5[%c4, %c0_24, %c0_25] : memref<9x4x128xbf16, #tpu.memory_space<vmem>>, vector<1x4x128xbf16>
    %34 = vector.shape_cast %33 : vector<1x4x128xbf16> to vector<4x128xbf16>
    %cst_26 = arith.constant dense<0.000000e+00> : vector<256x128xf32>
    %35 = tpu.matmul %32, %34, %cst_26 {dimension_numbers = #tpu.dot_dimension_numbers<[1], [0], [0], [1], [0, 0, 1, 1], [], []>} : vector<256x4xbf16>, vector<4x128xbf16>, vector<256x128xf32> -> vector<256x128xf32>
    %36 = arith.addf %30, %35 : vector<256x128xf32>
    %37 = vector.extract_strided_slice %4 {offsets = [0, 2, 0], sizes = [16, 16, 4], strides = [1, 1, 1]} : vector<16x18x4xbf16> to vector<16x16x4xbf16>
    %38 = vector.shape_cast %37 : vector<16x16x4xbf16> to vector<256x4xbf16>
    %c5 = arith.constant 5 : index
    %c0_27 = arith.constant 0 : index
    %c0_28 = arith.constant 0 : index
    %39 = vector.load %arg5[%c5, %c0_27, %c0_28] : memref<9x4x128xbf16, #tpu.memory_space<vmem>>, vector<1x4x128xbf16>
    %40 = vector.shape_cast %39 : vector<1x4x128xbf16> to vector<4x128xbf16>
    %cst_29 = arith.constant dense<0.000000e+00> : vector<256x128xf32>
    %41 = tpu.matmul %38, %40, %cst_29 {dimension_numbers = #tpu.dot_dimension_numbers<[1], [0], [0], [1], [0, 0, 1, 1], [], []>} : vector<256x4xbf16>, vector<4x128xbf16>, vector<256x128xf32> -> vector<256x128xf32>
    %42 = arith.addf %36, %41 : vector<256x128xf32>
    %43 = vector.extract_strided_slice %6 {offsets = [0, 0, 0], sizes = [16, 16, 4], strides = [1, 1, 1]} : vector<16x18x4xbf16> to vector<16x16x4xbf16>
    %44 = vector.shape_cast %43 : vector<16x16x4xbf16> to vector<256x4xbf16>
    %c6 = arith.constant 6 : index
    %c0_30 = arith.constant 0 : index
    %c0_31 = arith.constant 0 : index
    %45 = vector.load %arg5[%c6, %c0_30, %c0_31] : memref<9x4x128xbf16, #tpu.memory_space<vmem>>, vector<1x4x128xbf16>
    %46 = vector.shape_cast %45 : vector<1x4x128xbf16> to vector<4x128xbf16>
    %cst_32 = arith.constant dense<0.000000e+00> : vector<256x128xf32>
    %47 = tpu.matmul %44, %46, %cst_32 {dimension_numbers = #tpu.dot_dimension_numbers<[1], [0], [0], [1], [0, 0, 1, 1], [], []>} : vector<256x4xbf16>, vector<4x128xbf16>, vector<256x128xf32> -> vector<256x128xf32>
    %48 = arith.addf %42, %47 : vector<256x128xf32>
    %49 = vector.extract_strided_slice %6 {offsets = [0, 1, 0], sizes = [16, 16, 4], strides = [1, 1, 1]} : vector<16x18x4xbf16> to vector<16x16x4xbf16>
    %50 = vector.shape_cast %49 : vector<16x16x4xbf16> to vector<256x4xbf16>
    %c7 = arith.constant 7 : index
    %c0_33 = arith.constant 0 : index
    %c0_34 = arith.constant 0 : index
    %51 = vector.load %arg5[%c7, %c0_33, %c0_34] : memref<9x4x128xbf16, #tpu.memory_space<vmem>>, vector<1x4x128xbf16>
    %52 = vector.shape_cast %51 : vector<1x4x128xbf16> to vector<4x128xbf16>
    %cst_35 = arith.constant dense<0.000000e+00> : vector<256x128xf32>
    %53 = tpu.matmul %50, %52, %cst_35 {dimension_numbers = #tpu.dot_dimension_numbers<[1], [0], [0], [1], [0, 0, 1, 1], [], []>} : vector<256x4xbf16>, vector<4x128xbf16>, vector<256x128xf32> -> vector<256x128xf32>
    %54 = arith.addf %48, %53 : vector<256x128xf32>
    %55 = vector.extract_strided_slice %6 {offsets = [0, 2, 0], sizes = [16, 16, 4], strides = [1, 1, 1]} : vector<16x18x4xbf16> to vector<16x16x4xbf16>
    %56 = vector.shape_cast %55 : vector<16x16x4xbf16> to vector<256x4xbf16>
    %c8 = arith.constant 8 : index
    %c0_36 = arith.constant 0 : index
    %c0_37 = arith.constant 0 : index
    %57 = vector.load %arg5[%c8, %c0_36, %c0_37] : memref<9x4x128xbf16, #tpu.memory_space<vmem>>, vector<1x4x128xbf16>
    %58 = vector.shape_cast %57 : vector<1x4x128xbf16> to vector<4x128xbf16>
    %cst_38 = arith.constant dense<0.000000e+00> : vector<256x128xf32>
    %59 = tpu.matmul %56, %58, %cst_38 {dimension_numbers = #tpu.dot_dimension_numbers<[1], [0], [0], [1], [0, 0, 1, 1], [], []>} : vector<256x4xbf16>, vector<4x128xbf16>, vector<256x128xf32> -> vector<256x128xf32>
    %60 = arith.addf %54, %59 : vector<256x128xf32>
    %61 = vector.shape_cast %60 : vector<256x128xf32> to vector<16x16x128xf32>
    %c0_39 = arith.constant 0 : index
    %c0_40 = arith.constant 0 : index
    %c0_41 = arith.constant 0 : index
    %c0_42 = arith.constant 0 : index
    %62 = vector.load %arg6[%c0_39, %c0_40, %c0_41, %c0_42] : memref<1x16x16x128xf32, #tpu.memory_space<vmem>>, vector<1x16x16x128xf32>
    %63 = vector.shape_cast %62 : vector<1x16x16x128xf32> to vector<16x16x128xf32>
    %64 = vector.shape_cast %61 : vector<16x16x128xf32> to vector<1x16x16x128xf32>
    tpu.vector_store %arg6[%c0_39, %c0_40, %c0_41, %c0_42], %64 {strides = array<i32>} : memref<1x16x16x128xf32, #tpu.memory_space<vmem>>, vector<1x16x16x128xf32>,
    %cst_43 = arith.constant dense<0.000000e+00> : vector<128xf32>
    %65 = vector.multi_reduction <add>, %60, %cst_43 [0] : vector<256x128xf32> to vector<128xf32>
    %66 = vector.shape_cast %65 : vector<128xf32> to vector<1x128xf32>
    %c0_44 = arith.constant 0 : index
    %c0_45 = arith.constant 0 : index
    %c0_46 = arith.constant 0 : index
    %c0_47 = arith.constant 0 : index
    %67 = vector.load %arg7[%c0_44, %c0_45, %c0_46, %c0_47] : memref<1x1x2x128xf32, #tpu.memory_space<vmem>>, vector<1x1x1x128xf32>
    %68 = vector.shape_cast %67 : vector<1x1x1x128xf32> to vector<1x128xf32>
    %69 = vector.shape_cast %66 : vector<1x128xf32> to vector<1x1x1x128xf32>
    tpu.vector_store %arg7[%c0_44, %c0_45, %c0_46, %c0_47], %69 {strides = array<i32>} : memref<1x1x2x128xf32, #tpu.memory_space<vmem>>, vector<1x1x1x128xf32>,
    %70 = arith.mulf %60, %60 : vector<256x128xf32>
    %cst_48 = arith.constant dense<0.000000e+00> : vector<128xf32>
    %71 = vector.multi_reduction <add>, %70, %cst_48 [0] : vector<256x128xf32> to vector<128xf32>
    %72 = vector.shape_cast %71 : vector<128xf32> to vector<1x128xf32>
    %c0_49 = arith.constant 0 : index
    %c0_50 = arith.constant 0 : index
    %c1_51 = arith.constant 1 : index
    %c0_52 = arith.constant 0 : index
    %73 = vector.load %arg7[%c0_49, %c0_50, %c1_51, %c0_52] : memref<1x1x2x128xf32, #tpu.memory_space<vmem>>, vector<1x1x1x128xf32>
    %74 = vector.shape_cast %73 : vector<1x1x1x128xf32> to vector<1x128xf32>
    %75 = vector.shape_cast %72 : vector<1x128xf32> to vector<1x1x1x128xf32>
    tpu.vector_store %arg7[%c0_49, %c0_50, %c1_51, %c0_52], %75 {strides = array<i32>} : memref<1x1x2x128xf32, #tpu.memory_space<vmem>>, vector<1x1x1x128xf32>,
    return
  }
  func.func @transform_0(%arg0: i32, %arg1: i32) -> (i32, i32, i32, i32) {
    %c0_i32 = arith.constant 0 : i32
    %c0_i32_0 = arith.constant 0 : i32
    %c0_i32_1 = arith.constant 0 : i32
    return %arg0, %arg1, %c0_i32, %c0_i32_0 : i32, i32, i32, i32
  }
  func.func @transform_1(%arg0: i32, %arg1: i32) -> (i32, i32, i32, i32) {
    %c0_i32 = arith.constant 0 : i32
    %c0_i32_0 = arith.constant 0 : i32
    %c0_i32_1 = arith.constant 0 : i32
    return %arg0, %arg1, %c0_i32, %c0_i32_0 : i32, i32, i32, i32
  }
  func.func @transform_2(%arg0: i32, %arg1: i32) -> (i32, i32, i32, i32) {
    %c0_i32 = arith.constant 0 : i32
    %c0_i32_0 = arith.constant 0 : i32
    %c0_i32_1 = arith.constant 0 : i32
    return %arg0, %arg1, %c0_i32, %c0_i32_0 : i32, i32, i32, i32
  }
  func.func @transform_3(%arg0: i32, %arg1: i32) -> (i32, i32, i32) {
    %c0_i32 = arith.constant 0 : i32
    %c0_i32_0 = arith.constant 0 : i32
    %c0_i32_1 = arith.constant 0 : i32
    %c0_i32_2 = arith.constant 0 : i32
    return %c0_i32, %c0_i32_0, %c0_i32_1 : i32, i32, i32
  }
  func.func @transform_4(%arg0: i32, %arg1: i32) -> (i32, i32, i32, i32) {
    %c0_i32 = arith.constant 0 : i32
    %c0_i32_0 = arith.constant 0 : i32
    %c0_i32_1 = arith.constant 0 : i32
    return %arg0, %arg1, %c0_i32, %c0_i32_0 : i32, i32, i32, i32
  }
  func.func @transform_5(%arg0: i32, %arg1: i32) -> (i32, i32, i32, i32) {
    %c0_i32 = arith.constant 0 : i32
    %c0_i32_0 = arith.constant 0 : i32
    %c0_i32_1 = arith.constant 0 : i32
    return %arg0, %arg1, %c0_i32, %c0_i32_0 : i32, i32, i32, i32
  }
}

</mosaic_0001>

<bundles_post_ra>
// kernel: tpu_custom_call.1
= control target key start
LH: loop header
LB: loop body
LE: loop exit
PB: predicated region body
PF: predicated region fallthrough
CT: control target
= control target key end

     0   :  { %11 = vsyncpa [#allocation3], 0  ;;  %s8671_s0 = inlined_call_operand.vmem [shape: bf16[2,16,18,4], index: 0, kind: input, shape index: {}]   ;;  %s8672_s1 = inlined_call_operand.vmem [shape: bf16[2,16,18,4], index: 1, kind: input, shape index: {}]   ;;  %s8673_s2 = inlined_call_operand.vmem [shape: bf16[2,16,18,4], index: 2, kind: input, shape index: {}]   ;;  %s8674_s3 = inlined_call_operand.vmem [shape: bf16[9,4,128], index: 3, kind: input, shape index: {}]   ;;  %s8675_s4 = inlined_call_operand.hbm [shape: f32[2,16,16,128], index: 4, kind: output, shape index: {0}]   ;;  %s8676_s5 = inlined_call_operand.hbm [shape: f32[2,1,2,128], index: 5, kind: output, shape index: {1}]  }
   0x1   :  { %13 = vsyncpa [#allocation3 + $0x1], 0 }
   0x2   :  { %14 = vsyncpa [#allocation5], 0 }
   0x3   :  { %16 = vsyncpa [#allocation5 + $0x1], 0  ;;  %s6505_s18 = smov 0   ;;  %s6507_s19 = smov 0  }
   0x4   :  { %s6509_s20 = smov 0   ;;  %s6511_s21 = smov 0  }
   0x5   :  { %s6513_s22 = smov 0   ;;  %s6515_s23 = smov 0  }
   0x6 LB: > { %s5047_s24 = sadd.s32 4294967295, %s6469_s23   ;;  %s5048_s25 = sadd.s32 4294967294, %s6469_s23   ;;  %s6469_s23 = sphi %s6515_s23, %s22_s23   ;;  %s6465_s22 = sphi %s6513_s22, %s8795_s22   ;;  %s6461_s21 = sphi %s6511_s21, %s8794_s21   ;;  %s6457_s20 = sphi %s6509_s20, %s8793_s20   ;;  %s6453_s19 = sphi %s6507_s19, %s8792_s19   ;;  %s6449_s18 = sphi %s6505_s18, %s8791_s18  }
   0x7   : > { %s34_s26 = sadd.s32 1, %s6465_s22  ;;  %s148_s27 = sadd.s32 1, %s6457_s20 }
   0x8   : > { %p36_p0 = scmp.ge.s32.totalorder %s34_s26, 2  ;;  %p158_p1 = scmp.ne.s32.totalorder %s6457_s20, %s6453_s19 }
   0x9   : > { %p159_p2 = scmp.eq.s32.totalorder %s5047_s24, 1  ;;  %p164_p3 = scmp.ne.s32.totalorder %s6453_s19, %s6449_s18 }
   0xa   : > { %s8797_s26 = smov (%p36_p0, %s34_s26), 0  ;;  %p165_p5 = scmp.eq.s32.totalorder %s5048_s25, 1 }
   0xb   : > { %p6545_p4 = por %p159_p2, %p158_p1  ;;  %s143_s29 = ssub.s32 %s6465_s22, %s8797_s26 }
   0xc   : > { %p5051_p6 = scmp.ge.s32.totalorder %s6469_s23, 1  ;;  %p146_p7 = scmp.eq.s32.totalorder %s143_s29, 0 }
   0xd   : > { %p6552_p8 = por %p165_p5, %p164_p3  ;;  %p256_p9 = scmp.lt.s32.totalorder %s6469_s23, 3 }
   0xe   : > { %s6558_s6 = scalar_select %p146_p7, %s6457_s20, %s148_s27  }
   0xf   : > { %p257_p10 = pnand %p5051_p6, %p256_p9 }
  0x11   : > { %260 = sbr.rel (%p257_p10) target bundleno = 643 (0x283), region = 36 }
  0x18   : > { %v5057_v0 = vld [vmem:[%s8674_s3 + $0x2] sm:$0x3]  ;;  %vm980_vm0 = vcmask 1041408   ;;  %v5204_v1 = vld [vmem:[%s8674_s3 + $0x8] sm:$0x3]  ;;  %p315_p11 = scmp.lt.s32.totalorder %s6461_s21, 1 }
  0x19   : > { %6126 = vmatprep.subr.msk.bf16.mxu1 %vm980_vm0, %v5057_v0  ;;  %6130 = vmatprep.subr.msk.bf16.mxu0 %vm980_vm0, %v5204_v1  ;;  %v982_v2 = vsel %vm980_vm0, %v5057_v0, 0  ;;  %v6571_v3 = vsel %vm980_vm0, %v5204_v1, 0  ;;  %v493_v4 = vld [vmem:[%s8674_s3] sm:$0x3]  ;;  %v5253_v5 = vld [vmem:[%s8674_s3 + $0xa] sm:$0x3] }
  0x1a   : > { %8701 = vst [vmem:[#allocation8_spill] sm:$0xff] %v6571_v3  ;;  %5563 = vmatpush3.bf16.msra.mxu1 %v982_v2  ;;  %5699 = vmatpush3.bf16.msra.mxu0 %v6571_v3  ;;  %s316_s11 = scalar_select %p315_p11, %s6461_s21, 1  ;;  %vm494_vm1 = vsmask.f32 3328  ;;  %vm495_vm2 = vsmask.f32 7440 }
  0x1b   : > { %6127 = vmatprep.subr.msk.bf16.mxu1 %vm980_vm0, %v493_v4  ;;  %6132 = vmatprep.subr.msk.bf16.mxu0 %vm980_vm0, %v5253_v5  ;;  %vm931_vm3 = vcmask 31744   ;;  %v6610_v17 = vsel %vm980_vm0, %v493_v4, 0  ;;  %vm6621_vm4 = vmor %vm494_vm1, %vm495_vm2  ;;  %v6626_v36 = vsel %vm980_vm0, %v5253_v5, 0  ;;  %v6636_v50 = vld [vmem:[%s8674_s3 + $0xc] sm:$0x3]  ;;  %vm1453_vm5 = vcmask 1042432  }
  0x1c   : > { %s6583_s16 = smul.u32 192, %s316_s11  ;;  %v6653_v1 = vsel %vm980_vm0, %v6636_v50, 0  ;;  %vm1454_vm6 = vcmask 1046532   ;;  %s5408_s13 = sshll.u32 %s6461_s21, 12 }
  0x1d   : > { %vm6887_vm7 = vmor %vm1453_vm5, %vm1454_vm6  ;;  %s8587_s24 = scalar_lea.hbm %s8675_s4, %s5408_s13 }
  0x1e   : > { %s6589_s25 = scalar_lea.vmem %s8671_s0, %s6583_s16  ;;  %s6595_s7 = scalar_lea.vmem %s8672_s1, %s6583_s16 }
  0x1f   : > { %v349_v6 = vld [vmem:[%s6589_s25] sm:$0xf]  ;;  %v350_v7 = vld [vmem:[%s6589_s25 + $0x4] sm:$0xf]  ;;  %v351_v8 = vld [vmem:[%s6589_s25 + $0x8] sm:$0x1]  ;;  %s7212_s8 = scalar_lea.vmem %s8673_s2, %s6583_s16 }
  0x20   : > { %v498_v9 = vshrl.u32 %v349_v6, 16  ;;  %v501_v10 = vshll.u32 %v349_v6, 16  ;;  %v507_v11 = vshll.u32 %v350_v7, 16  ;;  %v511_v12 = vshrl.u32 %v350_v7, 16  ;;  %v6601_v13 = vld [vmem:[%s6595_s7] sm:$0xf] }
  0x21   : > { %v517_v14 = vshll.u32 %v351_v8, 16  ;;  %v6604_v15 = vld [vmem:[%s6595_s7 + $0x4] sm:$0xf]  ;;  %v6607_v16 = vld [vmem:[%s6595_s7 + $0x8] sm:$0x1]  ;;  %v2189_v23 = vshrl.u32 %v6601_v13, 16 }
  0x22   : > { %v500_v18 = vrot.slane %v498_v9, 4  ;;  %v503_v19 = vrot.slane %v501_v10, 5  ;;  %v509_v20 = vrot.slane %v507_v11, 5  ;;  %v513_v21 = vrot.slane %v511_v12, 4  ;;  %v352_v30 = vld [vmem:[%s6589_s25 + $0xc] sm:$0xf] }
  0x23   : > { %v519_v22 = vrot.slane %v517_v14, 5  ;;  %v2192_v24 = vshll.u32 %v6601_v13, 16  ;;  %v2198_v25 = vshll.u32 %v6604_v15, 16  ;;  %v2202_v28 = vshrl.u32 %v6604_v15, 16  ;;  %v353_v31 = vld [vmem:[%s6589_s25 + $0x10] sm:$0xf] }
  0x24   : > { %v504_v26 = vor.u32 %v503_v19, %v500_v18  ;;  %v514_v27 = vor.u32 %v513_v21, %v509_v20  ;;  %v2208_v29 = vshll.u32 %v6607_v16, 16  ;;  %v2191_v33 = vrot.slane %v2189_v23, 4  ;;  %v354_v42 = vld [vmem:[%s6589_s25 + $0x14] sm:$0x1]  ;;  %v6639_v55 = vld [vmem:[%s6595_s7 + $0xc] sm:$0xf] }
  0x25   : > { %v2194_v34 = vrot.slane %v2192_v24, 5  ;;  %v2200_v35 = vrot.slane %v2198_v25, 5  ;;  %v2204_v39 = vrot.slane %v2202_v28, 4  ;;  %v522_v43 = vshrl.u32 %v352_v30, 16  ;;  %v6642_v60 = vld [vmem:[%s6595_s7 + $0x10] sm:$0xf] }
  0x26   : > { %v505_v37 = vrot.slane %v504_v26, 4  ;;  %v515_v38 = vrot.slane %v514_v27, 4  ;;  %v2210_v40 = vrot.slane %v2208_v29, 5  ;;  %v525_v44 = vshll.u32 %v352_v30, 16  ;;  %v6649_v0 = vld [vmem:[%s6595_s7 + $0x14] sm:$0x1] }
  0x27   : > { %v2195_v41 = vor.u32 %v2194_v34, %v2191_v33  ;;  %v531_v45 = vshll.u32 %v353_v31, 16  ;;  %v2205_v48 = vor.u32 %v2204_v39, %v2200_v35  ;;  %v535_v49 = vshrl.u32 %v353_v31, 16  ;;  %v355_v11 = vld [vmem:[%s6589_s25 + $0x18] sm:$0xf]  ;;  %v357_v25 = vld [vmem:[%s6589_s25 + $0x20] sm:$0x1] }
  0x28   : > { %v510_v46 = vsel %vm6621_vm4, %v505_v37, %v509_v20  ;;  %v520_v47 = vsel %vm6621_vm4, %v515_v38, %v519_v22  ;;  %v524_v53 = vrot.slane %v522_v43, 4  ;;  %v527_v54 = vrot.slane %v525_v44, 5  ;;  %v356_v20 = vld [vmem:[%s6589_s25 + $0x1c] sm:$0xf]  ;;  %v6673_v30 = vld [vmem:[%s6595_s7 + $0x18] sm:$0xf] }
  0x29   : > { %v5058_v51 = vcombine.low %v510_v46, %v520_v47  ;;  %v2196_v52 = vrot.slane %v2195_v41, 4  ;;  %v2206_v56 = vrot.slane %v2205_v48, 4  ;;  %v533_v57 = vrot.slane %v531_v45, 5  ;;  %v5138_v41 = vld [vmem:[%s8674_s3 + $0x4] sm:$0x3] }
  0x2a   : > { %v537_v58 = vrot.slane %v535_v49, 4  ;;  %v541_v59 = vshll.u32 %v354_v42, 16  ;;  %v2887_v62 = vrot.slane %v6607_v16, 5  ;;  %v528_v63 = vor.u32 %v527_v54, %v524_v53  ;;  %v6680_v45 = vld [vmem:[%s6595_s7 + $0x1c] sm:$0xf] }
  0x2b   : > { %5564 = vmatprep.mubr.msk.bf16.mxu1 %vm931_vm3, %v5058_v51  ;;  %v2201_v61 = vsel %vm6621_vm4, %v2196_v52, %v2200_v35  ;;  %v2211_v2 = vsel %vm6621_vm4, %v2206_v56, %v2210_v40  ;;  %v2213_v6 = vshrl.u32 %v6639_v55, 16  ;;  %v2216_v9 = vshll.u32 %v6639_v55, 16  ;;  %v6685_v52 = vld [vmem:[%s6595_s7 + $0x20] sm:$0x1] }
  0x2c   : > { %v538_v4 = vor.u32 %v537_v58, %v533_v57  ;;  %v543_v5 = vrot.slane %v541_v59, 5  ;;  %v5205_v7 = vcombine.low %v2201_v61, %v2211_v2  ;;  %v529_v8 = vrot.slane %v528_v63, 4  ;;  %v358_v58 = vld [vmem:[%s6589_s25 + $0x24] sm:$0xf]  ;;  %v7475_v3 = vld [vmem:[%s7212_s8 + $0xa0] sm:$0xf] }
  0x2d   : > { %v2222_v10 = vshll.u32 %v6642_v60, 16  ;;  %v2215_v14 = vrot.slane %v2213_v6, 4  ;;  %v2226_v18 = vshrl.u32 %v6642_v60, 16  ;;  %v2232_v19 = vshll.u32 %v6649_v0, 16 }
  0x2e   : > { %v539_v12 = vrot.slane %v538_v4, 4  ;;  %5700 = vmatprep.mubr.msk.bf16.mxu0 %vm931_vm3, %v5205_v7  ;;  %v534_v21 = vsel %vm6621_vm4, %v529_v8, %v533_v57  ;;  %v2218_v22 = vrot.slane %v2216_v9, 5  ;;  %v2891_v24 = vrot.slane %v6642_v60, 5  ;;  %v359_v7 = vld [vmem:[%s6589_s25 + $0x28] sm:$0xf] }
  0x2f   : > { %v2224_v23 = vrot.slane %v2222_v10, 5  ;;  %v2228_v27 = vrot.slane %v2226_v18, 4  ;;  %v2234_v28 = vrot.slane %v2232_v19, 5  ;;  %v2894_v29 = vrot.slane %v6649_v0, 5  ;;  %v360_v19 = vld [vmem:[%s6589_s25 + $0x2c] sm:$0x1] }
  0x30   : > { %v544_v26 = vsel %vm6621_vm4, %v539_v12, %v543_v5  ;;  %v2219_v33 = vor.u32 %v2218_v22, %v2215_v14  ;;  %v546_v34 = vshrl.u32 %v355_v11, 16  ;;  %v549_v35 = vshll.u32 %v355_v11, 16 }
  0x31   : > { %v5059_v31 = vcombine.low %v534_v21, %v544_v26  ;;  %v2229_v37 = vor.u32 %v2228_v27, %v2224_v23  ;;  %v555_v38 = vshll.u32 %v356_v20, 16  ;;  %v559_v39 = vshrl.u32 %v356_v20, 16  ;;  %v6703_v21 = vld [vmem:[%s6595_s7 + $0x24] sm:$0xf] }
  0x32   : > { %v565_v40 = vshll.u32 %v357_v25, 16  ;;  %v2220_v42 = vrot.slane %v2219_v33, 4  ;;  %v548_v43 = vrot.slane %v546_v34, 4  ;;  %v551_v44 = vrot.slane %v549_v35, 5  ;;  %v6709_v34 = vld [vmem:[%s6595_s7 + $0x28] sm:$0xf] }
  0x33   : > { %5565 = vmatmul.mubr.msk.bf16.vlgmr.msra.gmra.mrb[0].mxu1 %vm931_vm3, %v5059_v31  ;;  %v2237_v46 = vshrl.u32 %v6673_v30, 16  ;;  %v2230_v47 = vrot.slane %v2229_v37, 4  ;;  %v557_v48 = vrot.slane %v555_v38, 5  ;;  %v561_v49 = vrot.slane %v559_v39, 4 }
  0x34   : > { %5597 = vmatpush3.bf16.msra.mxu1 %v6610_v17  ;;  %v567_v51 = vrot.slane %v565_v40, 5  ;;  %v2225_v53 = vsel %vm6621_vm4, %v2220_v42, %v2224_v23  ;;  %v552_v54 = vor.u32 %v551_v44, %v548_v43  ;;  %v2240_v57 = vshll.u32 %v6673_v30, 16  ;;  %v6718_v42 = vld [vmem:[%s6595_s7 + $0x2c] sm:$0x1]  ;;  %v6722_v44 = vld [vmem:[%s6589_s25 + $0x30] sm:$0xf] }
  0x35   : > { %v2239_v56 = vrot.slane %v2237_v46, 4  ;;  %6128 = vmatprep.subr.msk.bf16.mxu1 %vm980_vm0, %v5138_v41  ;;  %v2235_v17 = vsel %vm6621_vm4, %v2230_v47, %v2234_v28  ;;  %v562_v59 = vor.u32 %v561_v49, %v557_v48  ;;  %v2246_v61 = vshll.u32 %v6680_v45, 16 }
  0x36   : > { %v2250_v63 = vshrl.u32 %v6680_v45, 16  ;;  %v5206_v2 = vcombine.low %v2225_v53, %v2235_v17  ;;  %v553_v4 = vrot.slane %v552_v54, 4  ;;  %v2242_v5 = vrot.slane %v2240_v57, 5 }
  0x37   : > { %v2256_v6 = vshll.u32 %v6685_v52, 16  ;;  %v563_v8 = vrot.slane %v562_v59, 4  ;;  %v2248_v9 = vrot.slane %v2246_v61, 5  ;;  %v570_v11 = vshrl.u32 %v358_v58, 16 }
  0x38   : > { %v2252_v10 = vrot.slane %v2250_v63, 4  ;;  %5701 = vmatmul.mubr.msk.bf16.vlgmr.msra.gmra.mrb[0].mxu0 %vm931_vm3, %v5206_v2  ;;  %v558_v12 = vsel %vm6621_vm4, %v553_v4, %v557_v48  ;;  %v2243_v14 = vor.u32 %v2242_v5, %v2239_v56  ;;  %v573_v20 = vshll.u32 %v358_v58, 16  ;;  %v6728_v56 = vld [vmem:[%s6589_s25 + $0x34] sm:$0xf]  ;;  %v363_v4 = vld [vmem:[%s6589_s25 + $0x38] sm:$0x1] }
  0x39   : > { %v2258_v18 = vrot.slane %v2256_v6, 5  ;;  %5733 = vmatpush3.bf16.msra.mxu0 %v6626_v36  ;;  %v568_v22 = vsel %vm6621_vm4, %v563_v8, %v567_v51  ;;  %v572_v25 = vrot.slane %v570_v11, 4  ;;  %v579_v26 = vshll.u32 %v359_v7, 16 }
  0x3a   : > { %v2253_v23 = vor.u32 %v2252_v10, %v2248_v9  ;;  %v5060_v27 = vcombine.low %v558_v12, %v568_v22  ;;  %v2244_v28 = vrot.slane %v2243_v14, 4  ;;  %v575_v31 = vrot.slane %v573_v20, 5  ;;  %6133 = vmatprep.subr.msk.bf16.mxu0 %vm980_vm0, %v6636_v50  ;;  %v6740_v10 = vld [vmem:[%s6595_s7 + $0x30] sm:$0xf] }
  0x3b   : > { %v583_v33 = vshrl.u32 %v359_v7, 16  ;;  %v581_v37 = vrot.slane %v579_v26, 5  ;;  %v589_v36 = vshll.u32 %v360_v19, 16  ;;  %v2261_v38 = vshrl.u32 %v6703_v21, 16  ;;  %v6746_v19 = vld [vmem:[%s6595_s7 + $0x34] sm:$0xf] }
  0x3c   : > { %v2254_v35 = vrot.slane %v2253_v23, 4  ;;  %5568 = vmatprep.mubr.msk.bf16.mxu1 %vm931_vm3, %v5060_v27  ;;  %v2249_v39 = vsel %vm6621_vm4, %v2244_v28, %v2248_v9  ;;  %v576_v40 = vor.u32 %v575_v31, %v572_v25  ;;  %v2264_v43 = vshll.u32 %v6703_v21, 16  ;;  %v6751_v31 = vld [vmem:[%s6595_s7 + $0x38] sm:$0x1] }
  0x3d   : > { %v585_v41 = vrot.slane %v583_v33, 4  ;;  %v591_v46 = vrot.slane %v589_v36, 5  ;;  %v2263_v47 = vrot.slane %v2261_v38, 4  ;;  %v2270_v48 = vshll.u32 %v6709_v34, 16 }
  0x3e   : > { %v2259_v50 = vsel %vm6621_vm4, %v2254_v35, %v2258_v18  ;;  %v577_v51 = vrot.slane %v576_v40, 4  ;;  %v2266_v54 = vrot.slane %v2264_v43, 5  ;;  %v2274_v58 = vshrl.u32 %v6709_v34, 16 }
  0x3f   : > { %v5207_v49 = vcombine.low %v2249_v39, %v2259_v50  ;;  %v586_v53 = vor.u32 %v585_v41, %v581_v37  ;;  %v2272_v57 = vrot.slane %v2270_v48, 5  ;;  %v2280_v17 = vshll.u32 %v6718_v42, 16  ;;  %v6759_v50 = vld [vmem:[%s6589_s25 + $0x3c] sm:$0xf] }
  0x40   : > { %v594_v59 = vshrl.u32 %v6722_v44, 16  ;;  %v582_v61 = vsel %vm6621_vm4, %v577_v51, %v581_v37  ;;  %v2267_v2 = vor.u32 %v2266_v54, %v2263_v47  ;;  %v597_v5 = vshll.u32 %v6722_v44, 16  ;;  %v6765_v51 = vld [vmem:[%s6589_s25 + $0x40] sm:$0xf] }
  0x41   : > { %5704 = vmatprep.mubr.msk.bf16.mxu0 %vm931_vm3, %v5207_v49  ;;  %v587_v63 = vrot.slane %v586_v53, 4  ;;  %v2276_v6 = vrot.slane %v2274_v58, 4  ;;  %v2282_v7 = vrot.slane %v2280_v17, 5  ;;  %v603_v9 = vshll.u32 %v6728_v56, 16 }
  0x42   : > { %v596_v8 = vrot.slane %v594_v59, 4  ;;  %v2268_v12 = vrot.slane %v2267_v2, 4  ;;  %v599_v14 = vrot.slane %v597_v5, 5  ;;  %v607_v18 = vshrl.u32 %v6728_v56, 16 }
  0x43   : > { %v592_v11 = vsel %vm6621_vm4, %v587_v63, %v591_v46  ;;  %v2277_v22 = vor.u32 %v2276_v6, %v2272_v57  ;;  %v605_v23 = vrot.slane %v603_v9, 5  ;;  %v613_v25 = vshll.u32 %v363_v4, 16 }
  0x44   : > { %v5061_v20 = vcombine.low %v582_v61, %v592_v11  ;;  %v2273_v26 = vsel %vm6621_vm4, %v2268_v12, %v2272_v57  ;;  %v600_v27 = vor.u32 %v599_v14, %v596_v8  ;;  %v609_v28 = vrot.slane %v607_v18, 4  ;;  %v366_v61 = vld [vmem:[%s6589_s25 + $0x44] sm:$0x1]  ;;  %v6778_v8 = vld [vmem:[%s6595_s7 + $0x3c] sm:$0xf] }
  0x45   : > { %v2285_v33 = vshrl.u32 %v6740_v10, 16  ;;  %v2278_v35 = vrot.slane %v2277_v22, 4  ;;  %v615_v37 = vrot.slane %v613_v25, 5  ;;  %v2288_v36 = vshll.u32 %v6740_v10, 16  ;;  %v6781_v18 = vld [vmem:[%s6595_s7 + $0x40] sm:$0xf] }
  0x46   : > { %5569 = vmatmul.mubr.msk.bf16.gmra.mrb[4].mxu1 %vm931_vm3, %v5061_v20  ;;  %v2294_v38 = vshll.u32 %v6746_v19, 16  ;;  %v601_v39 = vrot.slane %v600_v27, 4  ;;  %v610_v40 = vor.u32 %v609_v28, %v605_v23  ;;  %v2298_v43 = vshrl.u32 %v6746_v19, 16  ;;  %v6787_v28 = vld [vmem:[%s6595_s7 + $0x44] sm:$0x1] }
  0x47   : > { %v2287_v41 = vrot.slane %v2285_v33, 4  ;;  %v2283_v46 = vsel %vm6621_vm4, %v2278_v35, %v2282_v7  ;;  %v2290_v47 = vrot.slane %v2288_v36, 5  ;;  %v2304_v49 = vshll.u32 %v6751_v31, 16 }
  0x48   : > { %v2296_v48 = vrot.slane %v2294_v38, 5  ;;  %v5208_v53 = vcombine.low %v2273_v26, %v2283_v46  ;;  %v606_v54 = vsel %vm6621_vm4, %v601_v39, %v605_v23  ;;  %v611_v57 = vrot.slane %v610_v40, 4  ;;  %v6795_v40 = vld [vmem:[%s6589_s25 + $0x48] sm:$0xf] }
  0x49   : > { %v2300_v58 = vrot.slane %v2298_v43, 4  ;;  %v2291_v17 = vor.u32 %v2290_v47, %v2287_v41  ;;  %v2306_v59 = vrot.slane %v2304_v49, 5  ;;  %v618_v63 = vshrl.u32 %v6759_v50, 16 }
  0x4a   : > { %v621_v2 = vshll.u32 %v6759_v50, 16  ;;  %5705 = vmatmul.mubr.msk.bf16.gmra.mrb[4].mxu0 %vm931_vm3, %v5208_v53  ;;  %v616_v4 = vsel %vm6621_vm4, %v611_v57, %v615_v37  ;;  %v627_v6 = vshll.u32 %v6765_v51, 16  ;;  %v631_v7 = vshrl.u32 %v6765_v51, 16 }
  0x4b   : > { %v2301_v5 = vor.u32 %v2300_v58, %v2296_v48  ;;  %v5062_v9 = vcombine.low %v606_v54, %v616_v4  ;;  %v2292_v11 = vrot.slane %v2291_v17, 4  ;;  %v620_v12 = vrot.slane %v618_v63, 4 }
  0x4c   : > { %v623_v14 = vrot.slane %v621_v2, 5  ;;  %v629_v22 = vrot.slane %v627_v6, 5  ;;  %v633_v23 = vrot.slane %v631_v7, 4  ;;  %v637_v25 = vshll.u32 %v366_v61, 16  ;;  %v6812_v7 = vld [vmem:[%s6595_s7 + $0x48] sm:$0xf] }
  0x4d   : > { %v2302_v20 = vrot.slane %v2301_v5, 4  ;;  %5572 = vmatprep.mubr.msk.bf16.mxu1 %vm931_vm3, %v5062_v9  ;;  %v2297_v26 = vsel %vm6621_vm4, %v2292_v11, %v2296_v48  ;;  %v2309_v33 = vshrl.u32 %v6778_v8, 16  ;;  %v2312_v35 = vshll.u32 %v6778_v8, 16  ;;  %v6798_v48 = vld [vmem:[%s6589_s25 + $0x4c] sm:$0xf] }
  0x4e   : > { %v624_v27 = vor.u32 %v623_v14, %v620_v12  ;;  %v634_v36 = vor.u32 %v633_v23, %v629_v22  ;;  %v639_v38 = vrot.slane %v637_v25, 5  ;;  %v2318_v39 = vshll.u32 %v6781_v18, 16 }
  0x4f   : > { %v2307_v37 = vsel %vm6621_vm4, %v2302_v20, %v2306_v59  ;;  %v2311_v46 = vrot.slane %v2309_v33, 4  ;;  %v2314_v47 = vrot.slane %v2312_v35, 5  ;;  %v2322_v54 = vshrl.u32 %v6781_v18, 16  ;;  %v369_v59 = vld [vmem:[%s6589_s25 + $0x50] sm:$0x1] }
  0x50   : > { %v5209_v41 = vcombine.low %v2297_v26, %v2307_v37  ;;  %v625_v43 = vrot.slane %v624_v27, 4  ;;  %v635_v49 = vrot.slane %v634_v36, 4  ;;  %v2320_v53 = vrot.slane %v2318_v39, 5  ;;  %v6815_v20 = vld [vmem:[%s6595_s7 + $0x4c] sm:$0xf] }
  0x51   : > { %v2328_v57 = vshll.u32 %v6787_v28, 16  ;;  %v2315_v17 = vor.u32 %v2314_v47, %v2311_v46  ;;  %v642_v61 = vshrl.u32 %v6795_v40, 16  ;;  %v645_v63 = vshll.u32 %v6795_v40, 16  ;;  %v6822_v35 = vld [vmem:[%s6595_s7 + $0x50] sm:$0x1] }
  0x52   : > { %5708 = vmatprep.mubr.msk.bf16.mxu0 %vm931_vm3, %v5209_v41  ;;  %v630_v58 = vsel %vm6621_vm4, %v625_v43, %v629_v22  ;;  %v640_v2 = vsel %vm6621_vm4, %v635_v49, %v639_v38  ;;  %v2324_v4 = vrot.slane %v2322_v54, 4  ;;  %v651_v6 = vshll.u32 %v6798_v48, 16 }
  0x53   : > { %v2330_v5 = vrot.slane %v2328_v57, 5  ;;  %v5063_v9 = vcombine.low %v630_v58, %v640_v2  ;;  %v2316_v11 = vrot.slane %v2315_v17, 4  ;;  %v644_v12 = vrot.slane %v642_v61, 4  ;;  %v6835_v61 = vld [vmem:[%s6589_s25 + $0x58] sm:$0xf] }
  0x54   : > { %v647_v14 = vrot.slane %v645_v63, 5  ;;  %v2325_v22 = vor.u32 %v2324_v4, %v2320_v53  ;;  %v653_v23 = vrot.slane %v651_v6, 5  ;;  %v655_v25 = vshrl.u32 %v6798_v48, 16 }
  0x55   : > { %v661_v26 = vshll.u32 %v369_v59, 16  ;;  %5573 = vmatmul.mubr.msk.bf16.gmra.mrb[8].mxu1 %vm931_vm3, %v5063_v9  ;;  %v2321_v27 = vsel %vm6621_vm4, %v2316_v11, %v2320_v53  ;;  %v2333_v37 = vshrl.u32 %v6812_v7, 16  ;;  %v2336_v36 = vshll.u32 %v6812_v7, 16  ;;  %v6829_v53 = vld [vmem:[%s6589_s25 + $0x54] sm:$0xf] }
  0x56   : > { %v648_v33 = vor.u32 %v647_v14, %v644_v12  ;;  %v2326_v38 = vrot.slane %v2325_v22, 4  ;;  %v657_v39 = vrot.slane %v655_v25, 4  ;;  %v2342_v43 = vshll.u32 %v6815_v20, 16  ;;  %v372_v9 = vld [vmem:[%s6589_s25 + $0x5c] sm:$0x1] }
  0x57   : > { %v663_v41 = vrot.slane %v661_v26, 5  ;;  %v2335_v47 = vrot.slane %v2333_v37, 4  ;;  %v2338_v49 = vrot.slane %v2336_v36, 5  ;;  %v2346_v54 = vshrl.u32 %v6815_v20, 16 }
  0x58   : > { %v649_v46 = vrot.slane %v648_v33, 4  ;;  %v2331_v57 = vsel %vm6621_vm4, %v2326_v38, %v2330_v5  ;;  %v658_v58 = vor.u32 %v657_v39, %v653_v23  ;;  %v2344_v17 = vrot.slane %v2342_v43, 5  ;;  %v6851_v39 = vld [vmem:[%s6595_s7 + $0x58] sm:$0xf] }
  0x59   : > { %v2352_v59 = vshll.u32 %v6822_v35, 16  ;;  %v5210_v63 = vcombine.low %v2321_v27, %v2331_v57  ;;  %v2339_v4 = vor.u32 %v2338_v49, %v2335_v47  ;;  %v2348_v6 = vrot.slane %v2346_v54, 4 }
  0x5a   : > { %v654_v2 = vsel %vm6621_vm4, %v649_v46, %v653_v23  ;;  %v659_v11 = vrot.slane %v658_v58, 4  ;;  %v666_v14 = vshrl.u32 %v6829_v53, 16  ;;  %v669_v5 = vshll.u32 %v6829_v53, 16  ;;  %v6846_v23 = vld [vmem:[%s6595_s7 + $0x54] sm:$0xf] }
  0x5b   : > { %v2354_v12 = vrot.slane %v2352_v59, 5  ;;  %5709 = vmatmul.mubr.msk.bf16.gmra.mrb[8].mxu0 %vm931_vm3, %v5210_v63  ;;  %v2340_v22 = vrot.slane %v2339_v4, 4  ;;  %v2349_v25 = vor.u32 %v2348_v6, %v2344_v17  ;;  %v675_v26 = vshll.u32 %v6835_v61, 16  ;;  %v6856_v59 = vld [vmem:[%s6595_s7 + $0x5c] sm:$0x1] }
  0x5c   : > { %v679_v27 = vshrl.u32 %v6835_v61, 16  ;;  %v664_v33 = vsel %vm6621_vm4, %v659_v11, %v663_v41  ;;  %v668_v37 = vrot.slane %v666_v14, 4  ;;  %v671_v36 = vrot.slane %v669_v5, 5  ;;  %v6866_v6 = vld [vmem:[%s6589_s25 + $0x60] sm:$0xf] }
  0x5d   : > { %v685_v38 = vshll.u32 %v372_v9, 16  ;;  %v5064_v43 = vcombine.low %v654_v2, %v664_v33  ;;  %v2345_v46 = vsel %vm6621_vm4, %v2340_v22, %v2344_v17  ;;  %v2350_v47 = vrot.slane %v2349_v25, 4  ;;  %v6869_v22 = vld [vmem:[%s6589_s25 + $0x64] sm:$0xf] }
  0x5e   : > { %v677_v49 = vrot.slane %v675_v26, 5  ;;  %v672_v54 = vor.u32 %v671_v36, %v668_v37  ;;  %v681_v57 = vrot.slane %v679_v27, 4  ;;  %v2357_v41 = vshrl.u32 %v6846_v23, 16 }
  0x5f   : > { %v687_v58 = vrot.slane %v685_v38, 5  ;;  %5576 = vmatprep.mubr.msk.bf16.mxu1 %vm931_vm3, %v5064_v43  ;;  %v2355_v63 = vsel %vm6621_vm4, %v2350_v47, %v2354_v12  ;;  %v2360_v2 = vshll.u32 %v6846_v23, 16  ;;  %v2366_v4 = vshll.u32 %v6851_v39, 16 }
  0x60   : > { %v2370_v17 = vshrl.u32 %v6851_v39, 16  ;;  %v5211_v9 = vcombine.low %v2345_v46, %v2355_v63  ;;  %v673_v11 = vrot.slane %v672_v54, 4  ;;  %v682_v14 = vor.u32 %v681_v57, %v677_v49  ;;  %v375_v54 = vld [vmem:[%s6589_s25 + $0x68] sm:$0x1] }
  0x61   : > { %v2359_v5 = vrot.slane %v2357_v41, 4  ;;  %v2362_v25 = vrot.slane %v2360_v2, 5  ;;  %v2368_v26 = vrot.slane %v2366_v4, 5  ;;  %v2376_v12 = vshll.u32 %v6856_v59, 16 }
  0x62   : > { %v2372_v27 = vrot.slane %v2370_v17, 4  ;;  %5712 = vmatprep.mubr.msk.bf16.mxu0 %vm931_vm3, %v5211_v9  ;;  %v678_v33 = vsel %vm6621_vm4, %v673_v11, %v677_v49  ;;  %v683_v37 = vrot.slane %v682_v14, 4  ;;  %v690_v36 = vshrl.u32 %v6866_v6, 16  ;;  %v6883_v49 = vld [vmem:[%s6589_s25 + $0x6c] sm:$0xf] }
  0x63   : > { %v693_v38 = vshll.u32 %v6866_v6, 16  ;;  %v2363_v43 = vor.u32 %v2362_v25, %v2359_v5  ;;  %v2378_v47 = vrot.slane %v2376_v12, 5  ;;  %v699_v57 = vshll.u32 %v6869_v22, 16 }
  0x64   : > { %v2373_v46 = vor.u32 %v2372_v27, %v2368_v26  ;;  %v688_v41 = vsel %vm6621_vm4, %v683_v37, %v687_v58  ;;  %v692_v63 = vrot.slane %v690_v36, 4  ;;  %v703_v4 = vshrl.u32 %v6869_v22, 16 }
  0x65   : > { %v695_v2 = vrot.slane %v693_v38, 5  ;;  %v5065_v17 = vcombine.low %v678_v33, %v688_v41  ;;  %v2364_v9 = vrot.slane %v2363_v43, 4  ;;  %v701_v14 = vrot.slane %v699_v57, 5  ;;  %v6899_v38 = vld [vmem:[%s6589_s25 + $0x70] sm:$0xf] }
  0x66   : > { %v2374_v11 = vrot.slane %v2373_v46, 4  ;;  %v705_v25 = vrot.slane %v703_v4, 4  ;;  %v709_v27 = vshll.u32 %v375_v54, 16  ;;  %v5237_v58 = vrot.slane %v6601_v13, 9  ;;  %v378_v13 = vld [vmem:[%s6589_s25 + $0x74] sm:$0x1] }
  0x67   : > { %v696_v5 = vor.u32 %v695_v2, %v692_v63  ;;  %5577 = vmatmul.mubr.msk.bf16.gmra.mrb[12].mxu1 %vm931_vm3, %v5065_v17  ;;  %v2369_v33 = vsel %vm6621_vm4, %v2364_v9, %v2368_v26  ;;  %v2884_v36 = vrot.slane %v6604_v15, 5  ;;  %v714_v43 = vshrl.u32 %v6883_v49, 16 }
  0x68   : > { %v2379_v37 = vsel %vm6621_vm4, %v2374_v11, %v2378_v47  ;;  %v706_v57 = vor.u32 %v705_v25, %v701_v14  ;;  %v711_v41 = vrot.slane %v709_v27, 5  ;;  %v717_v47 = vshll.u32 %v6883_v49, 16 }
  0x69   : > { %v5212_v46 = vcombine.low %v2369_v33, %v2379_v37  ;;  %v697_v54 = vrot.slane %v696_v5, 4  ;;  %v2885_v63 = vsel %vm6887_vm7, %v5237_v58, %v2884_v36  ;;  %v2886_v2 = vrot.slane %v2884_v36, 4  ;;  %v6917_v58 = vld [vmem:[%s6589_s25 + $0x78] sm:$0xf] }
  0x6a   : > { %v716_v26 = vrot.slane %v714_v43, 4  ;;  %v707_v4 = vrot.slane %v706_v57, 4  ;;  %v723_v17 = vshll.u32 %v6899_v38, 16  ;;  %v727_v9 = vshrl.u32 %v6899_v38, 16  ;;  %v6922_v43 = vld [vmem:[%s6589_s25 + $0x7c] sm:$0xf] }
  0x6b   : > { %5713 = vmatmul.mubr.msk.bf16.gmra.mrb[12].mxu0 %vm931_vm3, %v5212_v46  ;;  %v702_v15 = vsel %vm6621_vm4, %v697_v54, %v701_v14  ;;  %v2888_v11 = vsel %vm6887_vm7, %v2886_v2, %v2887_v62  ;;  %v719_v5 = vrot.slane %v717_v47, 5  ;;  %v733_v25 = vshll.u32 %v378_v13, 16  ;;  %v381_v46 = vld [vmem:[%s6589_s25 + $0x80] sm:$0x1] }
  0x6c   : > { %v5238_v27 = vrot.slane %v6639_v55, 9  ;;  %v712_v33 = vsel %vm6621_vm4, %v707_v4, %v711_v41  ;;  %v5254_v14 = vcombine.low %v2885_v63, %v2888_v11  ;;  %v725_v37 = vrot.slane %v723_v17, 5 }
  0x6d   : > { %v729_v36 = vrot.slane %v727_v9, 4  ;;  %v5066_v54 = vcombine.low %v702_v15, %v712_v33  ;;  %v720_v16 = vor.u32 %v719_v5, %v716_v26  ;;  %v735_v57 = vrot.slane %v733_v25, 5  ;;  %v6947_v33 = vld [vmem:[%s6589_s25 + $0x88] sm:$0xf] }
  0x6e   : > { %v2892_v62 = vsel %vm6887_vm7, %v5238_v27, %v2891_v24  ;;  %5734 = vmatprep.mubr.msk.bf16.mxu0 %vm931_vm3, %v5254_v14  ;;  %v2893_v41 = vrot.slane %v2891_v24, 4  ;;  %v738_v13 = vshrl.u32 %v6917_v58, 16  ;;  %v741_v63 = vshll.u32 %v6917_v58, 16  ;;  %v6944_v27 = vld [vmem:[%s6589_s25 + $0x84] sm:$0xf] }
  0x6f   : > { %v730_v55 = vor.u32 %v729_v36, %v725_v37  ;;  %5580 = vmatprep.mubr.msk.bf16.mxu1 %vm931_vm3, %v5066_v54  ;;  %v721_v2 = vrot.slane %v720_v16, 4  ;;  %v747_v26 = vshll.u32 %v6922_v43, 16  ;;  %v751_v47 = vshrl.u32 %v6922_v43, 16 }
  0x70   : > { %v757_v15 = vshll.u32 %v381_v46, 16  ;;  %v2895_v60 = vsel %vm6887_vm7, %v2893_v41, %v2894_v29  ;;  %v740_v24 = vrot.slane %v738_v13, 4  ;;  %v743_v17 = vrot.slane %v741_v63, 5  ;;  %v6955_v46 = vld [vmem:[%s8674_s3 + $0xe] sm:$0x3] }
  0x71   : > { %v731_v4 = vrot.slane %v730_v55, 4  ;;  %v726_v9 = vsel %vm6621_vm4, %v721_v2, %v725_v37  ;;  %v5255_v11 = vcombine.low %v2892_v62, %v2895_v60  ;;  %v749_v5 = vrot.slane %v747_v26, 5  ;;  %v384_v55 = vld [vmem:[%s6589_s25 + $0x8c] sm:$0x1] }
  0x72   : > { %v753_v25 = vrot.slane %v751_v47, 4  ;;  %v744_v0 = vor.u32 %v743_v17, %v740_v24  ;;  %v759_v36 = vrot.slane %v757_v15, 5  ;;  %v5239_v29 = vrot.slane %v6673_v30, 9 }
  0x73   : > { %v736_v14 = vsel %vm6621_vm4, %v731_v4, %v735_v57  ;;  %5735 = vmatmul.mubr.msk.bf16.vlgmr.msra.gmra.mrb[0].mxu0 %vm931_vm3, %v5255_v11  ;;  %v2898_v16 = vrot.slane %v6680_v45, 5  ;;  %v2901_v62 = vrot.slane %v6685_v52, 5  ;;  %v762_v41 = vshrl.u32 %v6944_v27, 16  ;;  %v6981_v11 = vld [vmem:[%s6589_s25 + $0x94] sm:$0xf] }
  0x74   : > { %v5067_v37 = vcombine.low %v726_v9, %v736_v14  ;;  %v754_v54 = vor.u32 %v753_v25, %v749_v5  ;;  %5767 = vmatpush3.bf16.msra.mxu0 %v6653_v1  ;;  %v745_v57 = vrot.slane %v744_v0, 4  ;;  %v765_v30 = vshll.u32 %v6944_v27, 16  ;;  %v6978_v9 = vld [vmem:[%s6589_s25 + $0x90] sm:$0xf] }
  0x75   : > { %v771_v13 = vshll.u32 %v6947_v33, 16  ;;  %v2899_v45 = vsel %vm6887_vm7, %v5239_v29, %v2898_v16  ;;  %v2900_v2 = vrot.slane %v2898_v16, 4  ;;  %v775_v52 = vshrl.u32 %v6947_v33, 16  ;;  %6134 = vmatprep.subr.msk.bf16.mxu0 %vm980_vm0, %v6955_v46 }
  0x76   : > { %5581 = vmatmul.mubr.msk.bf16.gmra.mrb[16].mxu1 %vm931_vm3, %v5067_v37  ;;  %v755_v63 = vrot.slane %v754_v54, 4  ;;  %v750_v1 = vsel %vm6621_vm4, %v745_v57, %v749_v5  ;;  %v764_v26 = vrot.slane %v762_v41, 4  ;;  %v767_v47 = vrot.slane %v765_v30, 5 }
  0x77   : > { %v773_v15 = vrot.slane %v771_v13, 5  ;;  %v2902_v60 = vsel %vm6887_vm7, %v2900_v2, %v2901_v62  ;;  %v777_v24 = vrot.slane %v775_v52, 4  ;;  %v781_v17 = vshll.u32 %v384_v55, 16  ;;  %v6989_v62 = vld [vmem:[%s6589_s25 + $0x98] sm:$0x1] }
  0x78   : > { %v760_v4 = vsel %vm6621_vm4, %v755_v63, %v759_v36  ;;  %v5256_v14 = vcombine.low %v2899_v45, %v2902_v60  ;;  %v768_v0 = vor.u32 %v767_v47, %v764_v26  ;;  %v5240_v5 = vrot.slane %v6703_v21, 9  ;;  %v7008_v60 = vld [vmem:[%s6589_s25 + $0xa0] sm:$0xf] }
  0x79   : > { %v5068_v25 = vcombine.low %v750_v1, %v760_v4  ;;  %v778_v29 = vor.u32 %v777_v24, %v773_v15  ;;  %v783_v37 = vrot.slane %v781_v17, 5  ;;  %v2905_v54 = vrot.slane %v6709_v34, 5  ;;  %v7005_v4 = vld [vmem:[%s6589_s25 + $0x9c] sm:$0xf] }
  0x7a   : > { %v2908_v36 = vrot.slane %v6718_v42, 5  ;;  %5738 = vmatprep.mubr.msk.bf16.mxu0 %vm931_vm3, %v5256_v14  ;;  %v769_v16 = vrot.slane %v768_v0, 4  ;;  %v786_v57 = vshrl.u32 %v6978_v9, 16  ;;  %v789_v55 = vshll.u32 %v6978_v9, 16 }
  0x7b   : > { %5584 = vmatprep.mubr.msk.bf16.mxu1 %vm931_vm3, %v5068_v25  ;;  %v795_v21 = vshll.u32 %v6981_v11, 16  ;;  %v779_v41 = vrot.slane %v778_v29, 4  ;;  %v2906_v34 = vsel %vm6887_vm7, %v5240_v5, %v2905_v54  ;;  %v2907_v42 = vrot.slane %v2905_v54, 4  ;;  %v390_v54 = vld [vmem:[%s6589_s25 + $0xa4] sm:$0x1] }
  0x7c   : > { %v799_v30 = vshrl.u32 %v6981_v11, 16  ;;  %v774_v13 = vsel %vm6621_vm4, %v769_v16, %v773_v15  ;;  %v788_v63 = vrot.slane %v786_v57, 4  ;;  %v791_v45 = vrot.slane %v789_v55, 5 }
  0x7d   : > { %v797_v2 = vrot.slane %v795_v21, 5  ;;  %v784_v52 = vsel %vm6621_vm4, %v779_v41, %v783_v37  ;;  %v2909_v1 = vsel %vm6887_vm7, %v2907_v42, %v2908_v36  ;;  %v805_v47 = vshll.u32 %v6989_v62, 16 }
  0x7e   : > { %v801_v26 = vrot.slane %v799_v30, 4  ;;  %v5069_v24 = vcombine.low %v774_v13, %v784_v52  ;;  %v5257_v17 = vcombine.low %v2906_v34, %v2909_v1  ;;  %v792_v15 = vor.u32 %v791_v45, %v788_v63  ;;  %v7029_v52 = vld [vmem:[%s6589_s25 + $0xa8] sm:$0xf]  ;;  %v7032_v1 = vld [vmem:[%s6589_s25 + $0xac] sm:$0xf] }
  0x7f   : > { %v5241_v25 = vrot.slane %v6740_v10, 9  ;;  %v807_v0 = vrot.slane %v805_v47, 5  ;;  %v2912_v5 = vrot.slane %v6746_v19, 5  ;;  %v2915_v29 = vrot.slane %v6751_v31, 5  ;;  %8706 = vst [vmem:[#allocation9_spill] sm:$0xff] %v7029_v52 }
  0x80   : > { %v802_v14 = vor.u32 %v801_v26, %v797_v2  ;;  %5585 = vmatmul.mubr.msk.bf16.gmra.mrb[20].mxu1 %vm931_vm3, %v5069_v24  ;;  %5739 = vmatmul.mubr.msk.bf16.gmra.mrb[4].mxu0 %vm931_vm3, %v5257_v17  ;;  %v793_v37 = vrot.slane %v792_v15, 4  ;;  %v810_v36 = vshrl.u32 %v7005_v4, 16  ;;  %v813_v16 = vshll.u32 %v7005_v4, 16 }
  0x81   : > { %v819_v10 = vshll.u32 %v7008_v60, 16  ;;  %v2913_v19 = vsel %vm6887_vm7, %v5241_v25, %v2912_v5  ;;  %v2914_v55 = vrot.slane %v2912_v5, 4  ;;  %v823_v31 = vshrl.u32 %v7008_v60, 16  ;;  %v7040_v5 = vld [vmem:[%s6589_s25 + $0xb0] sm:$0x1] }
  0x82   : > { %v803_v57 = vrot.slane %v802_v14, 4  ;;  %v798_v21 = vsel %vm6621_vm4, %v793_v37, %v797_v2  ;;  %v812_v41 = vrot.slane %v810_v36, 4  ;;  %v815_v34 = vrot.slane %v813_v16, 5  ;;  %8707 = vst [vmem:[#allocation10_spill] sm:$0xff] %v7040_v5 }
  0x83   : > { %v821_v42 = vrot.slane %v819_v10, 5  ;;  %v2916_v13 = vsel %vm6887_vm7, %v2914_v55, %v2915_v29  ;;  %v825_v63 = vrot.slane %v823_v31, 4  ;;  %v829_v45 = vshll.u32 %v390_v54, 16 }
  0x84   : > { %v808_v30 = vsel %vm6621_vm4, %v803_v57, %v807_v0  ;;  %v5258_v47 = vcombine.low %v2913_v19, %v2916_v13  ;;  %v816_v24 = vor.u32 %v815_v34, %v812_v41  ;;  %v5242_v2 = vrot.slane %v6778_v8, 9  ;;  %v7056_v34 = vld [vmem:[%s6589_s25 + $0xb4] sm:$0xf] }
  0x85   : > { %v5070_v26 = vcombine.low %v798_v21, %v808_v30  ;;  %v826_v17 = vor.u32 %v825_v63, %v821_v42  ;;  %v831_v15 = vrot.slane %v829_v45, 5  ;;  %v2919_v25 = vrot.slane %v6781_v18, 5  ;;  %8708 = vst [vmem:[#allocation11_spill] sm:$0xff] %v7056_v34  ;;  %v7059_v30 = vld [vmem:[%s6589_s25 + $0xb8] sm:$0xf] }
  0x86   : > { %v2922_v14 = vrot.slane %v6787_v28, 5  ;;  %5742 = vmatprep.mubr.msk.bf16.mxu0 %vm931_vm3, %v5258_v47  ;;  %v817_v0 = vrot.slane %v816_v24, 4  ;;  %v834_v29 = vshrl.u32 %v7029_v52, 16  ;;  %v837_v37 = vshll.u32 %v7029_v52, 16  ;;  %8709 = vst [vmem:[#allocation12_spill] sm:$0xff] %v7059_v30 }
  0x87   : > { %5588 = vmatprep.mubr.msk.bf16.mxu1 %vm931_vm3, %v5070_v26  ;;  %v843_v8 = vshll.u32 %v7032_v1, 16  ;;  %v827_v54 = vrot.slane %v826_v17, 4  ;;  %v2920_v18 = vsel %vm6887_vm7, %v5242_v2, %v2919_v25  ;;  %v2921_v28 = vrot.slane %v2919_v25, 4 }
  0x88   : > { %v847_v36 = vshrl.u32 %v7032_v1, 16  ;;  %v822_v16 = vsel %vm6621_vm4, %v817_v0, %v821_v42  ;;  %v836_v10 = vrot.slane %v834_v29, 4  ;;  %v839_v57 = vrot.slane %v837_v37, 5 }
  0x89   : > { %v845_v19 = vrot.slane %v843_v8, 5  ;;  %v832_v55 = vsel %vm6621_vm4, %v827_v54, %v831_v15  ;;  %v2923_v31 = vsel %vm6887_vm7, %v2921_v28, %v2922_v14  ;;  %v853_v41 = vshll.u32 %v7040_v5, 16  ;;  %v7067_v15 = vld [vmem:[%s6589_s25 + $0xbc] sm:$0x1]  ;;  %v421_v28 = vld [vmem:[%s6595_s7 + $0x60] sm:$0xf] }
  0x8a   : > { %v849_v21 = vrot.slane %v847_v36, 4  ;;  %v5071_v13 = vcombine.low %v822_v16, %v832_v55  ;;  %v5259_v63 = vcombine.low %v2920_v18, %v2923_v31  ;;  %v840_v42 = vor.u32 %v839_v57, %v836_v10  ;;  %8710 = vst [vmem:[#allocation13_spill] sm:$0xff] %v7067_v15  ;;  %v422_v55 = vld [vmem:[%s6595_s7 + $0x64] sm:$0xf]  ;;  %v423_v31 = vld [vmem:[%s6595_s7 + $0x68] sm:$0x1] }
  0x8b   : > { %v5243_v45 = vrot.slane %v6812_v7, 9  ;;  %v855_v47 = vrot.slane %v853_v41, 5  ;;  %v2926_v24 = vrot.slane %v6815_v20, 5  ;;  %v2929_v2 = vrot.slane %v6822_v35, 5  ;;  %v6272_v5 = vld [vmem:[%s6589_s25 + $0x64] sm:$0xf] }
  0x8c   : > { %v850_v26 = vor.u32 %v849_v21, %v845_v19  ;;  %5589 = vmatmul.mubr.msk.bf16.gmra.mrb[24].mxu1 %vm931_vm3, %v5071_v13  ;;  %5743 = vmatmul.mubr.msk.bf16.gmra.mrb[8].mxu0 %vm931_vm3, %v5259_v63  ;;  %v841_v17 = vrot.slane %v840_v42, 4  ;;  %v858_v25 = vshrl.u32 %v7056_v34, 16  ;;  %v861_v14 = vshll.u32 %v7056_v34, 16 }
  0x8d   : > { %v867_v7 = vshll.u32 %v7059_v30, 16  ;;  %v2927_v20 = vsel %vm6887_vm7, %v5243_v45, %v2926_v24  ;;  %v2928_v35 = vrot.slane %v2926_v24, 4  ;;  %v871_v29 = vshrl.u32 %v7059_v30, 16 }
  0x8e   : > { %v851_v0 = vrot.slane %v850_v26, 4  ;;  %v846_v37 = vsel %vm6621_vm4, %v841_v17, %v845_v19  ;;  %v860_v8 = vrot.slane %v858_v25, 4  ;;  %v863_v54 = vrot.slane %v861_v14, 5 }
  0x8f   : > { %v869_v18 = vrot.slane %v867_v7, 5  ;;  %v2930_v16 = vsel %vm6887_vm7, %v2928_v35, %v2929_v2  ;;  %v873_v10 = vrot.slane %v871_v29, 4  ;;  %v877_v57 = vshll.u32 %v7067_v15, 16  ;;  %v7101_v35 = vld [vmem:[%s6589_s25] sm:$0xf] }
  0x90   : > { %v856_v36 = vsel %vm6621_vm4, %v851_v0, %v855_v47  ;;  %v5260_v41 = vcombine.low %v2927_v20, %v2930_v16  ;;  %v864_v13 = vor.u32 %v863_v54, %v860_v8  ;;  %v5244_v19 = vrot.slane %v6846_v23, 9  ;;  %v7104_v29 = vld [vmem:[%s6589_s25 + $0x4] sm:$0xf]  ;;  %v424_v8 = vld [vmem:[%s6595_s7 + $0x6c] sm:$0xf] }
  0x91   : > { %v5072_v21 = vcombine.low %v846_v37, %v856_v36  ;;  %v874_v63 = vor.u32 %v873_v10, %v869_v18  ;;  %v879_v42 = vrot.slane %v877_v57, 5  ;;  %v2933_v45 = vrot.slane %v6851_v39, 5  ;;  %v425_v54 = vld [vmem:[%s6595_s7 + $0x70] sm:$0xf]  ;;  %v426_v16 = vld [vmem:[%s6595_s7 + $0x74] sm:$0x1] }
  0x92   : > { %v2936_v26 = vrot.slane %v6856_v59, 5  ;;  %5746 = vmatprep.mubr.msk.bf16.mxu0 %vm931_vm3, %v5260_v41  ;;  %v865_v47 = vrot.slane %v864_v13, 4  ;;  %v5245_v24 = vrot.slane %v421_v28, 9  ;;  %v2940_v2 = vrot.slane %v422_v55, 5  ;;  %v427_v10 = vld [vmem:[%s6595_s7 + $0x78] sm:$0xf] }
  0x93   : > { %5592 = vmatprep.mubr.msk.bf16.mxu1 %vm931_vm3, %v5072_v21  ;;  %v2943_v17 = vrot.slane %v423_v31, 5  ;;  %v875_v25 = vrot.slane %v874_v63, 4  ;;  %v2934_v23 = vsel %vm6887_vm7, %v5244_v19, %v2933_v45  ;;  %v2935_v39 = vrot.slane %v2933_v45, 4  ;;  %v428_v55 = vld [vmem:[%s6595_s7 + $0x7c] sm:$0xf] }
  0x94   : > { %v870_v59 = vsel %vm6621_vm4, %v865_v47, %v869_v18  ;;  %v2941_v14 = vsel %vm6887_vm7, %v5245_v24, %v2940_v2  ;;  %v2942_v7 = vrot.slane %v2940_v2, 4  ;;  %v5090_v37 = vcombine.low %v7101_v35, %v7104_v29  ;;  %v429_v41 = vld [vmem:[%s6595_s7 + $0x80] sm:$0x1]  ;;  %v431_v13 = vld [vmem:[%s6595_s7 + $0x88] sm:$0xf] }
  0x95   : > { %v880_v0 = vsel %vm6621_vm4, %v875_v25, %v879_v42  ;;  %v2937_v20 = vsel %vm6887_vm7, %v2935_v39, %v2936_v26  ;;  %v5246_v31 = vrot.slane %v424_v8, 9  ;;  %v2947_v21 = vrot.slane %v425_v54, 5  ;;  %v430_v42 = vld [vmem:[%s6595_s7 + $0x84] sm:$0xf]  ;;  %v432_v45 = vld [vmem:[%s6595_s7 + $0x8c] sm:$0x1] }
  0x96   : > { %v5073_v18 = vcombine.low %v870_v59, %v880_v0  ;;  %v5261_v28 = vcombine.low %v2934_v23, %v2937_v20  ;;  %v2944_v36 = vsel %vm6887_vm7, %v2942_v7, %v2943_v17  ;;  %v2950_v19 = vrot.slane %v426_v16, 5  ;;  %v433_v2 = vld [vmem:[%s6595_s7 + $0x90] sm:$0xf]  ;;  %v434_v17 = vld [vmem:[%s6595_s7 + $0x94] sm:$0xf] }
  0x97   : > { %v5262_v57 = vcombine.low %v2941_v14, %v2944_v36  ;;  %v5247_v63 = vrot.slane %v427_v10, 9  ;;  %v2948_v26 = vsel %vm6887_vm7, %v5246_v31, %v2947_v21  ;;  %v2949_v47 = vrot.slane %v2947_v21, 4  ;;  %v7128_v25 = vld [vmem:[%s6589_s25 + $0xc] sm:$0xf]  ;;  %v7131_v23 = vld [vmem:[%s6589_s25 + $0x10] sm:$0xf] }
  0x98   : > { %5593 = vmatmul.mubr.msk.bf16.gmra.mrb[28].mxu1 %vm931_vm3, %v5073_v18  ;;  %5747 = vmatmul.mubr.msk.bf16.gmra.mrb[12].mxu0 %vm931_vm3, %v5261_v28  ;;  %v2954_v24 = vrot.slane %v428_v55, 5  ;;  %v5091_v39 = vcombine.low %v7128_v25, %v7131_v23  ;;  %v6251_v59 = vld [vmem:[%s8674_s3 + $0x4] sm:$0x3]  ;;  %v2957_v7 = vrot.slane %v429_v41, 5  ;;  %v2961_v0 = vrot.slane %v431_v13, 5 }
  0x99   : > { %5598 = vmatprep.mubr.msk.bf16.mxu1 %vm931_vm3, %v5090_v37  ;;  %5750 = vmatprep.mubr.msk.bf16.mxu0 %vm931_vm3, %v5262_v57  ;;  %v1667_v14 = vsel %vm980_vm0, %v6251_v59, 0  ;;  %v435_v20 = vld [vmem:[%s6595_s7 + $0x98] sm:$0x1]  ;;  %v2951_v37 = vsel %vm6887_vm7, %v2949_v47, %v2950_v19  ;;  %v7146_v54 = vld [vmem:[%s6589_s25 + $0x1c] sm:$0xf]  ;;  %v5248_v10 = vrot.slane %v430_v42, 9 }
  0x9a   : > { %v7143_v8 = vld [vmem:[%s6589_s25 + $0x18] sm:$0xf]  ;;  %v2955_v28 = vsel %vm6887_vm7, %v5247_v63, %v2954_v24  ;;  %v2956_v36 = vrot.slane %v2954_v24, 4  ;;  %v5263_v16 = vcombine.low %v2948_v26, %v2951_v37  ;;  %v2963_v57 = vrot.slane %v2961_v0, 4  ;;  %v437_v19 = vld [vmem:[%s6595_s7 + $0xa0] sm:$0xf] }
  0x9b   : > { %v5092_v18 = vcombine.low %v7143_v8, %v7146_v54  ;;  %v2964_v55 = vrot.slane %v432_v45, 5  ;;  %v5249_v21 = vrot.slane %v433_v2, 9  ;;  %v2968_v41 = vrot.slane %v434_v17, 5  ;;  %v440_v59 = vld [vmem:[%s6595_s7 + $0xac] sm:$0xf] }
  0x9c   : > { %v2958_v31 = vsel %vm6887_vm7, %v2956_v36, %v2957_v7  ;;  %v2971_v13 = vrot.slane %v435_v20, 5  ;;  %v7159_v63 = vld [vmem:[%s8674_s3 + $0x6] sm:$0x3]  ;;  %v2962_v45 = vsel %vm6887_vm7, %v5248_v10, %v2961_v0  ;;  %v2975_v24 = vrot.slane %v437_v19, 5  ;;  %v438_v7 = vld [vmem:[%s6595_s7 + $0xa4] sm:$0x1] }
  0x9d   : > { %v5264_v47 = vcombine.low %v2955_v28, %v2958_v31  ;;  %v2970_v42 = vrot.slane %v2968_v41, 4  ;;  %v2965_v26 = vsel %vm6887_vm7, %v2963_v57, %v2964_v55  ;;  %v2969_v2 = vsel %vm6887_vm7, %v5249_v21, %v2968_v41  ;;  %v439_v0 = vld [vmem:[%s6595_s7 + $0xa8] sm:$0xf]  ;;  %v441_v20 = vld [vmem:[%s6595_s7 + $0xb0] sm:$0x1] }
  0x9e   : > { %v7180_v37 = vld [vmem:[%s6589_s25 + $0x24] sm:$0xf]  ;;  %v5265_v36 = vcombine.low %v2962_v45, %v2965_v26  ;;  %v2977_v55 = vrot.slane %v2975_v24, 4  ;;  %v2978_v31 = vrot.slane %v438_v7, 5  ;;  %v5251_v21 = vrot.slane %v439_v0, 9 }
  0x9f   : > { %v2972_v17 = vsel %vm6887_vm7, %v2970_v42, %v2971_v13  ;;  %v2985_v13 = vrot.slane %v441_v20, 5  ;;  %v443_v19 = vld [vmem:[%s6595_s7 + $0xb8] sm:$0xf]  ;;  %v442_v45 = vld [vmem:[%s6595_s7 + $0xb4] sm:$0xf] }
  0xa0   : > { %5599 = vmatmul.mubr.msk.bf16.vlgmr.msra.gmra.mrb[0].mxu1 %vm931_vm3, %v5091_v39  ;;  %5751 = vmatmul.mubr.msk.bf16.gmra.mrb[16].mxu0 %vm931_vm3, %v5263_v16  ;;  %v436_v39 = vld [vmem:[%s6595_s7 + $0x9c] sm:$0xf]  ;;  %v5094_v16 = vcombine.low %v6722_v44, %v6728_v56  ;;  %v5266_v10 = vcombine.low %v2969_v2, %v2972_v17  ;;  %v2979_v56 = vsel %vm6887_vm7, %v2977_v55, %v2978_v31  ;;  %v5252_v7 = vrot.slane %v442_v45, 9 }
  0xa1   : > { %5631 = vmatpush3.bf16.msra.mxu1 %v1667_v14  ;;  %5602 = vmatprep.mubr.msk.bf16.mxu1 %vm931_vm3, %v5092_v18  ;;  %v2982_v14 = vrot.slane %v440_v59, 5  ;;  %v7183_v18 = vld [vmem:[%s6589_s25 + $0x28] sm:$0xf]  ;;  %v5250_v57 = vrot.slane %v436_v39, 9  ;;  %v444_v26 = vld [vmem:[%s6595_s7 + $0xbc] sm:$0x1]  ;;  %v5095_v2 = vcombine.low %v6759_v50, %v6765_v51  ;;  %v5096_v39 = vcombine.low %v6795_v40, %v6798_v48 }
  0xa2   : > { %5754 = vmatprep.mubr.msk.bf16.mxu0 %vm931_vm3, %v5264_v47  ;;  %6129 = vmatprep.subr.msk.bf16.mxu1 %vm980_vm0, %v7159_v63  ;;  %v5093_v28 = vcombine.low %v7180_v37, %v7183_v18  ;;  %v2989_v47 = vrot.slane %v443_v19, 5  ;;  %v2992_v20 = vrot.slane %v444_v26, 5  ;;  %v7223_v40 = vld [vmem:[%s7212_s8] sm:$0xf]  ;;  %v7226_v48 = vld [vmem:[%s7212_s8 + $0x4] sm:$0xf]  ;;  %v5100_v55 = vcombine.low %v6917_v58, %v6922_v43 }
  0xa3   : > { %v2984_v41 = vrot.slane %v2982_v14, 4  ;;  %v2976_v44 = vsel %vm6887_vm7, %v5250_v57, %v2975_v24  ;;  %v2983_v59 = vsel %vm6887_vm7, %v5251_v21, %v2982_v14  ;;  %v5097_v14 = vcombine.low %v6829_v53, %v6835_v61  ;;  %v7242_v53 = vld [vmem:[%s7212_s8 + $0x10] sm:$0xf]  ;;  %v7245_v61 = vld [vmem:[%s7212_s8 + $0x18] sm:$0xf] }
  0xa4   : > { %v5267_v17 = vcombine.low %v2976_v44, %v2979_v56  ;;  %v2991_v0 = vrot.slane %v2989_v47, 4  ;;  %v2990_v50 = vsel %vm6887_vm7, %v5252_v7, %v2989_v47  ;;  %v4097_v31 = vsel %vm980_vm0, %v6955_v46, 0  ;;  %v7272_v58 = vld [vmem:[%s7212_s8 + $0x28] sm:$0xf]  ;;  %v7276_v46 = vld [vmem:[%s7212_s8 + $0x30] sm:$0xf] }
  0xa5   : > { %v2986_v42 = vsel %vm6887_vm7, %v2984_v41, %v2985_v13  ;;  %v7263_v41 = vld [vmem:[%s8674_s3 + $0x10] sm:$0x3]  ;;  %v7279_v13 = vld [vmem:[%s7212_s8 + $0x34] sm:$0xf]  ;;  %v7284_v19 = vld [vmem:[%s6589_s25 + $0x8] sm:$0x1]  ;;  %v5101_v45 = vcombine.low %v6944_v27, %v6947_v33 }
  0xa6   : > { %v5268_v24 = vcombine.low %v2983_v59, %v2986_v42  ;;  %v2993_v51 = vsel %vm6887_vm7, %v2991_v0, %v2992_v20  ;;  %v1461_v44 = vrot.slane %v7284_v19, 5  ;;  %v1465_v56 = vrot.slane %v7131_v23, 5  ;;  %v7289_v47 = vld [vmem:[%s6589_s25 + $0x14] sm:$0x1]  ;;  %v7307_v7 = vld [vmem:[%s7212_s8 + $0x40] sm:$0xf] }
  0xa7   : > { %v1468_v59 = vrot.slane %v7289_v47, 5  ;;  %v5102_v23 = vcombine.low %v6978_v9, %v6981_v11  ;;  %v1472_v9 = vrot.slane %v7146_v54, 5  ;;  %v7376_v33 = vld [vmem:[%s7212_s8 + $0x70] sm:$0xf]  ;;  %v5124_v27 = vrot.slane %v7143_v8, 9 }
  0xa8   : > { %5603 = vmatmul.mubr.msk.bf16.gmra.mrb[4].mxu1 %vm931_vm3, %v5093_v28  ;;  %5755 = vmatmul.mubr.msk.bf16.gmra.mrb[20].mxu0 %vm931_vm3, %v5265_v36  ;;  %v5269_v28 = vcombine.low %v2990_v50, %v2993_v51  ;;  %v5098_v36 = vcombine.low %v6866_v6, %v6869_v22  ;;  %v7248_v6 = vld [vmem:[%s7212_s8 + $0x1c] sm:$0xf]  ;;  %v5099_v22 = vcombine.low %v6883_v49, %v6899_v38  ;;  %v7269_v49 = vld [vmem:[%s7212_s8 + $0x24] sm:$0xf]  ;;  %v7314_v50 = vld [vmem:[%s7212_s8 + $0x48] sm:$0xf] }
  0xa9   : > { %5606 = vmatprep.mubr.msk.bf16.mxu1 %vm931_vm3, %v5094_v16  ;;  %5758 = vmatprep.mubr.msk.bf16.mxu0 %vm931_vm3, %v5266_v10  ;;  %v5287_v16 = vcombine.low %v7223_v40, %v7226_v48  ;;  %v7239_v10 = vld [vmem:[%s7212_s8 + $0xc] sm:$0xf]  ;;  %v5289_v21 = vcombine.low %v7245_v61, %v7248_v6  ;;  %v5290_v26 = vcombine.low %v7269_v49, %v7272_v58  ;;  %v7400_v0 = vld [vmem:[%s7212_s8 + $0x7c] sm:$0xf]  ;;  %v7408_v19 = vsel %vm980_vm0, %v7159_v63, 0 }
  0xaa   : > { %v5288_v57 = vcombine.low %v7239_v10, %v7242_v53  ;;  %8711 = vst [vmem:[#allocation14_spill] sm:$0xff] %v7314_v50  ;;  %v5105_v51 = vcombine.low %v7056_v34, %v7059_v30  ;;  %v7426_v8 = vld [vmem:[%s7212_s8 + $0x84] sm:$0xf]  ;;  %v7438_v54 = vld [vmem:[%s7212_s8 + $0x90] sm:$0xf] }
  0xab   : > { %v6263_v42 = vld [vmem:[%s6589_s25 + $0x40] sm:$0xf]  ;;  %v7507_v34 = vld [vmem:[%s7212_s8 + $0xac] sm:$0xf] }
  0xb0   : > { %5607 = vmatmul.mubr.msk.bf16.gmra.mrb[8].mxu1 %vm931_vm3, %v5095_v2  ;;  %5759 = vmatmul.mubr.msk.bf16.gmra.mrb[24].mxu0 %vm931_vm3, %v5267_v17  ;;  %v7390_v17 = vld [vmem:[%s7212_s8 + $0x78] sm:$0xf]  ;;  %v7443_v2 = vld [vmem:[%s7212_s8 + $0x94] sm:$0xf] }
  0xb1   : > { %5610 = vmatprep.mubr.msk.bf16.mxu1 %vm931_vm3, %v5096_v39  ;;  %5762 = vmatprep.mubr.msk.bf16.mxu0 %vm931_vm3, %v5268_v24  ;;  %v5291_v39 = vcombine.low %v7276_v46, %v7279_v13  ;;  %v7304_v24 = vld [vmem:[%s7212_s8 + $0x3c] sm:$0xf]  ;;  %8717 = vst [vmem:[#allocation20_spill] sm:$0xff] %v7390_v17 }
  0xb2   : > { %v5292_v47 = vcombine.low %v7304_v24, %v7307_v7 }
  0xb8   : > { %5611 = vmatmul.mubr.msk.bf16.gmra.mrb[12].mxu1 %vm931_vm3, %v5097_v14  ;;  %5763 = vmatmul.mubr.msk.bf16.gmra.mrb[28].mxu0 %vm931_vm3, %v5269_v28  ;;  %v1493_v28 = vrot.slane %v6263_v42, 5  ;;  %v6264_v42 = vld [vmem:[%s6589_s25 + $0x4c] sm:$0xf] }
  0xb9   : > { %5614 = vmatprep.mubr.msk.bf16.mxu1 %vm931_vm3, %v5098_v36  ;;  %5768 = vmatprep.mubr.msk.bf16.mxu0 %vm931_vm3, %v5287_v16  ;;  %v7321_v36 = vld [vmem:[%s7212_s8 + $0x4c] sm:$0xf] }
  0xc0   : > { %5615 = vmatmul.mubr.msk.bf16.gmra.mrb[16].mxu1 %vm931_vm3, %v5099_v22  ;;  %5769 = vmatmul.mubr.msk.bf16.vlgmr.msra.gmra.mrb[0].mxu0 %vm931_vm3, %v5288_v57  ;;  %v7355_v22 = vld [vmem:[%s7212_s8 + $0x64] sm:$0xf]  ;;  %v1467_v57 = vrot.slane %v1465_v56, 4 }
  0xc1   : > { %5801 = vmatpush3.bf16.msra.mxu0 %v4097_v31  ;;  %5618 = vmatprep.mubr.msk.bf16.mxu1 %vm931_vm3, %v5100_v55  ;;  %v1458_v55 = vrot.slane %v7104_v29, 5  ;;  %v7347_v31 = vld [vmem:[%s7212_s8 + $0x58] sm:$0xf]  ;;  %8715 = vst [vmem:[#allocation18_spill] sm:$0xff] %v7355_v22  ;;  %v5123_v29 = vrot.slane %v7128_v25, 9 }
  0xc2   : > { %5772 = vmatprep.mubr.msk.bf16.mxu0 %vm931_vm3, %v5289_v21  ;;  %6135 = vmatprep.subr.msk.bf16.mxu0 %vm980_vm0, %v7263_v41  ;;  %v5103_v21 = vcombine.low %v7005_v4, %v7008_v60  ;;  %8713 = vst [vmem:[#allocation16_spill] sm:$0xff] %v7347_v31  ;;  %v7350_v4 = vld [vmem:[%s7212_s8 + $0x60] sm:$0xf]  ;;  %v7368_v25 = vld [vmem:[%s7212_s8 + $0x6c] sm:$0xf]  ;;  %v7386_v16 = vsel %vm6887_vm7, %v1467_v57, %v1468_v59  ;;  %v1479_v59 = vrot.slane %v7183_v18, 5 }
  0xc3   : > { %8714 = vst [vmem:[#allocation17_spill] sm:$0xff] %v7350_v4  ;;  %v1460_v14 = vrot.slane %v1458_v55, 4  ;;  %8716 = vst [vmem:[#allocation19_spill] sm:$0xff] %v7368_v25  ;;  %v7382_v20 = vsel %vm6887_vm7, %v5123_v29, %v1465_v56  ;;  %v1474_v56 = vrot.slane %v1472_v9, 4  ;;  %v6262_v18 = vld [vmem:[%s6589_s25 + $0x38] sm:$0x1] }
  0xc8   : > { %5619 = vmatmul.mubr.msk.bf16.gmra.mrb[20].mxu1 %vm931_vm3, %v5101_v45  ;;  %5773 = vmatmul.mubr.msk.bf16.gmra.mrb[4].mxu0 %vm931_vm3, %v5290_v26  ;;  %v7338_v26 = vld [vmem:[%s7212_s8 + $0x54] sm:$0xf]  ;;  %v5122_v45 = vrot.slane %v7101_v35, 9 }
  0xc9   : > { %5622 = vmatprep.mubr.msk.bf16.mxu1 %vm931_vm3, %v5102_v23  ;;  %5776 = vmatprep.mubr.msk.bf16.mxu0 %vm931_vm3, %v5291_v39  ;;  %8712 = vst [vmem:[#allocation15_spill] sm:$0xff] %v7338_v26  ;;  %v5104_v23 = vcombine.low %v7029_v52, %v7032_v1  ;;  %v5293_v39 = vcombine.low %v7314_v50, %v7321_v36  ;;  %v8720_v52 = vshll.u32 %v7223_v40, 16 }
  0xca   : > { %v5294_v35 = vcombine.low %v7338_v26, %v7347_v31  ;;  %v1459_v60 = vsel %vm6887_vm7, %v5122_v45, %v1458_v55  ;;  %v1462_v55 = vsel %vm6887_vm7, %v1460_v14, %v1461_v44  ;;  %v6258_v45 = vld [vmem:[%s6589_s25 + $0x20] sm:$0x1]  ;;  %v6259_v14 = vld [vmem:[%s6589_s25 + $0x34] sm:$0xf]  ;;  %v1514_v31 = vrot.slane %v6272_v5, 5 }
  0xcb   : > { %v1475_v29 = vrot.slane %v6258_v45, 5  ;;  %v1486_v57 = vrot.slane %v6259_v14, 5  ;;  %v5139_v63 = vcombine.low %v1459_v60, %v1462_v55  ;;  %v5125_v14 = vrot.slane %v7180_v37, 9  ;;  %v6260_v55 = vld [vmem:[%s6589_s25 + $0x2c] sm:$0x1] }
  0xcc   : > { %v1481_v60 = vrot.slane %v1479_v59, 4  ;;  %v1489_v37 = vrot.slane %v6262_v18, 5  ;;  %v6267_v45 = vld [vmem:[%s6589_s25 + $0x58] sm:$0xf]  ;;  %v6270_v26 = vld [vmem:[%s6589_s25 + $0x54] sm:$0xf] }
  0xcd   : > { %v1488_v44 = vrot.slane %v1486_v57, 4  ;;  %v7455_v18 = vsel %vm6887_vm7, %v5125_v14, %v1479_v59  ;;  %v7472_v14 = vld [vmem:[%s7212_s8 + $0x9c] sm:$0xf]  ;;  %v5129_v30 = vrot.slane %v6270_v26, 9  ;;  %v8721_v5 = vshrl.u32 %v7226_v48, 16 }
  0xd0   : > { %5623 = vmatmul.mubr.msk.bf16.gmra.mrb[24].mxu1 %vm931_vm3, %v5103_v21  ;;  %5777 = vmatmul.mubr.msk.bf16.gmra.mrb[8].mxu0 %vm931_vm3, %v5292_v47  ;;  %v7429_v21 = vld [vmem:[%s7212_s8 + $0x88] sm:$0xf]  ;;  %v1482_v47 = vrot.slane %v6260_v55, 5 }
  0xd1   : > { %5626 = vmatprep.mubr.msk.bf16.mxu1 %vm931_vm3, %v5104_v23  ;;  %5780 = vmatprep.mubr.msk.bf16.mxu0 %vm931_vm3, %v5293_v39  ;;  %v7420_v39 = vsel %vm6887_vm7, %v5124_v27, %v1472_v9  ;;  %v7433_v23 = vsel %vm6887_vm7, %v1474_v56, %v1475_v29  ;;  %v6261_v27 = vld [vmem:[%s6589_s25 + $0x30] sm:$0xf]  ;;  %v6266_v56 = vld [vmem:[%s6589_s25 + $0x44] sm:$0x1] }
  0xd2   : > { %v5126_v9 = vrot.slane %v6261_v27, 9  ;;  %v7463_v27 = vsel %vm6887_vm7, %v1481_v60, %v1482_v47  ;;  %v6265_v47 = vld [vmem:[%s6589_s25 + $0x3c] sm:$0xf]  ;;  %v1496_v59 = vrot.slane %v6266_v56, 5  ;;  %v7499_v56 = vld [vmem:[%s7212_s8 + $0xa8] sm:$0xf] }
  0xd3   : > { %v5127_v60 = vrot.slane %v6265_v47, 9  ;;  %v6268_v47 = vld [vmem:[%s6589_s25 + $0x48] sm:$0xf] }
  0xd4   : > { %v7467_v29 = vsel %vm6887_vm7, %v5126_v9, %v1486_v57  ;;  %v7485_v57 = vsel %vm6887_vm7, %v1488_v44, %v1489_v37  ;;  %v1495_v9 = vrot.slane %v1493_v28, 4  ;;  %v5128_v15 = vrot.slane %v6268_v47, 9 }
  0xd5   : > { %v7511_v37 = vsel %vm6887_vm7, %v5127_v60, %v1493_v28  ;;  %v3620_v28 = vrot.slane %v8720_v52, 5  ;;  %v8723_v52 = vcombine.low %v7368_v25, %v7376_v33 }
  0xd6   : > { %v7515_v47 = vsel %vm6887_vm7, %v1495_v9, %v1496_v59  ;;  %v7531_v59 = vld [vmem:[%s7212_s8 + $0xb4] sm:$0xf]  ;;  %v3630_v9 = vrot.slane %v8721_v5, 4 }
  0xd8   : > { %5627 = vmatmul.mubr.msk.bf16.gmra.mrb[28].mxu1 %vm931_vm3, %v5105_v51  ;;  %5781 = vmatmul.mubr.msk.bf16.gmra.mrb[12].mxu0 %vm931_vm3, %v5294_v35  ;;  %v1500_v51 = vrot.slane %v6264_v42, 5  ;;  %v8718_v35 = vcombine.low %v7350_v4, %v7355_v22  ;;  %v3624_v42 = vshll.u32 %v7226_v48, 16  ;;  %v6269_v4 = vld [vmem:[%s6589_s25 + $0x50] sm:$0x1]  ;;  %v6271_v22 = vld [vmem:[%s6589_s25 + $0x5c] sm:$0x1] }
  0xd9   : > { %5632 = vmatprep.mubr.msk.bf16.mxu1 %vm931_vm3, %v5139_v63  ;;  %v1503_v44 = vrot.slane %v6269_v4, 5  ;;  %v1510_v55 = vrot.slane %v6271_v22, 5  ;;  %v8719_v4 = vshrl.u32 %v7223_v40, 16  ;;  %v7552_v48 = vld [vmem:[%s7212_s8 + $0xb8] sm:$0xf] }
  0xda   : > { %5784 = vmatprep.mubr.msk.bf16.mxu0 %vm931_vm3, %v8718_v35  ;;  %v1507_v35 = vrot.slane %v6267_v45, 5  ;;  %v1502_v45 = vrot.slane %v1500_v51, 4  ;;  %v7526_v60 = vsel %vm6887_vm7, %v5128_v15, %v1500_v51  ;;  %v7533_v22 = vrot.slane %v3624_v42, 5  ;;  %v7555_v51 = vld [vmem:[%s7212_s8 + $0x8] sm:$0x1] }
  0xdb   : > { %v3617_v50 = vrot.slane %v8719_v4, 4  ;;  %v8722_v4 = vcombine.low %v7382_v20, %v7386_v16  ;;  %8724 = vst [vmem:[#allocation21_spill] sm:$0xff] %v7555_v51  ;;  %v1521_v20 = vrot.slane %v6899_v38, 5  ;;  %v3648_v16 = vshll.u32 %v7242_v53, 16  ;;  %v6277_v15 = vld [vmem:[%s6589_s25 + $0x74] sm:$0x1] }
  0xdc   : > { %v1509_v63 = vrot.slane %v1507_v35, 4  ;;  %v7549_v40 = vsel %vm6887_vm7, %v1502_v45, %v1503_v44  ;;  %v8725_v42 = vcombine.low %v7420_v39, %v7433_v23  ;;  %v7566_v5 = vsel %vm6887_vm7, %v5129_v30, %v1507_v35  ;;  %v6273_v44 = vld [vmem:[%s6589_s25 + $0x60] sm:$0xf]  ;;  %v6274_v39 = vld [vmem:[%s6589_s25 + $0x68] sm:$0x1] }
  0xdd   : > { %v5130_v45 = vrot.slane %v6273_v44, 9  ;;  %v8727_v38 = vshll.u32 %v7239_v10, 16  ;;  %v1516_v23 = vrot.slane %v1514_v31, 4  ;;  %v1517_v35 = vrot.slane %v6274_v39, 5  ;;  %v7593_v39 = vld [vmem:[%s7212_s8 + $0x14] sm:$0x1] }
  0xde   : > { %v7579_v30 = vsel %vm6887_vm7, %v1509_v63, %v1510_v55  ;;  %v1523_v63 = vrot.slane %v1521_v20, 4 }
  0xdf   : > { %v3644_v26 = vrot.slane %v8727_v38, 5  ;;  %v3634_v38 = vshll.u32 %v7555_v51, 16  ;;  %v1528_v51 = vrot.slane %v6922_v43, 5 }
  0xe0   : > { %5633 = vmatmul.mubr.msk.bf16.vlgmr.msra.gmra.mrb[0].mxu1 %vm931_vm3, %v8722_v4  ;;  %5785 = vmatmul.mubr.msk.bf16.gmra.mrb[16].mxu0 %vm931_vm3, %v8723_v52  ;;  %v8726_v4 = vshrl.u32 %v7239_v10, 16  ;;  %v6275_v10 = vld [vmem:[%s8674_s3 + $0x8] sm:$0x3] }
  0xe1   : > { %5665 = vmatpush3.bf16.msra.mxu1 %v7408_v19  ;;  %5636 = vmatprep.mubr.msk.bf16.mxu1 %vm931_vm3, %v8725_v42  ;;  %v8728_v19 = vcombine.low %v7390_v17, %v7400_v0  ;;  %v3621_v42 = vor.u32 %v3620_v28, %v3617_v50  ;;  %v1524_v17 = vrot.slane %v6277_v15, 5  ;;  %v7595_v50 = vrot.slane %v3648_v16, 5 }
  0xe2   : > { %v3641_v52 = vrot.slane %v8726_v4, 4  ;;  %6131 = vmatprep.subr.msk.bf16.mxu1 %vm980_vm0, %v6275_v10  ;;  %v3631_v4 = vor.u32 %v3630_v9, %v7533_v22  ;;  %v8729_v28 = vshrl.u32 %v7242_v53, 16  ;;  %v5145_v10 = vcombine.low %v7526_v60, %v7549_v40  ;;  %v6283_v9 = vld [vmem:[%s6589_s25 + $0x90] sm:$0xf] }
  0xe3   : > { %5788 = vmatprep.mubr.msk.bf16.mxu0 %vm931_vm3, %v8728_v19  ;;  %v6276_v19 = vld [vmem:[%s6589_s25 + $0x6c] sm:$0xf]  ;;  %v7610_v15 = vsel %vm6887_vm7, %v1516_v23, %v1517_v35  ;;  %v7612_v53 = vrot.slane %v3621_v42, 4  ;;  %v3672_v16 = vshll.u32 %v7248_v6, 16  ;;  %v7617_v40 = vrot.slane %v3634_v38, 5 }
  0xe4   : > { %v5131_v55 = vrot.slane %v6276_v19, 9  ;;  %v3654_v25 = vrot.slane %v8729_v28, 4  ;;  %v3645_v44 = vor.u32 %v3644_v26, %v3641_v52  ;;  %v7606_v19 = vsel %vm6887_vm7, %v5130_v45, %v1514_v31  ;;  %v6278_v38 = vld [vmem:[%s6589_s25 + $0x78] sm:$0xf] }
  0xe5   : > { %v7615_v60 = vrot.slane %v3631_v4, 4  ;;  %v3658_v31 = vshll.u32 %v7593_v39, 16  ;;  %v8730_v26 = vcombine.low %v7455_v18, %v7463_v27  ;;  %v8731_v45 = vcombine.low %v7426_v8, %v7429_v21 }
  0xe6   : > { %v7621_v43 = vsel %vm6887_vm7, %v5131_v55, %v1521_v20  ;;  %v7634_v52 = vsel %vm6887_vm7, %v1523_v63, %v1524_v17  ;;  %v3655_v20 = vor.u32 %v3654_v25, %v7595_v50  ;;  %v8732_v23 = vshrl.u32 %v7245_v61, 16  ;;  %v6279_v63 = vld [vmem:[%s6589_s25 + $0x80] sm:$0x1] }
  0xe7   : > { %v8733_v42 = vshll.u32 %v7245_v61, 16  ;;  %v8734_v27 = vcombine.low %v7467_v29, %v7485_v57  ;;  %v8735_v18 = vcombine.low %v7438_v54, %v7443_v2  ;;  %v3646_v17 = vrot.slane %v3645_v44, 4  ;;  %v7729_v61 = vld [vmem:[%s7212_s8 + $0x38] sm:$0x1] }
  0xe8   : > { %5637 = vmatmul.mubr.msk.bf16.gmra.mrb[4].mxu1 %vm931_vm3, %v8730_v26  ;;  %5789 = vmatmul.mubr.msk.bf16.gmra.mrb[20].mxu0 %vm931_vm3, %v8731_v45  ;;  %v3665_v35 = vrot.slane %v8732_v23, 4  ;;  %v5132_v55 = vrot.slane %v6278_v38, 9  ;;  %v1530_v25 = vrot.slane %v1528_v51, 4  ;;  %v1531_v28 = vrot.slane %v6279_v63, 5  ;;  %v7652_v26 = vld [vmem:[%s7212_s8 + $0x20] sm:$0x1] }
  0xe9   : > { %v3668_v4 = vrot.slane %v8733_v42, 5  ;;  %5640 = vmatprep.mubr.msk.bf16.mxu1 %vm931_vm3, %v8734_v27  ;;  %5792 = vmatprep.mubr.msk.bf16.mxu0 %vm931_vm3, %v8735_v18  ;;  %8736 = vst [vmem:[#allocation22_spill] sm:$0xff] %v7652_v26  ;;  %v3627_v29 = vsel %vm6621_vm4, %v7612_v53, %v7533_v22  ;;  %v7660_v57 = vrot.slane %v3672_v16, 5  ;;  %v8737_v44 = vshrl.u32 %v7248_v6, 16 }
  0xea   : > { %v3637_v23 = vsel %vm6621_vm4, %v7615_v60, %v7617_v40  ;;  %v7672_v27 = vsel %vm980_vm0, %v7263_v41, 0  ;;  %v3696_v22 = vshll.u32 %v7272_v58, 16  ;;  %v3656_v53 = vrot.slane %v3655_v20, 4 }
  0xeb   : > { %v3678_v45 = vrot.slane %v8737_v44, 4  ;;  %v3660_v16 = vrot.slane %v3658_v31, 5  ;;  %v3669_v6 = vor.u32 %v3668_v4, %v3665_v35  ;;  %v3682_v18 = vshll.u32 %v7652_v26, 16  ;;  %v6280_v31 = vld [vmem:[%s6589_s25 + $0x88] sm:$0xf] }
  0xec   : > { %v3651_v60 = vsel %vm6621_vm4, %v3646_v17, %v7595_v50  ;;  %v7681_v40 = vsel %vm6887_vm7, %v5132_v55, %v1528_v51  ;;  %v7685_v41 = vsel %vm6887_vm7, %v1530_v25, %v1531_v28  ;;  %v3720_v38 = vshll.u32 %v7279_v13, 16  ;;  %v6281_v44 = vld [vmem:[%s6589_s25 + $0x84] sm:$0xf]  ;;  %v7696_v55 = vld [vmem:[%s7212_s8 + $0x2c] sm:$0x1] }
  0xed   : > { %v3679_v20 = vor.u32 %v3678_v45, %v7660_v57  ;;  %v1535_v35 = vrot.slane %v6280_v31, 5  ;;  %v8738_v4 = vshrl.u32 %v7269_v49, 16  ;;  %v8739_v50 = vshll.u32 %v7269_v49, 16 }
  0xee   : > { %v5133_v51 = vrot.slane %v6281_v44, 9  ;;  %v7698_v42 = vrot.slane %v3696_v22, 5  ;;  %v8740_v25 = vshrl.u32 %v7272_v58, 16  ;;  %v1542_v45 = vrot.slane %v6981_v11, 5 }
  0xef   : > { %v3689_v63 = vrot.slane %v8738_v4, 4  ;;  %v3692_v17 = vrot.slane %v8739_v50, 5  ;;  %v8741_v31 = vcombine.low %v7511_v37, %v7515_v47  ;;  %v8742_v49 = vcombine.low %v7472_v14, %v7475_v3  ;;  %v6282_v50 = vld [vmem:[%s6589_s25 + $0x8c] sm:$0x1] }
  0xf0   : > { %v3702_v28 = vrot.slane %v8740_v25, 4  ;;  %v3661_v22 = vsel %vm6621_vm4, %v3656_v53, %v3660_v16  ;;  %v3670_v4 = vrot.slane %v3669_v6, 4  ;;  %v3684_v58 = vrot.slane %v3682_v18, 5 }
  0xf1   : > { %5641 = vmatmul.mubr.msk.bf16.gmra.mrb[8].mxu1 %vm931_vm3, %v8741_v31  ;;  %5793 = vmatmul.mubr.msk.bf16.gmra.mrb[24].mxu0 %vm931_vm3, %v8742_v49  ;;  %v1538_v44 = vrot.slane %v6282_v50, 5  ;;  %v8743_v11 = vcombine.low %v7499_v56, %v7507_v34  ;;  %v8744_v37 = vshrl.u32 %v7276_v46, 16  ;;  %v8745_v25 = vshll.u32 %v7276_v46, 16 }
  0xf2   : > { %5644 = vmatprep.mubr.msk.bf16.mxu1 %vm931_vm3, %v5145_v10  ;;  %v7723_v49 = vrot.slane %v3720_v38, 5  ;;  %v8746_v53 = vshrl.u32 %v7279_v13, 16  ;;  %v3680_v6 = vrot.slane %v3679_v20, 4  ;;  %v1537_v18 = vrot.slane %v1535_v35, 4 }
  0xf3   : > { %5796 = vmatprep.mubr.msk.bf16.mxu0 %vm931_vm3, %v8743_v11  ;;  %v3713_v47 = vrot.slane %v8744_v37, 4  ;;  %v3716_v31 = vrot.slane %v8745_v25, 5  ;;  %v3693_v50 = vor.u32 %v3692_v17, %v3689_v63  ;;  %v3706_v10 = vshll.u32 %v7696_v55, 16 }
  0xf4   : > { %v3726_v16 = vrot.slane %v8746_v53, 4  ;;  %v3703_v11 = vor.u32 %v3702_v28, %v7698_v42  ;;  %v5134_v26 = vrot.slane %v6283_v9, 9  ;;  %v1544_v37 = vrot.slane %v1542_v45, 4 }
  0xf5   : > { %v1545_v46 = vrot.slane %v6989_v62, 5  ;;  %v5320_v25 = vcombine.low %v3627_v29, %v3637_v23  ;;  %v5321_v38 = vcombine.low %v3651_v60, %v3661_v22  ;;  %v5149_v13 = vcombine.low %v7681_v40, %v7685_v41 }
  0xf6   : > { %v3744_v20 = vshll.u32 %v7307_v7, 16  ;;  %v7739_v63 = vsel %vm6887_vm7, %v5133_v51, %v1535_v35  ;;  %v3717_v17 = vor.u32 %v3716_v31, %v3713_v47  ;;  %v3727_v28 = vor.u32 %v3726_v16, %v7723_v49 }
  0xf7   : > { %v3730_v9 = vshll.u32 %v7729_v61, 16  ;;  %v3675_v62 = vsel %vm6621_vm4, %v3670_v4, %v7660_v57  ;;  %v3685_v29 = vsel %vm6621_vm4, %v3680_v6, %v3684_v58  ;;  %v7750_v23 = vsel %vm6887_vm7, %v1537_v18, %v1538_v44  ;;  %v7769_v4 = vld [vmem:[%s7212_s8 + $0x44] sm:$0x1]  ;;  %v6284_v18 = vld [vmem:[%s6589_s25 + $0xa0] sm:$0xf] }
  0xf8   : > { %v3694_v60 = vrot.slane %v3693_v50, 4  ;;  %v3704_v40 = vrot.slane %v3703_v11, 4  ;;  %v3708_v41 = vrot.slane %v3706_v10, 5  ;;  %v7754_v35 = vsel %vm6887_vm7, %v5134_v26, %v1542_v45 }
  0xf9   : > { %v7758_v51 = vsel %vm6887_vm7, %v1544_v37, %v1545_v46  ;;  %v8747_v57 = vcombine.low %v7566_v5, %v7579_v30  ;;  %v8748_v22 = vcombine.low %v7531_v59, %v7552_v48  ;;  %v8749_v58 = vshrl.u32 %v7304_v24, 16  ;;  %v6285_v37 = vld [vmem:[%s6589_s25 + $0x9c] sm:$0xf] }
  0xfa   : > { %v8750_v45 = vshll.u32 %v7304_v24, 16  ;;  %v7775_v47 = vrot.slane %v3744_v20, 5  ;;  %v8751_v5 = vshrl.u32 %v7307_v7, 16  ;;  %v8752_v31 = vcombine.low %v7606_v19, %v7610_v15  ;;  %v6286_v20 = vld [vmem:[%s6589_s25 + $0xa4] sm:$0x1]  ;;  %s8541_s25 = sand.u32 1, %s6453_s19  }
  0xfb   : > { %5645 = vmatmul.mubr.msk.bf16.gmra.mrb[12].mxu1 %vm931_vm3, %v8747_v57  ;;  %5797 = vmatmul.mubr.msk.bf16.gmra.mrb[28].mxu0 %vm931_vm3, %v8748_v22  ;;  %v3737_v26 = vrot.slane %v8749_v58, 4  ;;  %v3718_v53 = vrot.slane %v3717_v17, 4  ;;  %v3728_v16 = vrot.slane %v3727_v28, 4  ;;  %v3732_v6 = vrot.slane %v3730_v9, 5  ;;  %v8754_v57 = vld [vmem:[#allocation14_spill] sm:$0xff]  ;;  %s4855_s27 = scalar_lea.sflag [#allocation3], %s8541_s25 }
  0xfc   : > { %v3740_v44 = vrot.slane %v8750_v45, 5  ;;  %v3750_v30 = vrot.slane %v8751_v5, 4  ;;  %5648 = vmatprep.mubr.msk.bf16.mxu1 %vm931_vm3, %v8752_v31  ;;  %5802 = vmatprep.mubr.msk.bf16.mxu0 %vm931_vm3, %v5320_v25  ;;  %v1549_v24 = vrot.slane %v6284_v18, 5  ;;  %v5322_v50 = vcombine.low %v3675_v62, %v3685_v29 }
  0xfd   : > { %v5150_v10 = vcombine.low %v7739_v63, %v7750_v23  ;;  %v3699_v7 = vsel %vm6621_vm4, %v3694_v60, %v7698_v42  ;;  %v3768_v19 = vshll.u32 %v7321_v36, 16  ;;  %v3709_v15 = vsel %vm6621_vm4, %v3704_v40, %v3708_v41  ;;  %v8753_v40 = vld [vmem:[#allocation9_spill] sm:$0xff] }
  0xfe   : > { %v5151_v11 = vcombine.low %v7754_v35, %v7758_v51  ;;  %v5135_v46 = vrot.slane %v6285_v37, 9  ;;  %v3754_v25 = vshll.u32 %v7769_v4, 16  ;;  %v1552_v17 = vrot.slane %v6286_v20, 5 }
  0xff   : > { %v3741_v28 = vor.u32 %v3740_v44, %v3737_v26  ;;  %v3751_v9 = vor.u32 %v3750_v30, %v7775_v47  ;;  %v1556_v42 = vrot.slane %v7032_v1, 5  ;;  %v3723_v62 = vsel %vm6621_vm4, %v3718_v53, %v7723_v49  ;;  %v7819_v53 = vld [vmem:[%s7212_s8 + $0x50] sm:$0x1] }
 0x100   : > { %v3733_v29 = vsel %vm6621_vm4, %v3728_v16, %v3732_v6  ;;  %v1551_v60 = vrot.slane %v1549_v24, 4  ;;  %v5136_v41 = vrot.slane %v8753_v40, 9  ;;  %v8755_v22 = vshrl.u32 %v8754_v57, 16  ;;  %v8758_v16 = vld [vmem:[#allocation16_spill] sm:$0xff] }
 0x101   : > { %v8756_v45 = vshll.u32 %v8754_v57, 16  ;;  %v7810_v44 = vrot.slane %v3768_v19, 5  ;;  %v8757_v1 = vshrl.u32 %v7321_v36, 16  ;;  %v5323_v30 = vcombine.low %v3699_v7, %v3709_v15  ;;  %v8760_v7 = vld [vmem:[#allocation10_spill] sm:$0xff] }
 0x102   : > { %v3761_v58 = vrot.slane %v8755_v22, 4  ;;  %v7816_v49 = vsel %vm6887_vm7, %v5135_v46, %v1549_v24  ;;  %v3756_v31 = vrot.slane %v3754_v25, 5  ;;  %v3792_v6 = vshll.u32 %v8758_v16, 16 }
 0x103   : > { %v3764_v26 = vrot.slane %v8756_v45, 5  ;;  %v3774_v5 = vrot.slane %v8757_v1, 4  ;;  %v8759_v18 = vcombine.low %v7621_v43, %v7634_v52  ;;  %5803 = vmatmul.mubr.msk.bf16.vlgmr.msra.gmra.mrb[0].mxu0 %vm931_vm3, %v5321_v38  ;;  %v3742_v19 = vrot.slane %v3741_v28, 4  ;;  %v8761_v52 = vld [vmem:[#allocation18_spill] sm:$0xff]  ;;  %v8768_v1 = vld [vmem:[#allocation17_spill] sm:$0xff] }
 0x104   : > { %v3752_v36 = vrot.slane %v3751_v9, 4  ;;  %v1558_v37 = vrot.slane %v1556_v42, 4  ;;  %v1559_v15 = vrot.slane %v8760_v7, 5  ;;  %5835 = vmatpush3.bf16.msra.mxu0 %v7672_v27  ;;  %v5324_v24 = vcombine.low %v3723_v62, %v3733_v29  ;;  %5806 = vmatprep.mubr.msk.bf16.mxu0 %vm931_vm3, %v5322_v50  ;;  %v8763_v9 = vld [vmem:[#allocation15_spill] sm:$0xff] }
 0x105   : > { %5649 = vmatmul.mubr.msk.bf16.gmra.mrb[16].mxu1 %vm931_vm3, %v8759_v18  ;;  %v7832_v46 = vsel %vm6887_vm7, %v1551_v60, %v1552_v17  ;;  %v7836_v43 = vsel %vm6887_vm7, %v5136_v41, %v1556_v42  ;;  %v3816_v38 = vshll.u32 %v8761_v52, 16  ;;  %v3765_v25 = vor.u32 %v3764_v26, %v3761_v58  ;;  %v8767_v58 = vld [vmem:[#allocation11_spill] sm:$0xff] }
 0x106   : > { %5652 = vmatprep.mubr.msk.bf16.mxu1 %vm931_vm3, %v5149_v13  ;;  %v3775_v20 = vor.u32 %v3774_v5, %v7810_v44  ;;  %v3778_v27 = vshll.u32 %v7819_v53, 16  ;;  %v8762_v13 = vld [vmem:[#allocation12_spill] sm:$0xff]  ;;  %v8764_v62 = vshrl.u32 %v8763_v9, 16  ;;  %v8765_v29 = vshll.u32 %v8763_v9, 16  ;;  %v7862_v26 = vld [vmem:[%s7212_s8 + $0x5c] sm:$0x1] }
 0x107   : > { %v1563_v28 = vrot.slane %v8762_v13, 5  ;;  %v7847_v42 = vrot.slane %v3792_v6, 5  ;;  %v8766_v40 = vshrl.u32 %v8758_v16, 16  ;;  %v3747_v50 = vsel %vm6621_vm4, %v3742_v19, %v7775_v47  ;;  %v7874_v9 = vld [vmem:[%s7212_s8 + $0x68] sm:$0x1] }
 0x108   : > { %v3785_v17 = vrot.slane %v8764_v62, 4  ;;  %v3788_v60 = vrot.slane %v8765_v29, 5  ;;  %v3757_v57 = vsel %vm6621_vm4, %v3752_v36, %v3756_v31  ;;  %v7858_v22 = vsel %vm6887_vm7, %v1558_v37, %v1559_v15  ;;  %v8772_v37 = vld [vmem:[#allocation13_spill] sm:$0xff] }
 0x109   : > { %v3798_v41 = vrot.slane %v8766_v40, 4  ;;  %v5137_v45 = vrot.slane %v8767_v58, 9  ;;  %v8769_v5 = vshrl.u32 %v8768_v1, 16  ;;  %v8770_v16 = vshll.u32 %v8768_v1, 16 }
 0x10a   : > { %v7868_v7 = vrot.slane %v3816_v38, 5  ;;  %v8771_v47 = vshrl.u32 %v8761_v52, 16  ;;  %v3766_v31 = vrot.slane %v3765_v25, 4  ;;  %v3776_v36 = vrot.slane %v3775_v20, 4 }
 0x10b   : > { %v3809_v6 = vrot.slane %v8769_v5, 4  ;;  %v3812_v18 = vrot.slane %v8770_v16, 5  ;;  %v3780_v13 = vrot.slane %v3778_v27, 5  ;;  %v1566_v15 = vrot.slane %v8772_v37, 5  ;;  %5807 = vmatmul.mubr.msk.bf16.gmra.mrb[4].mxu0 %vm931_vm3, %v5323_v30  ;;  %v8773_v27 = vld [vmem:[#allocation19_spill] sm:$0xff] }
 0x10c   : > { %v3822_v19 = vrot.slane %v8771_v47, 4  ;;  %v1565_v62 = vrot.slane %v1563_v28, 4  ;;  %v3789_v29 = vor.u32 %v3788_v60, %v3785_v17  ;;  %v3799_v40 = vor.u32 %v3798_v41, %v7847_v42  ;;  %5810 = vmatprep.mubr.msk.bf16.mxu0 %vm931_vm3, %v5324_v24  ;;  %v7919_v16 = vld [vmem:[%s7212_s8 + $0x74] sm:$0x1] }
 0x10d   : > { %v3802_v58 = vshll.u32 %v7862_v26, 16  ;;  %v3930_v1 = vshll.u32 %v7472_v14, 16  ;;  %5653 = vmatmul.mubr.msk.bf16.gmra.mrb[20].mxu1 %vm931_vm3, %v5150_v10  ;;  %v5152_v52 = vcombine.low %v7816_v49, %v7832_v46  ;;  %v5153_v38 = vcombine.low %v7836_v43, %v7858_v22 }
 0x10e   : > { %v3840_v25 = vshll.u32 %v7376_v33, 16  ;;  %5656 = vmatprep.mubr.msk.bf16.mxu1 %vm931_vm3, %v5151_v11  ;;  %v5325_v63 = vcombine.low %v3747_v50, %v3757_v57  ;;  %v3813_v23 = vor.u32 %v3812_v18, %v3809_v6  ;;  %v3823_v10 = vor.u32 %v3822_v19, %v7868_v7  ;;  %v8777_v18 = vld [vmem:[#allocation20_spill] sm:$0xff] }
 0x10f   : > { %v3826_v30 = vshll.u32 %v7874_v9, 16  ;;  %v3771_v49 = vsel %vm6621_vm4, %v3766_v31, %v7810_v44  ;;  %v3781_v46 = vsel %vm6621_vm4, %v3776_v36, %v3780_v13  ;;  %v7903_v35 = vsel %vm6887_vm7, %v5137_v45, %v1563_v28 }
 0x110   : > { %v3864_v51 = vshll.u32 %v7400_v0, 16  ;;  %v7908_v11 = vsel %vm6887_vm7, %v1565_v62, %v1566_v15  ;;  %v3790_v24 = vrot.slane %v3789_v29, 4  ;;  %v3800_v43 = vrot.slane %v3799_v40, 4  ;;  %v7936_v40 = vld [vmem:[%s7212_s8 + $0x80] sm:$0x1] }
 0x111   : > { %v3804_v20 = vrot.slane %v3802_v58, 5  ;;  %v8774_v17 = vshrl.u32 %v8773_v27, 16  ;;  %v8775_v60 = vshll.u32 %v8773_v27, 16  ;;  %v7914_v50 = vrot.slane %v3840_v25, 5  ;;  %v6287_v25 = vld [vmem:[%s6595_s7] sm:$0xf] }
 0x112   : > { %v8776_v28 = vshrl.u32 %v7376_v33, 16  ;;  %v5326_v22 = vcombine.low %v3771_v49, %v3781_v46  ;;  %v3814_v45 = vrot.slane %v3813_v23, 4  ;;  %v3824_v5 = vrot.slane %v3823_v10, 4 }
 0x113   : > { %v3833_v44 = vrot.slane %v8774_v17, 4  ;;  %v3836_v41 = vrot.slane %v8775_v60, 5  ;;  %v3828_v6 = vrot.slane %v3826_v30, 5  ;;  %v8778_v47 = vshrl.u32 %v8777_v18, 16  ;;  %5811 = vmatmul.mubr.msk.bf16.gmra.mrb[8].mxu0 %vm931_vm3, %v5325_v63 }
 0x114   : > { %v3846_v57 = vrot.slane %v8776_v28, 4  ;;  %v8779_v31 = vshll.u32 %v8777_v18, 16  ;;  %v7925_v13 = vrot.slane %v3864_v51, 5  ;;  %v8780_v37 = vshrl.u32 %v7400_v0, 16  ;;  %v6288_v0 = vld [vmem:[%s6595_s7 + $0x4] sm:$0xf]  ;;  %5814 = vmatprep.mubr.msk.bf16.mxu0 %vm931_vm3, %v5326_v22 }
 0x115   : > { %v3857_v19 = vrot.slane %v8778_v47, 4  ;;  %v3940_v15 = vshrl.u32 %v7475_v3, 16  ;;  %v3795_v62 = vsel %vm6621_vm4, %v3790_v24, %v7847_v42  ;;  %v3805_v29 = vsel %vm6621_vm4, %v3800_v43, %v3804_v20  ;;  %5657 = vmatmul.mubr.msk.bf16.gmra.mrb[24].mxu1 %vm931_vm3, %v5152_v52  ;;  %v7966_v22 = vld [vmem:[%s7212_s8 + $0x8c] sm:$0x1] }
 0x116   : > { %v3860_v36 = vrot.slane %v8779_v31, 5  ;;  %v3870_v33 = vrot.slane %v8780_v37, 4  ;;  %v3888_v58 = vshll.u32 %v7429_v21, 16  ;;  %v5172_v23 = vcombine.low %v6287_v25, %v6288_v0  ;;  %5660 = vmatprep.mubr.msk.bf16.mxu1 %vm931_vm3, %v5153_v38 }
 0x117   : > { %v3837_v10 = vor.u32 %v3836_v41, %v3833_v44  ;;  %v3847_v30 = vor.u32 %v3846_v57, %v7914_v50  ;;  %v3850_v49 = vshll.u32 %v7919_v16, 16  ;;  %v5154_v42 = vcombine.low %v7903_v35, %v7908_v11 }
 0x118   : > { %v3819_v52 = vsel %vm6621_vm4, %v3814_v45, %v7868_v7  ;;  %v3829_v63 = vsel %vm6621_vm4, %v3824_v5, %v3828_v6  ;;  %v3912_v46 = vshll.u32 %v7443_v2, 16  ;;  %v5327_v51 = vcombine.low %v3795_v62, %v3805_v29 }
 0x119   : > { %v3861_v24 = vor.u32 %v3860_v36, %v3857_v19  ;;  %v3871_v43 = vor.u32 %v3870_v33, %v7925_v13  ;;  %v3874_v38 = vshll.u32 %v7936_v40, 16  ;;  %v8781_v20 = vshrl.u32 %v7426_v8, 16  ;;  %v7978_v33 = vld [vmem:[%s7212_s8 + $0x98] sm:$0x1] }
 0x11a   : > { %v8782_v35 = vshll.u32 %v7426_v8, 16  ;;  %v7961_v17 = vrot.slane %v3888_v58, 5  ;;  %v8783_v7 = vshrl.u32 %v7429_v21, 16  ;;  %v5328_v60 = vcombine.low %v3819_v52, %v3829_v63 }
 0x11b   : > { %v3881_v27 = vrot.slane %v8781_v20, 4  ;;  %v3838_v41 = vrot.slane %v3837_v10, 4  ;;  %v3848_v28 = vrot.slane %v3847_v30, 4  ;;  %v3852_v57 = vrot.slane %v3850_v49, 5  ;;  %5815 = vmatmul.mubr.msk.bf16.gmra.mrb[12].mxu0 %vm931_vm3, %v5327_v51  ;;  %v6289_v10 = vld [vmem:[%s6595_s7 + $0xc] sm:$0xf] }
 0x11c   : > { %v3884_v11 = vrot.slane %v8782_v35, 5  ;;  %v3894_v44 = vrot.slane %v8783_v7, 4  ;;  %v8784_v45 = vshrl.u32 %v7438_v54, 16  ;;  %v8785_v6 = vshll.u32 %v7438_v54, 16  ;;  %5818 = vmatprep.mubr.msk.bf16.mxu0 %vm931_vm3, %v5328_v60  ;;  %v6290_v30 = vld [vmem:[%s6595_s7 + $0x10] sm:$0xf] }
 0x11d   : > { %v7972_v8 = vrot.slane %v3912_v46, 5  ;;  %v8786_v47 = vshrl.u32 %v7443_v2, 16  ;;  %v3951_v21 = vshrl.u32 %v7499_v56, 16  ;;  %v3862_v31 = vrot.slane %v3861_v24, 4  ;;  %5661 = vmatmul.mubr.msk.bf16.gmra.mrb[28].mxu1 %vm931_vm3, %v5154_v42  ;;  %v6291_v46 = vld [vmem:[%s6595_s7 + $0x18] sm:$0xf] }
 0x11e   : > { %v3905_v5 = vrot.slane %v8784_v45, 4  ;;  %v3908_v18 = vrot.slane %v8785_v6, 5  ;;  %v3872_v36 = vrot.slane %v3871_v43, 4  ;;  %v3876_v37 = vrot.slane %v3874_v38, 5  ;;  %5666 = vmatprep.mubr.msk.bf16.mxu1 %vm931_vm3, %v5172_v23 }
 0x11f   : > { %v3918_v19 = vrot.slane %v8786_v47, 4  ;;  %v3954_v62 = vshll.u32 %v7499_v56, 16  ;;  %v3885_v29 = vor.u32 %v3884_v11, %v3881_v27  ;;  %v3895_v54 = vor.u32 %v3894_v44, %v7961_v17  ;;  %v8007_v11 = vld [vmem:[%s7212_s8 + $0xa4] sm:$0x1] }
 0x120   : > { %v3898_v58 = vshll.u32 %v7966_v22, 16  ;;  %v3964_v2 = vshrl.u32 %v7507_v34, 16  ;;  %v3843_v25 = vsel %vm6621_vm4, %v3838_v41, %v7914_v50  ;;  %v3853_v56 = vsel %vm6621_vm4, %v3848_v28, %v3852_v57  ;;  %v6292_v50 = vld [vmem:[%s6595_s7 + $0x1c] sm:$0xf] }
 0x121   : > { %v3936_v0 = vshll.u32 %v7475_v3, 16  ;;  %v5173_v49 = vcombine.low %v6289_v10, %v6290_v30  ;;  %v3909_v42 = vor.u32 %v3908_v18, %v3905_v5  ;;  %v3919_v52 = vor.u32 %v3918_v19, %v7972_v8 }
 0x122   : > { %v3922_v63 = vshll.u32 %v7978_v33, 16  ;;  %v5174_v51 = vcombine.low %v6291_v46, %v6292_v50  ;;  %v3867_v24 = vsel %vm6621_vm4, %v3862_v31, %v7925_v13  ;;  %v3877_v23 = vsel %vm6621_vm4, %v3872_v36, %v3876_v37  ;;  %v8025_v31 = vld [vmem:[%s7212_s8 + $0xb0] sm:$0x1]  ;;  %v8788_v37 = vld [vmem:[#allocation8_spill] sm:$0xff] }
 0x123   : > { %v3960_v43 = vshll.u32 %v7507_v34, 16  ;;  %v5329_v38 = vcombine.low %v3843_v25, %v3853_v56  ;;  %v3886_v20 = vrot.slane %v3885_v29, 4  ;;  %v3896_v27 = vrot.slane %v3895_v54, 4  ;;  %v6293_v25 = vld [vmem:[%s6595_s7 + $0x24] sm:$0xf] }
 0x124   : > { %v3900_v35 = vrot.slane %v3898_v58, 5  ;;  %v8787_v7 = vshrl.u32 %v7472_v14, 16  ;;  %v3932_v60 = vrot.slane %v3930_v1, 5  ;;  %v8013_v41 = vrot.slane %v3936_v0, 5  ;;  %v6294_v56 = vld [vmem:[%s6595_s7 + $0x28] sm:$0xf] }
 0x125   : > { %v3942_v13 = vrot.slane %v3940_v15, 4  ;;  %v5330_v28 = vcombine.low %v3867_v24, %v3877_v23  ;;  %v3910_v34 = vrot.slane %v3909_v42, 4  ;;  %v3920_v57 = vrot.slane %v3919_v52, 4  ;;  %5667 = vmatmul.mubr.msk.bf16.vlgmr.msra.gmra.mrb[0].mxu1 %vm931_vm3, %v5173_v49  ;;  %5819 = vmatmul.mubr.msk.bf16.gmra.mrb[16].mxu0 %vm931_vm3, %v5329_v38  ;;  %v6295_v52 = vld [vmem:[%s6595_s7 + $0x30] sm:$0xf] }
 0x126   : > { %v3929_v44 = vrot.slane %v8787_v7, 4  ;;  %v3924_v45 = vrot.slane %v3922_v63, 5  ;;  %v3953_v5 = vrot.slane %v3951_v21, 4  ;;  %v3956_v6 = vrot.slane %v3954_v62, 5  ;;  %5869 = vmatpush3.bf16.msra.mxu1 %v8788_v37  ;;  %5670 = vmatprep.mubr.msk.bf16.mxu1 %vm931_vm3, %v5174_v51  ;;  %v6296_v63 = vld [vmem:[%s6595_s7 + $0x34] sm:$0xf] }
 0x127   : > { %v8017_v18 = vrot.slane %v3960_v43, 5  ;;  %v3966_v47 = vrot.slane %v3964_v2, 4  ;;  %v3975_v19 = vshrl.u32 %v7531_v59, 16  ;;  %v3891_v14 = vsel %vm6621_vm4, %v3886_v20, %v7961_v17  ;;  %5822 = vmatprep.mubr.msk.bf16.mxu0 %vm931_vm3, %v5330_v28  ;;  %v8052_v20 = vld [vmem:[%s7212_s8 + $0xbc] sm:$0x1] }
 0x128   : > { %v3946_v1 = vshll.u32 %v8007_v11, 16  ;;  %v3978_v3 = vshll.u32 %v7531_v59, 16  ;;  %v3901_v15 = vsel %vm6621_vm4, %v3896_v27, %v3900_v35  ;;  %v3933_v21 = vor.u32 %v3932_v60, %v3929_v44  ;;  %v6297_v44 = vld [vmem:[%s7212_s8 + $0x4] sm:$0xf] }
 0x129   : > { %v3943_v36 = vor.u32 %v3942_v13, %v8013_v41  ;;  %v3988_v17 = vshrl.u32 %v7552_v48, 16  ;;  %v3915_v59 = vsel %vm6621_vm4, %v3910_v34, %v7972_v8  ;;  %v3984_v62 = vshll.u32 %v7552_v48, 16  ;;  %v8063_v13 = vld [vmem:[%s6595_s7 + $0x6c] sm:$0xf] }
 0x12a   : > { %v3925_v29 = vsel %vm6621_vm4, %v3920_v57, %v3924_v45  ;;  %v3957_v54 = vor.u32 %v3956_v6, %v3953_v5  ;;  %v3967_v58 = vor.u32 %v3966_v47, %v8017_v18  ;;  %v3970_v2 = vshll.u32 %v8025_v31, 16  ;;  %v8072_v45 = vld [vmem:[%s6595_s7 + $0x70] sm:$0xf] }
 0x12b   : > { %v5175_v0 = vcombine.low %v6293_v25, %v6294_v56  ;;  %v5331_v10 = vcombine.low %v3891_v14, %v3901_v15  ;;  %v3948_v8 = vrot.slane %v3946_v1, 5  ;;  %v3934_v30 = vrot.slane %v3933_v21, 4  ;;  %v6301_v14 = vld [vmem:[%s6595_s7 + $0x40] sm:$0xf]  ;;  %v6302_v15 = vld [vmem:[%s6595_s7 + $0x48] sm:$0xf] }
 0x12c   : > { %v3944_v49 = vrot.slane %v3943_v36, 4  ;;  %v3977_v48 = vrot.slane %v3975_v19, 4  ;;  %v3980_v42 = vrot.slane %v3978_v3, 5  ;;  %v5176_v46 = vcombine.low %v6295_v52, %v6296_v63  ;;  %v6300_v19 = vld [vmem:[%s6595_s7 + $0x3c] sm:$0xf] }
 0x12d   : > { %v5332_v50 = vcombine.low %v3915_v59, %v3925_v29  ;;  %v8049_v51 = vrot.slane %v3984_v62, 5  ;;  %v3990_v24 = vrot.slane %v3988_v17, 4  ;;  %v3958_v23 = vrot.slane %v3957_v54, 4  ;;  %5671 = vmatmul.mubr.msk.bf16.gmra.mrb[4].mxu1 %vm931_vm3, %v5175_v0  ;;  %5823 = vmatmul.mubr.msk.bf16.gmra.mrb[20].mxu0 %vm931_vm3, %v5331_v10  ;;  %v6303_v21 = vld [vmem:[%s6595_s7 + $0x4c] sm:$0xf] }
 0x12e   : > { %v3968_v43 = vrot.slane %v3967_v58, 4  ;;  %v3972_v38 = vrot.slane %v3970_v2, 5  ;;  %v3939_v27 = vsel %vm6621_vm4, %v3934_v30, %v8013_v41  ;;  %v3949_v35 = vsel %vm6621_vm4, %v3944_v49, %v3948_v8  ;;  %5674 = vmatprep.mubr.msk.bf16.mxu1 %vm931_vm3, %v5176_v46  ;;  %v6304_v17 = vld [vmem:[%s7212_s8 + $0x10] sm:$0xf]  ;;  %v6305_v62 = vld [vmem:[%s7212_s8] sm:$0xf] }
 0x12f   : > { %v3981_v7 = vor.u32 %v3980_v42, %v3977_v48  ;;  %v4310_v60 = vrot.slane %v6297_v44, 5  ;;  %v2405_v28 = vshrl.u32 %v8063_v13, 16  ;;  %5826 = vmatprep.mubr.msk.bf16.mxu0 %vm931_vm3, %v5332_v50  ;;  %v3991_v41 = vor.u32 %v3990_v24, %v8049_v51  ;;  %v8789_v58 = vld [vmem:[#allocation21_spill] sm:$0xff]  ;;  %v6306_v0 = vld [vmem:[%s7212_s8 + $0x1c] sm:$0xf] }
 0x130   : > { %v3994_v34 = vshll.u32 %v8052_v20, 16  ;;  %v2408_v57 = vshll.u32 %v8063_v13, 16  ;;  %v2414_v5 = vshll.u32 %v8072_v45, 16  ;;  %v3963_v6 = vsel %vm6621_vm4, %v3958_v23, %v8017_v18  ;;  %v6307_v42 = vld [vmem:[%s7212_s8 + $0xc] sm:$0xf] }
 0x131   : > { %v3973_v47 = vsel %vm6621_vm4, %v3968_v43, %v3972_v38  ;;  %v5177_v1 = vcombine.low %v6300_v19, %v6301_v14  ;;  %v5333_v3 = vcombine.low %v3939_v27, %v3949_v35  ;;  %v5178_v36 = vcombine.low %v6302_v15, %v6303_v21  ;;  %v6308_v43 = vld [vmem:[%s7212_s8 + $0x18] sm:$0xf]  ;;  %v8140_v21 = vld [vmem:[%s6595_s7 + $0x7c] sm:$0xf] }
 0x132   : > { %v4317_v37 = vrot.slane %v6304_v17, 5  ;;  %v3982_v59 = vrot.slane %v3981_v7, 4  ;;  %v5352_v29 = vrot.slane %v6305_v62, 9  ;;  %v4312_v54 = vrot.slane %v4310_v60, 4  ;;  %v6309_v7 = vld [vmem:[%s7212_s8 + $0x28] sm:$0xf] }
 0x133   : > { %v4313_v18 = vrot.slane %v8789_v58, 5  ;;  %v5334_v2 = vcombine.low %v3963_v6, %v3973_v47  ;;  %v3992_v25 = vrot.slane %v3991_v41, 4  ;;  %v3996_v56 = vrot.slane %v3994_v34, 5  ;;  %v6311_v34 = vld [vmem:[%s6595_s7 + $0x54] sm:$0xf] }
 0x134   : > { %v4324_v10 = vrot.slane %v6306_v0, 5  ;;  %v8088_v8 = vrot.slane %v2405_v28, 4  ;;  %v8090_v30 = vrot.slane %v2408_v57, 5  ;;  %v2418_v49 = vshrl.u32 %v8072_v45, 16  ;;  %v8116_v28 = vld [vmem:[%s6595_s7 + $0x74] sm:$0x1] }
 0x135   : > { %v8093_v48 = vrot.slane %v2414_v5, 5  ;;  %v5353_v52 = vrot.slane %v6307_v42, 9  ;;  %v4319_v63 = vrot.slane %v4317_v37, 4  ;;  %v4320_v46 = vrot.slane %v7593_v39, 5  ;;  %5675 = vmatmul.mubr.msk.bf16.gmra.mrb[8].mxu1 %vm931_vm3, %v5177_v1  ;;  %5827 = vmatmul.mubr.msk.bf16.gmra.mrb[24].mxu0 %vm931_vm3, %v5333_v3  ;;  %v6312_v57 = vld [vmem:[%s6595_s7 + $0x58] sm:$0xf] }
 0x136   : > { %v3987_v50 = vsel %vm6621_vm4, %v3982_v59, %v8049_v51  ;;  %v4311_v24 = vsel %vm6887_vm7, %v5352_v29, %v4310_v60  ;;  %v4314_v23 = vsel %vm6887_vm7, %v4312_v54, %v4313_v18  ;;  %v5354_v39 = vrot.slane %v6308_v43, 9  ;;  %5678 = vmatprep.mubr.msk.bf16.mxu1 %vm931_vm3, %v5178_v36  ;;  %5830 = vmatprep.mubr.msk.bf16.mxu0 %vm931_vm3, %v5334_v2  ;;  %v8790_v51 = vld [vmem:[#allocation22_spill] sm:$0xff]  ;;  %v6313_v6 = vld [vmem:[%s6595_s7 + $0x60] sm:$0xf]  ;;  %v8123_v47 = vld [vmem:[%s6595_s7 + $0x64] sm:$0xf] }
 0x137   : > { %v3997_v38 = vsel %vm6621_vm4, %v3992_v25, %v3996_v56  ;;  %v4326_v27 = vrot.slane %v4324_v10, 4  ;;  %v4327_v35 = vrot.slane %v8790_v51, 5  ;;  %v4331_v44 = vrot.slane %v6309_v7, 5  ;;  %v8137_v15 = vld [vmem:[%s6595_s7 + $0x78] sm:$0xf] }
 0x138   : > { %v8113_v60 = vrot.slane %v2418_v49, 4  ;;  %v2424_v41 = vshll.u32 %v8116_v28, 16  ;;  %v5179_v5 = vcombine.low %v6311_v34, %v6312_v57  ;;  %v5180_v19 = vcombine.low %v6313_v6, %v8123_v47  ;;  %v6317_v62 = vld [vmem:[%s7212_s8 + $0x24] sm:$0xf]  ;;  %v8154_v58 = vld [vmem:[%s6595_s7 + $0x88] sm:$0xf] }
 0x139   : > { %v5181_v14 = vcombine.low %v8063_v13, %v8072_v45  ;;  %v8130_v1 = vsel %vm6887_vm7, %v5353_v52, %v4317_v37  ;;  %v8134_v3 = vsel %vm6887_vm7, %v4319_v63, %v4320_v46  ;;  %v5182_v36 = vcombine.low %v8137_v15, %v8140_v21  ;;  %v8157_v18 = vld [vmem:[%s6595_s7 + $0x84] sm:$0xf]  ;;  %v8166_v63 = vld [vmem:[%s6595_s7 + $0x90] sm:$0xf]  ;;  %v8169_v46 = vld [vmem:[%s6595_s7 + $0x94] sm:$0xf] }
 0x13a   : > { %v5335_v17 = vcombine.low %v3987_v50, %v3997_v38  ;;  %v5369_v59 = vcombine.low %v4311_v24, %v4314_v23  ;;  %v8146_v37 = vsel %vm6887_vm7, %v5354_v39, %v4324_v10  ;;  %v5355_v29 = vrot.slane %v6317_v62, 9  ;;  %v6320_v10 = vld [vmem:[%s7212_s8 + $0x34] sm:$0xf]  ;;  %v6323_v24 = vld [vmem:[%s7212_s8 + $0x30] sm:$0xf] }
 0x13b   : > { %v8151_v54 = vsel %vm6887_vm7, %v4326_v27, %v4327_v35  ;;  %v5183_v2 = vcombine.low %v8157_v18, %v8154_v58  ;;  %v4333_v25 = vrot.slane %v4331_v44, 4  ;;  %v4334_v56 = vrot.slane %v7696_v55, 5  ;;  %v6324_v43 = vld [vmem:[%s7212_s8 + $0x40] sm:$0xf]  ;;  %v6325_v39 = vld [vmem:[%s7212_s8 + $0x4c] sm:$0xf] }
 0x13c   : > { %v5370_v0 = vcombine.low %v8130_v1, %v8134_v3  ;;  %v4338_v49 = vrot.slane %v6320_v10, 5  ;;  %v2381_v42 = vshrl.u32 %v6313_v6, 16  ;;  %v2384_v52 = vshll.u32 %v6313_v6, 16  ;;  %v6326_v7 = vld [vmem:[%s7212_s8 + $0x58] sm:$0xf] }
 0x13d   : > { %v5184_v50 = vcombine.low %v8166_v63, %v8169_v46  ;;  %v5356_v23 = vrot.slane %v6323_v24, 9  ;;  %v4345_v55 = vrot.slane %v6324_v43, 5  ;;  %v4352_v38 = vrot.slane %v6325_v39, 5  ;;  %5679 = vmatmul.mubr.msk.bf16.gmra.mrb[12].mxu1 %vm931_vm3, %v5179_v5  ;;  %5831 = vmatmul.mubr.msk.bf16.gmra.mrb[28].mxu0 %vm931_vm3, %v5335_v17  ;;  %v6327_v5 = vld [vmem:[%s7212_s8 + $0x3c] sm:$0xf] }
 0x13e   : > { %v5371_v27 = vcombine.low %v8146_v37, %v8151_v54  ;;  %v8182_v51 = vsel %vm6887_vm7, %v5355_v29, %v4331_v44  ;;  %v4341_v35 = vrot.slane %v7729_v61, 5  ;;  %v4359_v34 = vrot.slane %v6326_v7, 5  ;;  %5682 = vmatprep.mubr.msk.bf16.mxu1 %vm931_vm3, %v5180_v19  ;;  %5836 = vmatprep.mubr.msk.bf16.mxu0 %vm931_vm3, %v5369_v59  ;;  %v6328_v62 = vld [vmem:[%s7212_s8 + $0x48] sm:$0xf]  ;;  %v6331_v10 = vld [vmem:[%s7212_s8 + $0x54] sm:$0xf] }
 0x13f   : > { %v8190_v57 = vsel %vm6887_vm7, %v4333_v25, %v4334_v56  ;;  %v5357_v6 = vrot.slane %v6327_v5, 9  ;;  %v2390_v44 = vshll.u32 %v8123_v47, 16  ;;  %v2394_v1 = vshrl.u32 %v8123_v47, 16  ;;  %v8199_v25 = vld [vmem:[%s6595_s7 + $0xa0] sm:$0xf] }
 0x140   : > { %v4340_v61 = vrot.slane %v4338_v49, 4  ;;  %v4348_v3 = vrot.slane %v7769_v4, 5  ;;  %v2383_v17 = vrot.slane %v2381_v42, 4  ;;  %v2386_v19 = vrot.slane %v2384_v52, 5  ;;  %v8202_v56 = vld [vmem:[%s6595_s7 + $0x9c] sm:$0xf] }
 0x141   : > { %v4347_v37 = vrot.slane %v4345_v55, 4  ;;  %v5358_v59 = vrot.slane %v6328_v62, 9  ;;  %v4354_v29 = vrot.slane %v4352_v38, 4  ;;  %v4355_v54 = vrot.slane %v7819_v53, 5  ;;  %v8226_v62 = vld [vmem:[%s6595_s7 + $0xa8] sm:$0xf] }
 0x142   : > { %v5185_v47 = vcombine.low %v8202_v56, %v8199_v25  ;;  %v5359_v24 = vrot.slane %v6331_v10, 9  ;;  %v4361_v4 = vrot.slane %v4359_v34, 4  ;;  %v4362_v42 = vrot.slane %v7862_v26, 5  ;;  %v8223_v26 = vld [vmem:[%s6595_s7 + $0xac] sm:$0xf] }
 0x143   : > { %v5372_v52 = vcombine.low %v8182_v51, %v8190_v57  ;;  %v8212_v43 = vsel %vm6887_vm7, %v5356_v23, %v4338_v49  ;;  %v8214_v53 = vrot.slane %v2390_v44, 5  ;;  %v2396_v39 = vrot.slane %v2394_v1, 4  ;;  %v6334_v57 = vld [vmem:[%s7212_s8 + $0x64] sm:$0xf]  ;;  %v6335_v1 = vld [vmem:[%s6595_s7 + $0x68] sm:$0x1] }
 0x144   : > { %v4342_v7 = vsel %vm6887_vm7, %v4340_v61, %v4341_v35  ;;  %v8220_v5 = vsel %vm6887_vm7, %v5357_v6, %v4345_v55  ;;  %v5186_v49 = vcombine.low %v8226_v62, %v8223_v26  ;;  %v2387_v23 = vor.u32 %v2386_v19, %v2383_v17  ;;  %v8269_v45 = vld [vmem:[%s6595_s7 + $0xb8] sm:$0xf] }
 0x145   : > { %v8232_v51 = vsel %vm6887_vm7, %v4347_v37, %v4348_v3  ;;  %v8236_v35 = vsel %vm6887_vm7, %v5358_v59, %v4352_v38  ;;  %v8240_v55 = vsel %vm6887_vm7, %v4354_v29, %v4355_v54  ;;  %v4366_v6 = vrot.slane %v6334_v57, 5  ;;  %5683 = vmatmul.mubr.msk.bf16.gmra.mrb[16].mxu1 %vm931_vm3, %v5181_v14  ;;  %5837 = vmatmul.mubr.msk.bf16.vlgmr.msra.gmra.mrb[0].mxu0 %vm931_vm3, %v5370_v0  ;;  %v6336_v3 = vld [vmem:[%s7212_s8 + $0x60] sm:$0xf]  ;;  %v8272_v14 = vld [vmem:[%s6595_s7 + $0xb4] sm:$0xf] }
 0x146   : > { %v8250_v44 = vsel %vm6887_vm7, %v5359_v24, %v4359_v34  ;;  %v8254_v38 = vsel %vm6887_vm7, %v4361_v4, %v4362_v42  ;;  %v2400_v61 = vshll.u32 %v6335_v1, 16  ;;  %v5360_v17 = vrot.slane %v6336_v3, 9  ;;  %5686 = vmatprep.mubr.msk.bf16.mxu1 %vm931_vm3, %v5182_v36  ;;  %5840 = vmatprep.mubr.msk.bf16.mxu0 %vm931_vm3, %v5371_v27  ;;  %v6339_v4 = vld [vmem:[%s7212_s8 + $0x6c] sm:$0xf]  ;;  %v6340_v57 = vld [vmem:[%s7212_s8 + $0x70] sm:$0xf] }
 0x147   : > { %v8260_v19 = vrot.slane %v2424_v41, 5  ;;  %v5373_v13 = vcombine.low %v8212_v43, %v4342_v7  ;;  %v5187_v0 = vcombine.low %v8272_v14, %v8269_v45  ;;  %v2397_v28 = vor.u32 %v2396_v39, %v8214_v53  ;;  %v6341_v1 = vld [vmem:[%s7212_s8 + $0x7c] sm:$0xf] }
 0x148   : > { %v5374_v41 = vcombine.low %v8220_v5, %v8232_v51  ;;  %v8279_v34 = vrot.slane %v2387_v23, 4  ;;  %v2411_v36 = vor.u32 %v8090_v30, %v8088_v8  ;;  %v2421_v27 = vor.u32 %v8113_v60, %v8093_v48 }
 0x149   : > { %v5375_v37 = vcombine.low %v8236_v35, %v8240_v55  ;;  %v5376_v59 = vcombine.low %v8250_v44, %v8254_v38  ;;  %v4368_v29 = vrot.slane %v4366_v6, 4  ;;  %v4369_v54 = vrot.slane %v7874_v9, 5 }
 0x14a   : > { %v8290_v10 = vrot.slane %v2400_v61, 5  ;;  %v8294_v24 = vsel %vm6887_vm7, %v5360_v17, %v4366_v6  ;;  %v2429_v8 = vshrl.u32 %v8137_v15, 16  ;;  %v2432_v30 = vshll.u32 %v8137_v15, 16 }
 0x14b   : > { %v8298_v60 = vrot.slane %v2397_v28, 4  ;;  %v5361_v42 = vrot.slane %v6339_v4, 9  ;;  %v2438_v43 = vshll.u32 %v8140_v21, 16  ;;  %v2442_v39 = vshrl.u32 %v8140_v21, 16 }
 0x14c   : > { %v2393_v9 = vsel %vm6621_vm4, %v8279_v34, %v8214_v53  ;;  %v8307_v7 = vrot.slane %v2411_v36, 4  ;;  %v8309_v23 = vrot.slane %v2421_v27, 4  ;;  %v4373_v6 = vrot.slane %v6340_v57, 5 }
 0x14d   : > { %v8314_v15 = vsel %vm6887_vm7, %v4368_v29, %v4369_v54  ;;  %v4380_v61 = vrot.slane %v6341_v1, 5  ;;  %v2453_v3 = vshrl.u32 %v8157_v18, 16  ;;  %v2456_v21 = vshll.u32 %v8157_v18, 16  ;;  %5687 = vmatmul.mubr.msk.bf16.gmra.mrb[20].mxu1 %vm931_vm3, %v5183_v2  ;;  %5841 = vmatmul.mubr.msk.bf16.gmra.mrb[4].mxu0 %vm931_vm3, %v5372_v52  ;;  %v6342_v54 = vld [vmem:[%s6595_s7 + $0x80] sm:$0x1] }
 0x14e   : > { %v2431_v17 = vrot.slane %v2429_v8, 4  ;;  %v2434_v28 = vrot.slane %v2432_v30, 5  ;;  %v2462_v36 = vshll.u32 %v8154_v58, 16  ;;  %v2466_v27 = vshrl.u32 %v8154_v58, 16  ;;  %5690 = vmatprep.mubr.msk.bf16.mxu1 %vm931_vm3, %v5184_v50  ;;  %5844 = vmatprep.mubr.msk.bf16.mxu0 %vm931_vm3, %v5373_v13  ;;  %v6343_v30 = vld [vmem:[%s7212_s8 + $0x78] sm:$0xf] }
 0x14f   : > { %v2403_v18 = vsel %vm6621_vm4, %v8298_v60, %v8290_v10  ;;  %v4376_v2 = vrot.slane %v7919_v16, 5  ;;  %v8336_v52 = vrot.slane %v2438_v43, 5  ;;  %v2444_v29 = vrot.slane %v2442_v39, 4 }
 0x150   : > { %v5377_v58 = vcombine.low %v8294_v24, %v8314_v15  ;;  %v2417_v50 = vsel %vm6621_vm4, %v8307_v7, %v8093_v48  ;;  %v4375_v13 = vrot.slane %v4373_v6, 4  ;;  %v2448_v8 = vshll.u32 %v6342_v54, 16 }
 0x151   : > { %v5362_v4 = vrot.slane %v6343_v30, 9  ;;  %v4382_v10 = vrot.slane %v4380_v61, 4  ;;  %v2455_v60 = vrot.slane %v2453_v3, 4  ;;  %v2458_v16 = vrot.slane %v2456_v21, 5  ;;  %v6344_v3 = vld [vmem:[%s7212_s8 + $0x88] sm:$0xf] }
 0x152   : > { %v2435_v43 = vor.u32 %v2434_v28, %v2431_v17  ;;  %v4383_v39 = vrot.slane %v7936_v40, 5  ;;  %v8347_v57 = vrot.slane %v2462_v36, 5  ;;  %v2468_v1 = vrot.slane %v2466_v27, 4 }
 0x153   : > { %v2427_v48 = vsel %vm6621_vm4, %v8309_v23, %v8260_v19  ;;  %v8355_v7 = vsel %vm6887_vm7, %v5361_v42, %v4373_v6  ;;  %v2445_v54 = vor.u32 %v2444_v29, %v8336_v52  ;;  %v4387_v21 = vrot.slane %v6344_v3, 5 }
 0x154   : > { %v8361_v40 = vsel %vm6887_vm7, %v4375_v13, %v4376_v2  ;;  %v2450_v17 = vrot.slane %v2448_v8, 5  ;;  %v2477_v28 = vshrl.u32 %v8166_v63, 16  ;;  %v2480_v36 = vshll.u32 %v8166_v63, 16  ;;  %v6345_v2 = vld [vmem:[%s6595_s7 + $0x8c] sm:$0x1] }
 0x155   : > { %v8367_v19 = vsel %vm6887_vm7, %v5362_v4, %v4380_v61  ;;  %v2459_v42 = vor.u32 %v2458_v16, %v2455_v60  ;;  %v2486_v23 = vshll.u32 %v8169_v46, 16  ;;  %v2490_v6 = vshrl.u32 %v8169_v46, 16  ;;  %5691 = vmatmul.mubr.msk.bf16.gmra.mrb[24].mxu1 %vm931_vm3, %v5185_v47  ;;  %5845 = vmatmul.mubr.msk.bf16.gmra.mrb[8].mxu0 %vm931_vm3, %v5374_v41  ;;  %v6346_v47 = vld [vmem:[%s7212_s8 + $0x84] sm:$0xf]  ;;  %v6347_v60 = vld [vmem:[%s7212_s8 + $0x94] sm:$0xf] }
 0x156   : > { %v2436_v63 = vrot.slane %v2435_v43, 4  ;;  %v8381_v61 = vsel %vm6887_vm7, %v4382_v10, %v4383_v39  ;;  %v2469_v27 = vor.u32 %v2468_v1, %v8347_v57  ;;  %v2472_v29 = vshll.u32 %v6345_v2, 16  ;;  %5694 = vmatprep.mubr.msk.bf16.mxu1 %vm931_vm3, %v5186_v49  ;;  %5848 = vmatprep.mubr.msk.bf16.mxu0 %vm931_vm3, %v5375_v37  ;;  %v6348_v43 = vld [vmem:[%s6595_s7 + $0x98] sm:$0x1] }
 0x157   : > { %v2446_v46 = vrot.slane %v2445_v54, 4  ;;  %v5363_v5 = vrot.slane %v6346_v47, 9  ;;  %v4389_v51 = vrot.slane %v4387_v21, 4  ;;  %v4390_v41 = vrot.slane %v7966_v22, 5 }
 0x158   : > { %v5213_v13 = vcombine.low %v2393_v9, %v2403_v18  ;;  %v8400_v8 = vcombine.low %v2417_v50, %v2427_v48  ;;  %v2479_v49 = vrot.slane %v2477_v28, 4  ;;  %v2482_v35 = vrot.slane %v2480_v36, 5 }
 0x159   : > { %v5378_v55 = vcombine.low %v8355_v7, %v8361_v40  ;;  %v2460_v37 = vrot.slane %v2459_v42, 4  ;;  %v8404_v30 = vrot.slane %v2486_v23, 5  ;;  %v2492_v4 = vrot.slane %v2490_v6, 4 }
 0x15a   : > { %v2441_v22 = vsel %vm6621_vm4, %v2436_v63, %v8336_v52  ;;  %v5379_v53 = vcombine.low %v8367_v19, %v8381_v61  ;;  %v2470_v34 = vrot.slane %v2469_v27, 4  ;;  %v2474_v9 = vrot.slane %v2472_v29, 5 }
 0x15b   : > { %v2451_v18 = vsel %vm6621_vm4, %v2446_v46, %v2450_v17  ;;  %v8415_v50 = vsel %vm6887_vm7, %v5363_v5, %v4387_v21  ;;  %v8419_v10 = vsel %vm6887_vm7, %v4389_v51, %v4390_v41  ;;  %v4394_v16 = vrot.slane %v6347_v60, 5  ;;  %v6354_v60 = vld [vmem:[%s7212_s8 + $0xac] sm:$0xf] }
 0x15c   : > { %v2483_v52 = vor.u32 %v2482_v35, %v2479_v49  ;;  %v2496_v39 = vshll.u32 %v6348_v43, 16  ;;  %v2501_v1 = vshrl.u32 %v8202_v56, 16  ;;  %v2504_v48 = vshll.u32 %v8202_v56, 16  ;;  %v6351_v35 = vld [vmem:[%s7212_s8 + $0x9c] sm:$0xf] }
 0x15d   : > { %v2465_v54 = vsel %vm6621_vm4, %v2460_v37, %v8347_v57  ;;  %v2493_v3 = vor.u32 %v2492_v4, %v8404_v30  ;;  %v2510_v21 = vshll.u32 %v8199_v25, 16  ;;  %v2514_v17 = vshrl.u32 %v8199_v25, 16  ;;  %5695 = vmatmul.mubr.msk.bf16.gmra.mrb[28].mxu1 %vm931_vm3, %v5187_v0  ;;  %5849 = vmatmul.mubr.msk.bf16.gmra.mrb[12].mxu0 %vm931_vm3, %v5376_v59  ;;  %v6349_v57 = vld [vmem:[%s7212_s8 + $0x90] sm:$0xf] }
 0x15e   : > { %v2475_v56 = vsel %vm6621_vm4, %v2470_v34, %v2474_v9  ;;  %v5364_v28 = vrot.slane %v6349_v57, 9  ;;  %v2525_v36 = vshrl.u32 %v8226_v62, 16  ;;  %v2528_v42 = vshll.u32 %v8226_v62, 16  ;;  %5716 = vmatprep.mubr.msk.bf16.mxu1 %vm931_vm3, %v5213_v13  ;;  %5852 = vmatprep.mubr.msk.bf16.mxu0 %vm931_vm3, %v5377_v58  ;;  %v6350_v13 = vld [vmem:[%s6595_s7 + $0xa4] sm:$0x1] }
 0x15f   : > { %v4396_v25 = vrot.slane %v4394_v16, 4  ;;  %v4397_v44 = vrot.slane %v7978_v33, 5  ;;  %v2534_v38 = vshll.u32 %v8223_v26, 16  ;;  %v2538_v0 = vshrl.u32 %v8223_v26, 16  ;;  %v6352_v34 = vld [vmem:[%s7212_s8 + $0xa0] sm:$0xf] }
 0x160   : > { %v5215_v59 = vcombine.low %v2441_v22, %v2451_v18  ;;  %v2484_v23 = vrot.slane %v2483_v52, 4  ;;  %v2503_v6 = vrot.slane %v2501_v1, 4  ;;  %v2506_v63 = vrot.slane %v2504_v48, 5  ;;  %v6353_v18 = vld [vmem:[%s6595_s7 + $0xb0] sm:$0x1] }
 0x161   : > { %v2494_v62 = vrot.slane %v2493_v3, 4  ;;  %v2498_v27 = vrot.slane %v2496_v39, 5  ;;  %v8452_v2 = vrot.slane %v2510_v21, 5  ;;  %v2516_v24 = vrot.slane %v2514_v17, 4  ;;  %v6355_v17 = vld [vmem:[%s7212_s8 + $0xa8] sm:$0xf] }
 0x162   : > { %v5216_v15 = vcombine.low %v2465_v54, %v2475_v56  ;;  %v5380_v33 = vcombine.low %v8415_v50, %v8419_v10  ;;  %v2527_v58 = vrot.slane %v2525_v36, 4  ;;  %v2530_v29 = vrot.slane %v2528_v42, 5 }
 0x163   : > { %v4395_v26 = vsel %vm6887_vm7, %v5364_v28, %v4394_v16  ;;  %v4398_v46 = vsel %vm6887_vm7, %v4396_v25, %v4397_v44  ;;  %v8460_v47 = vrot.slane %v2534_v38, 5  ;;  %v2540_v5 = vrot.slane %v2538_v0, 4 }
 0x164   : > { %v2489_v51 = vsel %vm6621_vm4, %v2484_v23, %v8404_v30  ;;  %v2507_v41 = vor.u32 %v2506_v63, %v2503_v6  ;;  %v2520_v49 = vshll.u32 %v6350_v13, 16  ;;  %v5365_v37 = vrot.slane %v6351_v35, 9 }
 0x165   : > { %v2499_v4 = vsel %vm6621_vm4, %v2494_v62, %v2498_v27  ;;  %v2517_v22 = vor.u32 %v2516_v24, %v8452_v2  ;;  %v4401_v9 = vrot.slane %v6352_v34, 5  ;;  %v2544_v50 = vshll.u32 %v6353_v18, 16  ;;  %5717 = vmatmul.mubr.msk.bf16.vlgmr.msra.gmra.mrb[16].mxu1 %vm931_vm3, %v8400_v8  ;;  %5853 = vmatmul.mubr.msk.bf16.gmra.mrb[16].mxu0 %vm931_vm3, %v5378_v55  ;;  %v6357_v27 = vld [vmem:[%s7212_s8 + $0xb8] sm:$0xf] }
 0x166   : > { %v5381_v30 = vcombine.low %v4395_v26, %v4398_v46  ;;  %v2531_v10 = vor.u32 %v2530_v29, %v2527_v58  ;;  %v4408_v16 = vrot.slane %v6354_v60, 5  ;;  %v2549_v52 = vshrl.u32 %v8272_v14, 16  ;;  %5720 = vmatprep.mubr.msk.bf16.mxu1 %vm931_vm3, %v5215_v59  ;;  %5856 = vmatprep.mubr.msk.bf16.mxu0 %vm931_vm3, %v5379_v53  ;;  %v6356_v59 = vld [vmem:[%s6595_s7 + $0xbc] sm:$0x1]  ;;  %v6358_v26 = vld [vmem:[%s7212_s8 + $0xb4] sm:$0xf] }
 0x167   : > { %v2541_v8 = vor.u32 %v2540_v5, %v8460_v47  ;;  %v2552_v7 = vshll.u32 %v8272_v14, 16  ;;  %v2558_v40 = vshll.u32 %v8269_v45, 16  ;;  %v2562_v55 = vshrl.u32 %v8269_v45, 16  ;;  %s5052_s7 = sshll.u32 %s8541_s25, 8  ;;  %s6471_s8 = smov [#allocation2]  }
 0x168   : > { %v5217_v43 = vcombine.low %v2489_v51, %v2499_v4  ;;  %v2508_v39 = vrot.slane %v2507_v41, 4  ;;  %v2522_v1 = vrot.slane %v2520_v49, 5  ;;  %v4404_v48 = vrot.slane %v8007_v11, 5  ;;  %s8546_s12 = scalar_lea.vmem [#allocation2], %s5052_s7  ;;  %s6363_s16 = sshll.u32 %s6471_s8, 4  ;;  %s6364_s16 = int_to_ptr.vmem [resolvable:$false] %s6363_s16 }
 0x169   : > { %v2518_v54 = vrot.slane %v2517_v22, 4  ;;  %v4403_v3 = vrot.slane %v4401_v9, 4  ;;  %v2546_v21 = vrot.slane %v2544_v50, 5  ;;  %v5366_v19 = vrot.slane %v6355_v17, 9  ;;  %s4876_s14 = sshll.u32 %s8546_s12, 4  ;;  %s6365_s9 = scalar_lea.vmem %s6364_s16, 8192  ;;  %s8589_s14 = int_to_ptr.vmem [resolvable:$true] %s4876_s14 }
 0x16a   : > { %v2532_v61 = vrot.slane %v2531_v10, 4  ;;  %v4410_v53 = vrot.slane %v4408_v16, 4  ;;  %v4411_v56 = vrot.slane %v8025_v31, 5  ;;  %v2551_v14 = vrot.slane %v2549_v52, 4  ;;  %s6359_s29 = scalar_lea.vmem %s8589_s14, 4096  ;;  %p6366_p1 = scmp.lt.s32.totalorder %s8589_s14, %s6364_s16 }
 0x16b   : > { %v2542_v57 = vrot.slane %v2541_v8, 4  ;;  %v2554_v28 = vrot.slane %v2552_v7, 5  ;;  %v2560_v36 = vrot.slane %v2558_v40, 5  ;;  %v2564_v45 = vrot.slane %v2562_v55, 4  ;;  %p6360_p12 = scmp.ne.s32.totalorder %s8589_s14, %s6359_s29  ;;  %p6367_p2 = scmp.lt.s32.totalorder %s6365_s9, %s6359_s29 }
 0x16c   : > { %v2513_v42 = vsel %vm6621_vm4, %v2508_v39, %v8452_v2  ;;  %v2523_v11 = vsel %vm6621_vm4, %v2518_v54, %v2522_v1  ;;  %v4402_v25 = vsel %vm6887_vm7, %v5365_v37, %v4401_v9  ;;  %v4405_v44 = vsel %vm6887_vm7, %v4403_v3, %v4404_v48 }
 0x16d   : > { %5721 = vmatmul.mubr.msk.bf16.gmra.mrb[20].mxu1 %vm931_vm3, %v5216_v15  ;;  %5857 = vmatmul.mubr.msk.bf16.gmra.mrb[20].mxu0 %vm931_vm3, %v5380_v33  ;;  %v2537_v31 = vsel %vm6621_vm4, %v2532_v61, %v8460_v47  ;;  %v4409_v38 = vsel %vm6887_vm7, %v5366_v19, %v4408_v16  ;;  %v4412_v0 = vsel %vm6887_vm7, %v4410_v53, %v4411_v56  ;;  %v2568_v23 = vshll.u32 %v6356_v59, 16  ;;  %p6361_p13 = pnand %p6360_p12, %p6545_p4  ;;  %p6368_p3 = por %p6367_p2, %p6366_p1 }
 0x16e   : > { %5724 = vmatprep.mubr.msk.bf16.mxu1 %vm931_vm3, %v5217_v43  ;;  %5860 = vmatprep.mubr.msk.bf16.mxu0 %vm931_vm3, %v5381_v30  ;;  %v2547_v6 = vsel %vm6621_vm4, %v2542_v57, %v2546_v21  ;;  %v2555_v63 = vor.u32 %v2554_v28, %v2551_v14  ;;  %v2565_v62 = vor.u32 %v2564_v45, %v2560_v36  ;;  %v4415_v2 = vrot.slane %v6357_v27, 5 }
 0x16f   : > { %v5218_v24 = vcombine.low %v2513_v42, %v2523_v11  ;;  %v5382_v15 = vcombine.low %v4402_v25, %v4405_v44  ;;  %v5219_v33 = vcombine.low %v2537_v31, %v2547_v6  ;;  %v5383_v58 = vcombine.low %v4409_v38, %v4412_v0  ;;  %p6362_p0 = pneg %p6361_p13 }
 0x170   : > { %v2570_v29 = vrot.slane %v2568_v23, 5  ;;  %v5367_v46 = vrot.slane %v6358_v26, 9  ;;  %v2556_v47 = vrot.slane %v2555_v63, 4  ;;  %v2566_v5 = vrot.slane %v2565_v62, 4 }
 0x171   : > { %v4417_v51 = vrot.slane %v4415_v2, 4  ;;  %v4418_v41 = vrot.slane %v8052_v20, 5  ;;  %p6369_p5 = pnand %p6368_p3, %p6362_p0 }
 0x172   : > { %v4416_v13 = vsel %vm6887_vm7, %v5367_v46, %v4415_v2  ;;  %v2561_v49 = vsel %vm6621_vm4, %v2556_v47, %v2560_v36  ;;  %v2571_v35 = vsel %vm6621_vm4, %v2566_v5, %v2570_v29 }
 0x173   : > { %v4419_v20 = vsel %vm6887_vm7, %v4417_v51, %v4418_v41  ;;  %v5220_v37 = vcombine.low %v2561_v49, %v2571_v35 }
 0x174   : > { %v5384_v4 = vcombine.low %v4416_v13, %v4419_v20 }
 0x175   : > { %5725 = vmatmul.mubr.msk.bf16.gmra.mrb[24].mxu1 %vm931_vm3, %v5218_v24  ;;  %5861 = vmatmul.mubr.msk.bf16.gmra.mrb[24].mxu0 %vm931_vm3, %v5382_v15 }
 0x176   : > { %5728 = vmatprep.mubr.msk.bf16.mxu1 %vm931_vm3, %v5219_v33  ;;  %5864 = vmatprep.mubr.msk.bf16.mxu0 %vm931_vm3, %v5383_v58 }
 0x17d   : > { %5729 = vmatmul.mubr.msk.bf16.gmra.mrb[28].mxu1 %vm931_vm3, %v5220_v37  ;;  %5865 = vmatmul.mubr.msk.bf16.gmra.mrb[28].mxu0 %vm931_vm3, %v5384_v4 }
 0x1f8   : > { %v5668_v22 = vpop.f32.mrb[0].mxu1 }
 0x1f9   : > { %v2029_v34 = vpop.f32.mrb[1].mxu1 }
 0x1fa   : > { %v5669_v9 = vpop.f32.mrb[2].mxu1 }
 0x1fb   : > { %v2032_v18 = vpop.f32.mrb[3].mxu1 }
 0x200   : > { %v5672_v50 = vpop.f32.mrb[4].mxu1 }
 0x201   : > { %v2045_v30 = vpop.f32.mrb[5].mxu1 }
 0x202   : > { %v5673_v10 = vpop.f32.mrb[6].mxu1 }
 0x203   : > { %v2048_v60 = vpop.f32.mrb[7].mxu1 }
 0x208   : > { %v5676_v32 = vpop.f32.mrb[8].mxu1 }
 0x209   : > { %v2061_v16 = vpop.f32.mrb[9].mxu1 }
 0x20a   : > { %v5677_v52 = vpop.f32.mrb[10].mxu1 }
 0x20b   : > { %v8532_v12 = vpop.f32.mrb[11].mxu1 }
 0x210   : > { %v8534_v8 = vpop.f32.mrb[12].mxu1 }
 0x211   : > { %v8536_v7 = vpop.f32.mrb[13].mxu1 }
 0x212   : > { %v8538_v40 = vpop.f32.mrb[14].mxu1 }
 0x213   : > { %v8543_v55 = vpop.f32.mrb[15].mxu1 }
 0x218   : > { %v5838_v43 = vpop.f32.mrb[0].mxu0 }
 0x219   : > { %v5870_v39 = vadd.f32 %v5838_v43, %v5668_v22  ;;  %v4555_v1 = vpop.f32.mrb[1].mxu0 }
 0x21a   : > { %v5871_v48 = vadd.f32 %v4555_v1, %v2029_v34  ;;  %v5839_v54 = vpop.f32.mrb[2].mxu0 }
 0x21b   : > { %4716 = vst [vmem:[%s8546_s12 + $0x10] sm:$0xff] %v5870_v39  ;;  %v5872_v3 = vadd.f32 %v5839_v54, %v5669_v9  ;;  %v4558_v21 = vpop.f32.mrb[3].mxu0  ;;  %v4786_v56 = vmul.f32 %v5870_v39, %v5870_v39 }
 0x21c   : > { %4714 = vst [vmem:[%s8546_s12] sm:$0xff] %v5871_v48  ;;  %v5873_v17 = vadd.f32 %v4558_v21, %v2032_v18  ;;  %v4784_v19 = vmul.f32 %v5871_v48, %v5871_v48 }
 0x21d   : > { %4717 = vst [vmem:[%s8546_s12 + $0x18] sm:$0xff] %v5872_v3  ;;  %v4787_v42 = vmul.f32 %v5872_v3, %v5872_v3 }
 0x21e   : > { %4715 = vst [vmem:[%s8546_s12 + $0x8] sm:$0xff] %v5873_v17  ;;  %v4746_v61 = vadd.f32 %v5873_v17, %v5871_v48  ;;  %v4785_v53 = vmul.f32 %v5873_v17, %v5873_v17 }
 0x220   : > { %v4747_v14 = vadd.f32 %v5870_v39, %v4746_v61  ;;  %v4816_v57 = vadd.f32 %v4785_v53, %v4784_v19  ;;  %v5842_v28 = vpop.f32.mrb[4].mxu0 }
 0x221   : > { %v5874_v36 = vadd.f32 %v5842_v28, %v5672_v50  ;;  %v4571_v45 = vpop.f32.mrb[5].mxu0 }
 0x222   : > { %v4817_v11 = vadd.f32 %v4816_v57, %v4786_v56  ;;  %v5875_v25 = vadd.f32 %v4571_v45, %v2045_v30  ;;  %v4748_v44 = vadd.f32 %v5872_v3, %v4747_v14  ;;  %v5843_v31 = vpop.f32.mrb[6].mxu0 }
 0x223   : > { %4720 = vst [vmem:[%s8546_s12 + $0x30] sm:$0xff] %v5874_v36  ;;  %v5876_v38 = vadd.f32 %v5843_v31, %v5673_v10  ;;  %v4574_v0 = vpop.f32.mrb[7].mxu0  ;;  %v4790_v24 = vmul.f32 %v5874_v36, %v5874_v36 }
 0x224   : > { %4718 = vst [vmem:[%s8546_s12 + $0x20] sm:$0xff] %v5875_v25  ;;  %v4749_v59 = vadd.f32 %v5875_v25, %v4748_v44  ;;  %v4788_v23 = vmul.f32 %v5875_v25, %v5875_v25  ;;  %v4818_v6 = vadd.f32 %v4817_v11, %v4787_v42  ;;  %v5877_v63 = vadd.f32 %v4574_v0, %v2048_v60 }
 0x225   : > { %4721 = vst [vmem:[%s8546_s12 + $0x38] sm:$0xff] %v5876_v38  ;;  %v4791_v46 = vmul.f32 %v5876_v38, %v5876_v38 }
 0x226   : > { %v4819_v62 = vadd.f32 %v4818_v6, %v4788_v23  ;;  %4719 = vst [vmem:[%s8546_s12 + $0x28] sm:$0xff] %v5877_v63  ;;  %v4750_v27 = vadd.f32 %v5877_v63, %v4749_v59  ;;  %v4789_v2 = vmul.f32 %v5877_v63, %v5877_v63 }
 0x228   : > { %v4751_v15 = vadd.f32 %v5874_v36, %v4750_v27  ;;  %v4820_v33 = vadd.f32 %v4819_v62, %v4789_v2  ;;  %v5846_v58 = vpop.f32.mrb[8].mxu0 }
 0x229   : > { %v5878_v29 = vadd.f32 %v5846_v58, %v5676_v32  ;;  %v4587_v26 = vpop.f32.mrb[9].mxu0 }
 0x22a   : > { %v4821_v47 = vadd.f32 %v4820_v33, %v4790_v24  ;;  %v5879_v5 = vadd.f32 %v4587_v26, %v2061_v16  ;;  %v4752_v51 = vadd.f32 %v5876_v38, %v4751_v15  ;;  %v5847_v41 = vpop.f32.mrb[10].mxu0 }
 0x22b   : > { %4724 = vst [vmem:[%s8546_s12 + $0x50] sm:$0xff] %v5878_v29  ;;  %v5880_v13 = vadd.f32 %v5847_v41, %v5677_v52  ;;  %v4590_v49 = vpop.f32.mrb[11].mxu0  ;;  %v4794_v18 = vmul.f32 %v5878_v29, %v5878_v29 }
 0x22c   : > { %4722 = vst [vmem:[%s8546_s12 + $0x40] sm:$0xff] %v5879_v5  ;;  %v4753_v35 = vadd.f32 %v5879_v5, %v4752_v51  ;;  %v4792_v20 = vmul.f32 %v5879_v5, %v5879_v5  ;;  %v4822_v37 = vadd.f32 %v4821_v47, %v4791_v46  ;;  %v5881_v4 = vadd.f32 %v4590_v49, %v8532_v12 }
 0x22d   : > { %4725 = vst [vmem:[%s8546_s12 + $0x58] sm:$0xff] %v5880_v13  ;;  %v4795_v16 = vmul.f32 %v5880_v13, %v5880_v13 }
 0x22e   : > { %v4823_v22 = vadd.f32 %v4822_v37, %v4792_v20  ;;  %4723 = vst [vmem:[%s8546_s12 + $0x48] sm:$0xff] %v5881_v4  ;;  %v4754_v34 = vadd.f32 %v5881_v4, %v4753_v35  ;;  %v4793_v9 = vmul.f32 %v5881_v4, %v5881_v4 }
 0x230   : > { %v4755_v50 = vadd.f32 %v5878_v29, %v4754_v34  ;;  %v4824_v30 = vadd.f32 %v4823_v22, %v4793_v9  ;;  %v5850_v10 = vpop.f32.mrb[12].mxu0 }
 0x231   : > { %v5882_v60 = vadd.f32 %v5850_v10, %v8534_v8  ;;  %v4603_v32 = vpop.f32.mrb[13].mxu0 }
 0x232   : > { %v4825_v52 = vadd.f32 %v4824_v30, %v4794_v18  ;;  %v5883_v12 = vadd.f32 %v4603_v32, %v8536_v7  ;;  %v4756_v43 = vadd.f32 %v5880_v13, %v4755_v50  ;;  %v5851_v39 = vpop.f32.mrb[14].mxu0 }
 0x233   : > { %4728 = vst [vmem:[%s8546_s12 + $0x70] sm:$0xff] %v5882_v60  ;;  %v5884_v1 = vadd.f32 %v5851_v39, %v8538_v40  ;;  %v4606_v48 = vpop.f32.mrb[15].mxu0  ;;  %v4798_v53 = vmul.f32 %v5882_v60, %v5882_v60 }
 0x234   : > { %4726 = vst [vmem:[%s8546_s12 + $0x60] sm:$0xff] %v5883_v12  ;;  %v4757_v54 = vadd.f32 %v5883_v12, %v4756_v43  ;;  %v4796_v3 = vmul.f32 %v5883_v12, %v5883_v12  ;;  %v4826_v21 = vadd.f32 %v4825_v52, %v4795_v16  ;;  %v5885_v17 = vadd.f32 %v4606_v48, %v8543_v55 }
 0x235   : > { %4729 = vst [vmem:[%s8546_s12 + $0x78] sm:$0xff] %v5884_v1  ;;  %v4799_v45 = vmul.f32 %v5884_v1, %v5884_v1 }
 0x236   : > { %v4827_v8 = vadd.f32 %v4826_v21, %v4796_v3  ;;  %4727 = vst [vmem:[%s8546_s12 + $0x68] sm:$0xff] %v5885_v17  ;;  %v4758_v19 = vadd.f32 %v5885_v17, %v4757_v54  ;;  %v4797_v61 = vmul.f32 %v5885_v17, %v5885_v17 }
 0x238   : > { %v4759_v7 = vadd.f32 %v5882_v60, %v4758_v19  ;;  %v4828_v56 = vadd.f32 %v4827_v8, %v4797_v61  ;;  %v5718_v14 = vpop.f32.mrb[16].mxu1  ;;  %v5854_v57 = vpop.f32.mrb[16].mxu0 }
 0x239   : > { %v5886_v40 = vadd.f32 %v5854_v57, %v5718_v14  ;;  %v2771_v28 = vpop.f32.mrb[17].mxu1  ;;  %v4619_v36 = vpop.f32.mrb[17].mxu0 }
 0x23a   : > { %v4829_v42 = vadd.f32 %v4828_v56, %v4798_v53  ;;  %v5887_v55 = vadd.f32 %v4619_v36, %v2771_v28  ;;  %v4760_v11 = vadd.f32 %v5884_v1, %v4759_v7  ;;  %v5719_v25 = vpop.f32.mrb[18].mxu1  ;;  %v5855_v44 = vpop.f32.mrb[18].mxu0 }
 0x23b   : > { %4732 = vst [vmem:[%s8546_s12 + $0x90] sm:$0xff] %v5886_v40  ;;  %v5888_v31 = vadd.f32 %v5855_v44, %v5719_v25  ;;  %v2774_v38 = vpop.f32.mrb[19].mxu1  ;;  %v4622_v0 = vpop.f32.mrb[19].mxu0  ;;  %v4802_v24 = vmul.f32 %v5886_v40, %v5886_v40 }
 0x23c   : > { %4730 = vst [vmem:[%s8546_s12 + $0x80] sm:$0xff] %v5887_v55  ;;  %v4761_v59 = vadd.f32 %v5887_v55, %v4760_v11  ;;  %v4800_v23 = vmul.f32 %v5887_v55, %v5887_v55  ;;  %v4830_v6 = vadd.f32 %v4829_v42, %v4799_v45  ;;  %v5889_v63 = vadd.f32 %v4622_v0, %v2774_v38 }
 0x23d   : > { %4733 = vst [vmem:[%s8546_s12 + $0x98] sm:$0xff] %v5888_v31  ;;  %v4803_v5 = vmul.f32 %v5888_v31, %v5888_v31 }
 0x23e   : > { %v4831_v62 = vadd.f32 %v4830_v6, %v4800_v23  ;;  %4731 = vst [vmem:[%s8546_s12 + $0x88] sm:$0xff] %v5889_v63  ;;  %v4762_v27 = vadd.f32 %v5889_v63, %v4761_v59  ;;  %v4801_v2 = vmul.f32 %v5889_v63, %v5889_v63 }
 0x240   : > { %v4763_v15 = vadd.f32 %v5886_v40, %v4762_v27  ;;  %v4832_v33 = vadd.f32 %v4831_v62, %v4801_v2  ;;  %v5722_v58 = vpop.f32.mrb[20].mxu1  ;;  %v5858_v29 = vpop.f32.mrb[20].mxu0 }
 0x241   : > { %v5890_v26 = vadd.f32 %v5858_v29, %v5722_v58  ;;  %v2787_v46 = vpop.f32.mrb[21].mxu1  ;;  %v4635_v47 = vpop.f32.mrb[21].mxu0 }
 0x242   : > { %v4833_v51 = vadd.f32 %v4832_v33, %v4802_v24  ;;  %v5891_v41 = vadd.f32 %v4635_v47, %v2787_v46  ;;  %v4764_v13 = vadd.f32 %v5888_v31, %v4763_v15  ;;  %v5723_v49 = vpop.f32.mrb[22].mxu1  ;;  %v5859_v35 = vpop.f32.mrb[22].mxu0 }
 0x243   : > { %4736 = vst [vmem:[%s8546_s12 + $0xb0] sm:$0xff] %v5890_v26  ;;  %v5892_v20 = vadd.f32 %v5859_v35, %v5723_v49  ;;  %v2790_v37 = vpop.f32.mrb[23].mxu1  ;;  %v4638_v4 = vpop.f32.mrb[23].mxu0  ;;  %v4806_v60 = vmul.f32 %v5890_v26, %v5890_v26 }
 0x244   : > { %4734 = vst [vmem:[%s8546_s12 + $0xa0] sm:$0xff] %v5891_v41  ;;  %v4765_v22 = vadd.f32 %v5891_v41, %v4764_v13  ;;  %v4804_v34 = vmul.f32 %v5891_v41, %v5891_v41  ;;  %v4834_v9 = vadd.f32 %v4833_v51, %v4803_v5  ;;  %v5893_v18 = vadd.f32 %v4638_v4, %v2790_v37 }
 0x245   : > { %4737 = vst [vmem:[%s8546_s12 + $0xb8] sm:$0xff] %v5892_v20  ;;  %v4807_v48 = vmul.f32 %v5892_v20, %v5892_v20 }
 0x246   : > { %v4835_v50 = vadd.f32 %v4834_v9, %v4804_v34  ;;  %4735 = vst [vmem:[%s8546_s12 + $0xa8] sm:$0xff] %v5893_v18  ;;  %v4766_v30 = vadd.f32 %v5893_v18, %v4765_v22  ;;  %v4805_v10 = vmul.f32 %v5893_v18, %v5893_v18 }
 0x248   : > { %v4767_v32 = vadd.f32 %v5890_v26, %v4766_v30  ;;  %v4836_v16 = vadd.f32 %v4835_v50, %v4805_v10  ;;  %v5726_v52 = vpop.f32.mrb[24].mxu1  ;;  %v5862_v12 = vpop.f32.mrb[24].mxu0 }
 0x249   : > { %v5894_v43 = vadd.f32 %v5862_v12, %v5726_v52  ;;  %v2803_v39 = vpop.f32.mrb[25].mxu1  ;;  %v4651_v1 = vpop.f32.mrb[25].mxu0 }
 0x24a   : > { %v4837_v54 = vadd.f32 %v4836_v16, %v4806_v60  ;;  %v5895_v3 = vadd.f32 %v4651_v1, %v2803_v39  ;;  %v4768_v21 = vadd.f32 %v5892_v20, %v4767_v32  ;;  %v5727_v17 = vpop.f32.mrb[26].mxu1  ;;  %v5863_v8 = vpop.f32.mrb[26].mxu0 }
 0x24b   : > { %4740 = vst [vmem:[%s8546_s12 + $0xd0] sm:$0xff] %v5894_v43  ;;  %v5896_v19 = vadd.f32 %v5863_v8, %v5727_v17  ;;  %v2806_v61 = vpop.f32.mrb[27].mxu1  ;;  %v4654_v53 = vpop.f32.mrb[27].mxu0  ;;  %v4810_v45 = vmul.f32 %v5894_v43, %v5894_v43 }
 0x24c   : > { %4738 = vst [vmem:[%s8546_s12 + $0xc0] sm:$0xff] %v5895_v3  ;;  %v4769_v7 = vadd.f32 %v5895_v3, %v4768_v21  ;;  %v4808_v56 = vmul.f32 %v5895_v3, %v5895_v3  ;;  %v4838_v14 = vadd.f32 %v4837_v54, %v4807_v48  ;;  %v5897_v57 = vadd.f32 %v4654_v53, %v2806_v61 }
 0x24d   : > { %4741 = vst [vmem:[%s8546_s12 + $0xd8] sm:$0xff] %v5896_v19  ;;  %v4811_v0 = vmul.f32 %v5896_v19, %v5896_v19 }
 0x24e   : > { %v4839_v40 = vadd.f32 %v4838_v14, %v4808_v56  ;;  %4739 = vst [vmem:[%s8546_s12 + $0xc8] sm:$0xff] %v5897_v57  ;;  %v4770_v28 = vadd.f32 %v5897_v57, %v4769_v7  ;;  %v4809_v36 = vmul.f32 %v5897_v57, %v5897_v57 }
 0x250   : > { %v4771_v42 = vadd.f32 %v5894_v43, %v4770_v28  ;;  %v4840_v55 = vadd.f32 %v4839_v40, %v4809_v36  ;;  %v5730_v11 = vpop.f32.mrb[28].mxu1  ;;  %v5866_v25 = vpop.f32.mrb[28].mxu0 }
 0x251   : > { %v5898_v44 = vadd.f32 %v5866_v25, %v5730_v11  ;;  %v2819_v31 = vpop.f32.mrb[29].mxu1  ;;  %v4667_v38 = vpop.f32.mrb[29].mxu0 }
 0x252   : > { %v4841_v59 = vadd.f32 %v4840_v55, %v4810_v45  ;;  %v5899_v23 = vadd.f32 %v4667_v38, %v2819_v31  ;;  %v4772_v6 = vadd.f32 %v5896_v19, %v4771_v42  ;;  %v5731_v63 = vpop.f32.mrb[30].mxu1  ;;  %v5867_v62 = vpop.f32.mrb[30].mxu0 }
 0x253   : > { %4744 = vst [vmem:[%s8546_s12 + $0xf0] sm:$0xff] %v5898_v44  ;;  %v5900_v27 = vadd.f32 %v5867_v62, %v5731_v63  ;;  %v2822_v2 = vpop.f32.mrb[31].mxu1  ;;  %v4670_v24 = vpop.f32.mrb[31].mxu0 }
 0x254   : > { %4742 = vst [vmem:[%s8546_s12 + $0xe0] sm:$0xff] %v5899_v23  ;;  %v4773_v15 = vadd.f32 %v5899_v23, %v4772_v6  ;;  %v4812_v33 = vmul.f32 %v5899_v23, %v5899_v23  ;;  %v4842_v58 = vadd.f32 %v4841_v59, %v4811_v0  ;;  %v5901_v29 = vadd.f32 %v4670_v24, %v2822_v2 }
 0x255   : > { %4745 = vst [vmem:[%s8546_s12 + $0xf8] sm:$0xff] %v5900_v27 }
 0x256   : > { %v4843_v26 = vadd.f32 %v4842_v58, %v4812_v33  ;;  %4743 = vst [vmem:[%s8546_s12 + $0xe8] sm:$0xff] %v5901_v29  ;;  %v4774_v46 = vadd.f32 %v5901_v29, %v4773_v15  ;;  %v4813_v47 = vmul.f32 %v5901_v29, %v5901_v29 }
 0x257   : > { %6372 = shalt.err (!%p6369_p5)
}
 0x258   : > { %s6373_s10 = scalar_lea.hbm %s8587_s24, 4096  ;;  %s6377_s12 = scalar_lea.hbm %s8675_s4, 8192 }
 0x259   : > { %p6374_p6 = scmp.ne.s32.totalorder %s8587_s24, %s6373_s10  ;;  %p6378_p10 = scmp.lt.u32.totalorder %s8587_s24, %s8675_s4 }
 0x25a   : > { %p6379_p11 = scmp.lt.u32.totalorder %s6377_s12, %s6373_s10  ;;  %p6381_p13 = scmp.lt.u32.totalorder %s6373_s10, %s8587_s24 }
 0x25b   : > { %p6375_p7 = pnand %p6374_p6, %p6545_p4 }
 0x25c   : > { %p6380_p12 = por %p6379_p11, %p6378_p10 }
 0x25d   : > { %p6376_p9 = pneg %p6375_p7 }
 0x25e   : > { %p6382_p0 = por %p6381_p13, %p6380_p12 }
 0x260   : > { %p6383_p1 = pnand %p6382_p0, %p6376_p9 }
 0x262   : > { %6386 = shalt.err (!%p6383_p1)
}
 0x263   : > { %s6472_s17 = smov 128   ;;  %s6473_s29 = smov 8   ;;  %v4814_v5 = vmul.f32 %v5898_v44, %v5898_v44  ;;  %v4775_v51 = vadd.f32 %v5898_v44, %v4774_v46  ;;  %v4844_v41 = vadd.f32 %v4843_v26, %v4813_v47  ;;  %v4815_v13 = vmul.f32 %v5900_v27, %v5900_v27 }
 0x264   : > { %6137 = dma.vmem_to_hbm [thread:$0]  (%p6545_p4), %s8589_s14, 4096, %s8587_s24, %s4855_s27, %s6472_s17, %s6472_s17, %s6473_s29  }
 0x265   : > { %v4776_v49 = vadd.f32 %v5900_v27, %v4775_v51  ;;  %v4845_v35 = vadd.f32 %v4844_v41, %v4814_v5  ;;  %s5053_s8 = sshll.u32 %s8541_s25, 1  ;;  %s5405_s14 = sshll.u32 %s6461_s21, 5 }
 0x266   : > { %s313_s24 = scalar_lea.vmem [#allocation4], %s5053_s8  ;;  %s8623_s10 = scalar_lea.hbm %s8676_s5, %s5405_s14 }
 0x267   : > { %v4777_v20 = vrot.slane %v4776_v49, 4  ;;  %v4846_v37 = vadd.f32 %v4845_v35, %v4815_v13  ;;  %s4893_s27 = sshll.u32 %s313_s24, 4  ;;  %s4860_s11 = scalar_lea.sflag [#allocation5], %s8541_s25  ;;  %s8625_s27 = int_to_ptr.vmem [resolvable:$true] %s4893_s27 }
 0x268   : > { %s6387_s7 = scalar_lea.vmem %s8625_s27, 32  ;;  %s6474_s21 = smov [#allocation4]  }
 0x269   : > { %v4778_v4 = vadd.f32 %v4777_v20, %v4776_v49  ;;  %v4847_v22 = vrot.slane %v4846_v37, 4  ;;  %p6388_p2 = scmp.ne.s32.totalorder %s8625_s27, %s6387_s7  ;;  %s6391_s12 = sshll.u32 %s6474_s21, 4  ;;  %s6392_s12 = int_to_ptr.vmem [resolvable:$false] %s6391_s12 }
 0x26a   : > { %s6393_s13 = scalar_lea.vmem %s6392_s12, 64  ;;  %p6394_p6 = scmp.lt.s32.totalorder %s8625_s27, %s6392_s12 }
 0x26b   : > { %v4779_v34 = vrot.slane %v4778_v4, 2  ;;  %v4848_v9 = vadd.f32 %v4847_v22, %v4846_v37  ;;  %p6389_p3 = pnand %p6388_p2, %p6545_p4  ;;  %p6395_p7 = scmp.lt.s32.totalorder %s6393_s13, %s6387_s7 }
 0x26d   : > { %v4780_v18 = vadd.f32 %v4779_v34, %v4778_v4  ;;  %v4849_v50 = vrot.slane %v4848_v9, 2  ;;  %p6390_p5 = pneg %p6389_p3  ;;  %p6396_p9 = por %p6395_p7, %p6394_p6 }
 0x26f   : > { %v4781_v30 = vrot.slane %v4780_v18, 1  ;;  %v4850_v10 = vadd.f32 %v4849_v50, %v4848_v9  ;;  %p6397_p10 = pnand %p6396_p9, %p6390_p5 }
 0x271   : > { %v4782_v60 = vadd.f32 %v4781_v30, %v4780_v18  ;;  %v4851_v32 = vrot.slane %v4850_v10, 1 }
 0x273   : > { %4783 = vst [vmem:[%s313_s24] sm:$0x1] %v4782_v60  ;;  %v4852_v16 = vadd.f32 %v4851_v32, %v4850_v10 }
 0x275   : > { %4853 = vst [vmem:[%s313_s24 + $0x1] sm:$0x1] %v4852_v16 }
 0x276   : > { %6400 = shalt.err (!%p6397_p10)
}
 0x277   : > { %s6401_s25 = scalar_lea.hbm %s8623_s10, 32  ;;  %s6405_s29 = scalar_lea.hbm %s8676_s5, 64 }
 0x278   : > { %p6402_p11 = scmp.ne.s32.totalorder %s8623_s10, %s6401_s25  ;;  %p6406_p0 = scmp.lt.u32.totalorder %s8623_s10, %s8676_s5 }
 0x279   : > { %p6407_p1 = scmp.lt.u32.totalorder %s6405_s29, %s6401_s25  ;;  %p6409_p3 = scmp.lt.u32.totalorder %s6401_s25, %s8623_s10 }
 0x27a   : > { %p6403_p12 = pnand %p6402_p11, %p6545_p4 }
 0x27b   : > { %p6408_p2 = por %p6407_p1, %p6406_p0 }
 0x27c   : > { %p6404_p13 = pneg %p6403_p12 }
 0x27d   : > { %p6410_p5 = por %p6409_p3, %p6408_p2 }
 0x27f   : > { %p6411_p6 = pnand %p6410_p5, %p6404_p13 }
 0x281   : > { %6414 = shalt.err (!%p6411_p6)
}
 0x282   : > { %6138 = dma.vmem_to_hbm [thread:$0]  (%p6545_p4), %s8625_s27, 32, %s8623_s10, %s4860_s11  }
 0x283 PF: > { %p6148_p7 = scmp.ge.s32.totalorder %s6469_s23, 2  ;;  %s4905_s24 = sand.u32 1, %s6449_s18  }
 0x284   : > { %s4906_s16 = scalar_lea.sflag [#allocation3], %s4905_s24 }
 0x285   : > { %p6142_p9 = pnand %p6148_p7, %p6552_p8 }
 0x287   : > { %6440 = dma.done.wait (!%p6142_p9), %s4906_s16, 4096  }
 0x288   : > { %6442 = vsyncadd (!%p6142_p9), %s4906_s16, 4294963200  ;;  %s4915_s9 = scalar_lea.sflag [#allocation5], %s4905_s24 }
 0x289   : > { %6444 = dma.done.wait (!%p6142_p9), %s4915_s9, 32  }
 0x28a   : > { %6446 = vsyncadd (!%p6142_p9), %s4915_s9, 4294967264  ;;  %s22_s23 = sadd.s32 1, %s6469_s23   ;;  %s8791_s18 = smov %s6453_s19 }
 0x28b   : > { %p19_p10 = scmp.ge.s32.totalorder %s22_s23, 4   ;;  %s8792_s19 = smov %s6457_s20 }
 0x28c   : > { %s8793_s20 = smov %s6558_s6  ;;  %s8794_s21 = smov %s6465_s22 }
 0x28d   : > { %s8795_s22 = smov %s8797_s26  ;;  %21 = sbr.rel (!%p19_p10) target bundleno = 6 (0x6), region = 102 }
 0x294   :  { %4920 = vsyncpa [#allocation3], 1 }
 0x295   :  { %4922 = vsyncpa [#allocation3 + $0x1], 1 }
 0x296   :  { %4923 = vsyncpa [#allocation5], 1 }
 0x297   :  { %4925 = vsyncpa [#allocation5 + $0x1], 1 }

</bundles_post_ra>
